<compile_context>
chip_gen: v7x
topology: tpu7x:2x2x1
jax: 0.10.0
libtpu: 0.0.40
codegen_flags: <defaults>
</compile_context>

<pallas_src>
import jax
import jax.numpy as jnp
from jax.experimental import pallas as pl
from jax.experimental.pallas import tpu as pltpu

# ----------------------------- model dimensions -----------------------------
B = 2                 # batch
S = 16                # sequence length
H = 128               # bert hidden_size
VOCAB = 100
N_CLASS = 4
N_FILTERS = H                       # n_filters = hidden_size
FILTER_SIZES = (2, 3, 4)
INFORM = H // 4                     # inform_size = 32
HID = H // 8                        # rnn_size    = 16
DIM_Q = HID // 2                    # 8 (defined by spec; unused downstream)
DIM_K = HID // 4                    # 4
DIM_V = HID // 2                    # 8
NUM_HEADS = INFORM // DIM_V         # 4  (so concat(heads) == inform_size)
D_RNN = 2 * HID                     # BiLSTM output dim = inform_size

# --------------------- packed-operand static offsets -------------------------
# w128: (H, W128_COLS) bf16 — every weight with H=128 rows, side by side.
OFF_WPOOL = 0
OFF_WXF = OFF_WPOOL + H                       # fwd-dir LSTM input weights (zeros in bwd cols)
OFF_WXB = OFF_WXF + 8 * HID                   # bwd-dir LSTM input weights (zeros in fwd cols)
OFF_CNN = OFF_WXB + 8 * HID                   # fused conv weights, one 3F block per time shift
CNN_COLS = len(FILTER_SIZES) * N_FILTERS      # 384
OFF_WPL = OFF_CNN + max(FILTER_SIZES) * CNN_COLS   # pool_linear weight
W128_COLS = OFF_WPL + INFORM                  # 1952

# wsm: (2*HID, 192) f32 — recurrent block-diag weight + merged QKV.
OFF_WHH = 0
OFF_WQKV = 8 * HID                            # 128
QKV_COLS = NUM_HEADS * (2 * DIM_K + DIM_V)    # 64 = [Q(16) | K(16) | V(32)]

# biases: (1, BIAS_LEN) f32
B_POOL = 0
B_CNN = B_POOL + H                            # 128
B_CNNF = B_CNN + CNN_COLS                     # 512
B_LSTM = B_CNNF + INFORM                      # 544
B_PL = B_LSTM + 8 * HID                       # 672
B_PRED = B_PL + INFORM                        # 704
BIAS_LEN = B_PRED + N_CLASS                   # 708


def _vmem():
    return pl.BlockSpec(memory_space=pltpu.MemorySpace.VMEM)


# ------------------------------ fused kernel ---------------------------------
def bganet_kernel(x_ref, w128_ref, wsm_ref, cnnwf_ref, wpred_ref, bias_ref, out_ref):
    f32 = jnp.float32
    bf16 = jnp.bfloat16

    x = x_ref[...]                                          # (B, S, H) f32
    b, s, h = x.shape

    # ---- BERT pooler stub: tanh(dense(CLS)) ----
    cls_bf = x[:, 0, :].astype(bf16)
    pooler = jnp.tanh(
        jnp.dot(cls_bf, w128_ref[:, OFF_WPOOL:OFF_WPOOL + H],
                preferred_element_type=f32)
        + bias_ref[:, B_POOL:B_POOL + H])                   # (B, H) f32

    # ---- TextCNN: fused filter sizes, shift-and-accumulate conv ----
    L = s - min(FILTER_SIZES) + 1                           # 15 (common conv length)
    pad = L - 1 + max(FILTER_SIZES) - s                     # 2
    if pad:
        xp = jnp.concatenate([x, jnp.zeros((b, pad, h), f32)], axis=1)
    else:
        xp = x
    conv = jnp.zeros((b * L, CNN_COLS), f32)
    for i in range(max(FILTER_SIZES)):                      # 4 shifts, one matmul each
        slab = xp[:, i:i + L, :].reshape(b * L, h).astype(bf16)
        wsl = w128_ref[:, OFF_CNN + i * CNN_COLS:OFF_CNN + (i + 1) * CNN_COLS]
        conv = conv + jnp.dot(slab, wsl, preferred_element_type=f32)
    conv = jnp.maximum(conv + bias_ref[:, B_CNN:B_CNN + CNN_COLS], 0.0)
    conv = conv.reshape(b, L, CNN_COLS)
    # max-over-time, exact valid range per filter size (no masking needed)
    pooled = jnp.concatenate(
        [jnp.max(conv[:, :s - fs + 1, gi * N_FILTERS:(gi + 1) * N_FILTERS], axis=1)
         for gi, fs in enumerate(FILTER_SIZES)], axis=-1)   # (B, 3F)
    c_att = (jnp.dot(pooled, cnnwf_ref[...], preferred_element_type=f32)
             + bias_ref[:, B_CNNF:B_CNNF + INFORM])         # (B, INFORM)

    # ---- BiLSTM: hoisted input projection, fused fwd/bwd recurrence ----
    # Gate column layout (8*HID = 128): [i | f | o | g], each 2*HID wide with
    # [:HID] = forward direction, [HID:] = backward direction.
    x2_bf = x.reshape(b * s, h).astype(bf16)
    gin_f = (jnp.dot(x2_bf, w128_ref[:, OFF_WXF:OFF_WXF + 8 * HID],
                     preferred_element_type=f32)
             + bias_ref[:, B_LSTM:B_LSTM + 8 * HID]).reshape(b, s, 8 * HID)
    gin_b = jnp.dot(x2_bf, w128_ref[:, OFF_WXB:OFF_WXB + 8 * HID],
                    preferred_element_type=f32).reshape(b, s, 8 * HID)

    whh = wsm_ref[:, OFF_WHH:OFF_WHH + 8 * HID]             # (2*HID, 8*HID) block-diag
    h_fb = jnp.zeros((b, 2 * HID), f32)                     # [h_f | h_b]
    c_fb = jnp.zeros((b, 2 * HID), f32)
    hs = []
    for t in range(s):                                      # 16 dependent steps, state in vregs
        # input slab (independent of recurrence -> scheduled off the chain)
        g = (gin_f[:, t, :] + gin_b[:, s - 1 - t, :]
             + jnp.dot(h_fb, whh, preferred_element_type=f32))
        sg = jax.nn.sigmoid(g[:, :6 * HID])                 # i,f,o (both dirs), one slab
        tg = jnp.tanh(g[:, 6 * HID:])                       # g (both dirs)
        c_fb = sg[:, 2 * HID:4 * HID] * c_fb + sg[:, :2 * HID] * tg
        h_fb = sg[:, 4 * HID:6 * HID] * jnp.tanh(c_fb)
        hs.append(h_fb)
    # time-realign backward half and assemble (B, S, 2*HID) once
    h_f_seq = jnp.stack([hs[t][:, :HID] for t in range(s)], axis=1)
    h_b_seq = jnp.stack([hs[s - 1 - t][:, HID:] for t in range(s)], axis=1)
    rnn = jnp.concatenate([h_f_seq, h_b_seq], axis=-1)      # (B, S, 2*HID)

    # ---- multi-head self-attention (merged QKV, single softmax) + mean ----
    qkv = jnp.dot(rnn.reshape(b * s, 2 * HID),
                  wsm_ref[:, OFF_WQKV:OFF_WQKV + QKV_COLS],
                  preferred_element_type=f32).reshape(b, s, QKV_COLS)
    nq = NUM_HEADS * DIM_K
    q_all = qkv[:, :, :nq]
    k_all = qkv[:, :, nq:2 * nq]
    v_all = qkv[:, :, 2 * nq:]
    scores = [jnp.einsum('bqd,bkd->bqk',
                         q_all[:, :, hi * DIM_K:(hi + 1) * DIM_K],
                         k_all[:, :, hi * DIM_K:(hi + 1) * DIM_K],
                         preferred_element_type=f32)
              for hi in range(NUM_HEADS)]
    sc = jnp.concatenate(scores, axis=0) * (1.0 / (DIM_K ** 0.5))   # (NH*B, S, S)
    m = jnp.max(sc, axis=-1, keepdims=True)
    e = jnp.exp(sc - m)
    att = e * pl.reciprocal(jnp.sum(e, axis=-1, keepdims=True), approx=True)
    ctx = jnp.concatenate(
        [jnp.einsum('bqk,bkd->bqd', att[hi * b:(hi + 1) * b],
                    v_all[:, :, hi * DIM_V:(hi + 1) * DIM_V],
                    preferred_element_type=f32)
         for hi in range(NUM_HEADS)], axis=-1)              # (B, S, INFORM)
    f_att = jnp.sum(ctx, axis=1) * (1.0 / s)                # mean over time -> (B, INFORM)

    # ---- gating + predict + softmax head ----
    p_att = (jnp.dot(pooler.astype(bf16), w128_ref[:, OFF_WPL:OFF_WPL + INFORM],
                     preferred_element_type=f32)
             + bias_ref[:, B_PL:B_PL + INFORM])             # (B, INFORM)
    zc = jnp.tanh(c_att)
    zf = jnp.tanh(f_att)
    hc = (1.0 - zc) * c_att + zc * p_att
    hf = (1.0 - zf) * f_att + zf * p_att
    hcat = jnp.concatenate([hc, hf], axis=-1)               # (B, 2*INFORM)
    logits = (jnp.dot(hcat, wpred_ref[...], preferred_element_type=f32)
              + bias_ref[:, B_PRED:B_PRED + N_CLASS])
    mx = jnp.max(logits, axis=-1, keepdims=True)
    ex = jnp.exp(logits - mx)
    out_ref[...] = (ex / jnp.sum(ex, axis=-1, keepdims=True)).astype(out_ref.dtype)


def bganet_pallas(last_hidden, p):
    b = last_hidden.shape[0]
    return pl.pallas_call(
        bganet_kernel,
        out_shape=jax.ShapeDtypeStruct((b, N_CLASS), jnp.float32),
        in_specs=[_vmem()] * 6,
        out_specs=_vmem(),
    )(last_hidden, p['w128'], p['wsm'], p['cnn_wf'], p['w_pred'], p['biases'])


# --------------------------------- forward -----------------------------------
def bganet_forward(params, in_ids, att_masks):
    # TODO(synk): pretrained BertModel not implemented; deterministic embedding
    # lookup + tanh pooler stub stands in for last_hidden_state / pooler_output.
    emb = jnp.take(params['emb'], in_ids, axis=0)           # (B, S, H)
    last_hidden = emb * att_masks[..., None].astype(emb.dtype)
    return bganet_pallas(last_hidden, params)               # (B, N_CLASS)


# ----------------------- deterministic init + host packing -------------------
def build_params(key):
    ks = iter(jax.random.split(key, 64))

    def w(shape, scale=0.05):
        return jax.random.normal(next(ks), shape, jnp.float32) * scale

    # --- bert stub ---
    emb = w((VOCAB, H), 0.02)
    w_pool = w((H, H))
    b_pool = w((H,), 0.02)

    # --- TextCNN: Conv2d(1, F, (fs, H)) flattened to (fs*H, F) per filter size ---
    cnn_w = {fs: w((fs * H, N_FILTERS)) for fs in FILTER_SIZES}
    cnn_b = {fs: w((N_FILTERS,), 0.02) for fs in FILTER_SIZES}
    cnn_wf = w((CNN_COLS, INFORM))
    cnn_bf = w((INFORM,), 0.02)
    # fused per-shift conv weights: shift i row-block -> columns [fs2 | fs3 | fs4]
    shifts = []
    for i in range(max(FILTER_SIZES)):
        cols = []
        for fs in FILTER_SIZES:
            if i < fs:
                cols.append(cnn_w[fs][i * H:(i + 1) * H, :])
            else:
                cols.append(jnp.zeros((H, N_FILTERS), jnp.float32))
        shifts.append(jnp.concatenate(cols, axis=1))        # (H, 3F)

    # --- BiLSTM with interleaved gate-column layout [i_f,i_b|f_f,f_b|o_f,o_b|g_f,g_b] ---
    def scatter_cols(blocks_f, blocks_b):
        cols = []
        for gi in range(4):
            cols.append(blocks_f[gi])
            cols.append(blocks_b[gi])
        return jnp.concatenate(cols, axis=1)

    wxf_g = [w((H, HID)) for _ in range(4)]                 # fwd input weights per gate
    wxb_g = [w((H, HID)) for _ in range(4)]                 # bwd input weights per gate
    whf_g = [w((HID, HID)) for _ in range(4)]               # fwd recurrent
    whb_g = [w((HID, HID)) for _ in range(4)]               # bwd recurrent
    zH = jnp.zeros((H, HID), jnp.float32)
    zR = jnp.zeros((HID, HID), jnp.float32)
    lstm_wxf = scatter_cols(wxf_g, [zH] * 4)                # (H, 8*HID), bwd cols zero
    lstm_wxb = scatter_cols([zH] * 4, wxb_g)                # (H, 8*HID), fwd cols zero
    lstm_whh = jnp.concatenate([scatter_cols(whf_g, [zR] * 4),
                                scatter_cols([zR] * 4, whb_g)], axis=0)  # (2*HID, 8*HID) block-diag
    bfw_g = [w((HID,), 0.02) for _ in range(4)]
    bbw_g = [w((HID,), 0.02) for _ in range(4)]
    lstm_b = jnp.concatenate([v for gi in range(4) for v in (bfw_g[gi], bbw_g[gi])])

    # --- multi-head attention (all heads projected at once) ---
    att_wq = w((D_RNN, NUM_HEADS * DIM_K))
    att_wk = w((D_RNN, NUM_HEADS * DIM_K))
    att_wv = w((D_RNN, NUM_HEADS * DIM_V))

    # --- pool_linear + predict ---
    w_pl = w((H, INFORM))
    b_pl = w((INFORM,), 0.02)
    w_pred = w((2 * INFORM, N_CLASS))
    b_pred = w((N_CLASS,), 0.02)

    # --- pack operands (6 kernel inputs instead of 23) ---
    w128 = jnp.concatenate([w_pool, lstm_wxf, lstm_wxb] + shifts + [w_pl],
                           axis=1).astype(jnp.bfloat16)     # (H, 1952) bf16
    assert w128.shape == (H, W128_COLS)
    wsm = jnp.concatenate([lstm_whh, att_wq, att_wk, att_wv], axis=1)  # (2*HID, 192) f32
    biases = jnp.concatenate([b_pool, cnn_b[2], cnn_b[3], cnn_b[4],
                              cnn_bf, lstm_b, b_pl, b_pred]).reshape(1, -1)
    assert biases.shape == (1, BIAS_LEN)

    return dict(emb=emb, w128=w128, wsm=wsm, cnn_wf=cnn_wf,
                w_pred=w_pred, biases=biases)


if __name__ == "__main__":
    key = jax.random.PRNGKey(0)
    k_params, k_ids = jax.random.split(key)
    params = build_params(k_params)

    in_ids = jax.random.randint(k_ids, (B, S), 0, VOCAB, dtype=jnp.int32)
    att_masks = jnp.ones((B, S), jnp.int32)

    probs = bganet_forward(params, in_ids, att_masks)
    probs = jax.block_until_ready(probs)

    assert probs.shape == (B, N_CLASS)
    assert bool(jnp.all(jnp.isfinite(probs)))
    assert bool(jnp.allclose(jnp.sum(probs, axis=1), 1.0, atol=1e-5))
    print("KERNEL_OK")
</pallas_src>

<mosaic_0001>
module attributes {stable_mosaic.version = 11 : i64} {
  func.func @bganet_kernel(%arg0: memref<2x16x128xf32, #tpu.memory_space<vmem>>, %arg1: memref<128x1952xbf16, #tpu.memory_space<vmem>>, %arg2: memref<32x192xf32, #tpu.memory_space<vmem>>, %arg3: memref<384x32xf32, #tpu.memory_space<vmem>>, %arg4: memref<64x4xf32, #tpu.memory_space<vmem>>, %arg5: memref<1x708xf32, #tpu.memory_space<vmem>>, %arg6: memref<2x4xf32, #tpu.memory_space<vmem>>) attributes {dimension_semantics = [], scalar_prefetch = 0 : i64, scratch_operands = 0 : i64, tpu.core_type = #tpu.core_type<tc>} {
    %c0 = arith.constant 0 : index
    %c0_0 = arith.constant 0 : index
    %c0_1 = arith.constant 0 : index
    %0 = vector.load %arg0[%c0, %c0_0, %c0_1] : memref<2x16x128xf32, #tpu.memory_space<vmem>>, vector<2x16x128xf32>
    %1 = vector.extract_strided_slice %0 {offsets = [0, 0, 0], sizes = [2, 1, 128], strides = [1, 1, 1]} : vector<2x16x128xf32> to vector<2x1x128xf32>
    %2 = vector.shape_cast %1 : vector<2x1x128xf32> to vector<2x128xf32>
    %3 = arith.truncf %2 : vector<2x128xf32> to vector<2x128xbf16>
    %c0_2 = arith.constant 0 : index
    %c0_3 = arith.constant 0 : index
    %4 = vector.load %arg1[%c0_2, %c0_3] : memref<128x1952xbf16, #tpu.memory_space<vmem>>, vector<128x128xbf16>
    %cst = arith.constant dense<0.000000e+00> : vector<2x128xf32>
    %5 = tpu.matmul %3, %4, %cst {dimension_numbers = #tpu.dot_dimension_numbers<[1], [0], [0], [1], [0, 0, 1, 1], [], []>} : vector<2x128xbf16>, vector<128x128xbf16>, vector<2x128xf32> -> vector<2x128xf32>
    %c0_4 = arith.constant 0 : index
    %c0_5 = arith.constant 0 : index
    %6 = vector.load %arg5[%c0_4, %c0_5] : memref<1x708xf32, #tpu.memory_space<vmem>>, vector<1x128xf32>
    %7 = vector.broadcast %6 : vector<1x128xf32> to vector<2x128xf32>
    %8 = arith.addf %5, %7 : vector<2x128xf32>
    %9 = math.tanh %8 : vector<2x128xf32>
    %cst_6 = arith.constant 0.000000e+00 : f32
    %10 = vector.broadcast %cst_6 : f32 to vector<2x2x128xf32>
    %11 = tpu.concatenate %0, %10 in 1 : vector<2x16x128xf32>, vector<2x2x128xf32> -> vector<2x18x128xf32>
    %cst_7 = arith.constant 0.000000e+00 : f32
    %12 = vector.broadcast %cst_7 : f32 to vector<30x384xf32>
    %13 = vector.extract_strided_slice %11 {offsets = [0, 0, 0], sizes = [2, 15, 128], strides = [1, 1, 1]} : vector<2x18x128xf32> to vector<2x15x128xf32>
    %14 = vector.shape_cast %13 : vector<2x15x128xf32> to vector<30x128xf32>
    %15 = arith.truncf %14 : vector<30x128xf32> to vector<30x128xbf16>
    %c0_8 = arith.constant 0 : index
    %c384 = arith.constant 384 : index
    %16 = vector.load %arg1[%c0_8, %c384] : memref<128x1952xbf16, #tpu.memory_space<vmem>>, vector<128x384xbf16>
    %cst_9 = arith.constant dense<0.000000e+00> : vector<30x384xf32>
    %17 = tpu.matmul %15, %16, %cst_9 {dimension_numbers = #tpu.dot_dimension_numbers<[1], [0], [0], [1], [0, 0, 1, 1], [], []>} : vector<30x128xbf16>, vector<128x384xbf16>, vector<30x384xf32> -> vector<30x384xf32>
    %18 = arith.addf %12, %17 : vector<30x384xf32>
    %19 = vector.extract_strided_slice %11 {offsets = [0, 1, 0], sizes = [2, 15, 128], strides = [1, 1, 1]} : vector<2x18x128xf32> to vector<2x15x128xf32>
    %20 = vector.shape_cast %19 : vector<2x15x128xf32> to vector<30x128xf32>
    %21 = arith.truncf %20 : vector<30x128xf32> to vector<30x128xbf16>
    %c0_10 = arith.constant 0 : index
    %c768 = arith.constant 768 : index
    %22 = vector.load %arg1[%c0_10, %c768] : memref<128x1952xbf16, #tpu.memory_space<vmem>>, vector<128x384xbf16>
    %cst_11 = arith.constant dense<0.000000e+00> : vector<30x384xf32>
    %23 = tpu.matmul %21, %22, %cst_11 {dimension_numbers = #tpu.dot_dimension_numbers<[1], [0], [0], [1], [0, 0, 1, 1], [], []>} : vector<30x128xbf16>, vector<128x384xbf16>, vector<30x384xf32> -> vector<30x384xf32>
    %24 = arith.addf %18, %23 : vector<30x384xf32>
    %25 = vector.extract_strided_slice %11 {offsets = [0, 2, 0], sizes = [2, 15, 128], strides = [1, 1, 1]} : vector<2x18x128xf32> to vector<2x15x128xf32>
    %26 = vector.shape_cast %25 : vector<2x15x128xf32> to vector<30x128xf32>
    %27 = arith.truncf %26 : vector<30x128xf32> to vector<30x128xbf16>
    %c0_12 = arith.constant 0 : index
    %c1152 = arith.constant 1152 : index
    %28 = vector.load %arg1[%c0_12, %c1152] : memref<128x1952xbf16, #tpu.memory_space<vmem>>, vector<128x384xbf16>
    %cst_13 = arith.constant dense<0.000000e+00> : vector<30x384xf32>
    %29 = tpu.matmul %27, %28, %cst_13 {dimension_numbers = #tpu.dot_dimension_numbers<[1], [0], [0], [1], [0, 0, 1, 1], [], []>} : vector<30x128xbf16>, vector<128x384xbf16>, vector<30x384xf32> -> vector<30x384xf32>
    %30 = arith.addf %24, %29 : vector<30x384xf32>
    %31 = vector.extract_strided_slice %11 {offsets = [0, 3, 0], sizes = [2, 15, 128], strides = [1, 1, 1]} : vector<2x18x128xf32> to vector<2x15x128xf32>
    %32 = vector.shape_cast %31 : vector<2x15x128xf32> to vector<30x128xf32>
    %33 = arith.truncf %32 : vector<30x128xf32> to vector<30x128xbf16>
    %c0_14 = arith.constant 0 : index
    %c1536 = arith.constant 1536 : index
    %34 = vector.load %arg1[%c0_14, %c1536] : memref<128x1952xbf16, #tpu.memory_space<vmem>>, vector<128x384xbf16>
    %cst_15 = arith.constant dense<0.000000e+00> : vector<30x384xf32>
    %35 = tpu.matmul %33, %34, %cst_15 {dimension_numbers = #tpu.dot_dimension_numbers<[1], [0], [0], [1], [0, 0, 1, 1], [], []>} : vector<30x128xbf16>, vector<128x384xbf16>, vector<30x384xf32> -> vector<30x384xf32>
    %36 = arith.addf %30, %35 : vector<30x384xf32>
    %c0_16 = arith.constant 0 : index
    %c128 = arith.constant 128 : index
    %37 = vector.load %arg5[%c0_16, %c128] : memref<1x708xf32, #tpu.memory_space<vmem>>, vector<1x384xf32>
    %38 = vector.broadcast %37 : vector<1x384xf32> to vector<30x384xf32>
    %39 = arith.addf %36, %38 : vector<30x384xf32>
    %cst_17 = arith.constant 0.000000e+00 : f32
    %40 = vector.broadcast %cst_17 : f32 to vector<30x384xf32>
    %41 = arith.maximumf %39, %40 : vector<30x384xf32>
    %42 = vector.shape_cast %41 : vector<30x384xf32> to vector<2x15x384xf32>
    %43 = vector.extract_strided_slice %42 {offsets = [0, 0, 0], sizes = [2, 15, 128], strides = [1, 1, 1]} : vector<2x15x384xf32> to vector<2x15x128xf32>
    %cst_18 = arith.constant dense<0xFF800000> : vector<2x128xf32>
    %44 = vector.multi_reduction <maximumf>, %43, %cst_18 [1] : vector<2x15x128xf32> to vector<2x128xf32>
    %45 = vector.extract_strided_slice %42 {offsets = [0, 0, 128], sizes = [2, 14, 128], strides = [1, 1, 1]} : vector<2x15x384xf32> to vector<2x14x128xf32>
    %cst_19 = arith.constant dense<0xFF800000> : vector<2x128xf32>
    %46 = vector.multi_reduction <maximumf>, %45, %cst_19 [1] : vector<2x14x128xf32> to vector<2x128xf32>
    %47 = vector.extract_strided_slice %42 {offsets = [0, 0, 256], sizes = [2, 13, 128], strides = [1, 1, 1]} : vector<2x15x384xf32> to vector<2x13x128xf32>
    %cst_20 = arith.constant dense<0xFF800000> : vector<2x128xf32>
    %48 = vector.multi_reduction <maximumf>, %47, %cst_20 [1] : vector<2x13x128xf32> to vector<2x128xf32>
    %49 = tpu.concatenate %44, %46, %48 in 1 : vector<2x128xf32>, vector<2x128xf32>, vector<2x128xf32> -> vector<2x384xf32>
    %c0_21 = arith.constant 0 : index
    %c0_22 = arith.constant 0 : index
    %50 = vector.load %arg3[%c0_21, %c0_22] : memref<384x32xf32, #tpu.memory_space<vmem>>, vector<384x32xf32>
    %cst_23 = arith.constant dense<0.000000e+00> : vector<2x32xf32>
    %51 = tpu.matmul %49, %50, %cst_23 {dimension_numbers = #tpu.dot_dimension_numbers<[1], [0], [0], [1], [0, 0, 1, 1], [], []>} : vector<2x384xf32>, vector<384x32xf32>, vector<2x32xf32> -> vector<2x32xf32>
    %c0_24 = arith.constant 0 : index
    %c512 = arith.constant 512 : index
    %52 = vector.load %arg5[%c0_24, %c512] : memref<1x708xf32, #tpu.memory_space<vmem>>, vector<1x32xf32>
    %53 = vector.broadcast %52 : vector<1x32xf32> to vector<2x32xf32>
    %54 = arith.addf %51, %53 : vector<2x32xf32>
    %55 = vector.shape_cast %0 : vector<2x16x128xf32> to vector<32x128xf32>
    %56 = arith.truncf %55 : vector<32x128xf32> to vector<32x128xbf16>
    %c0_25 = arith.constant 0 : index
    %c128_26 = arith.constant 128 : index
    %57 = vector.load %arg1[%c0_25, %c128_26] : memref<128x1952xbf16, #tpu.memory_space<vmem>>, vector<128x128xbf16>
    %cst_27 = arith.constant dense<0.000000e+00> : vector<32x128xf32>
    %58 = tpu.matmul %56, %57, %cst_27 {dimension_numbers = #tpu.dot_dimension_numbers<[1], [0], [0], [1], [0, 0, 1, 1], [], []>} : vector<32x128xbf16>, vector<128x128xbf16>, vector<32x128xf32> -> vector<32x128xf32>
    %c0_28 = arith.constant 0 : index
    %c544 = arith.constant 544 : index
    %59 = vector.load %arg5[%c0_28, %c544] : memref<1x708xf32, #tpu.memory_space<vmem>>, vector<1x128xf32>
    %60 = vector.broadcast %59 : vector<1x128xf32> to vector<32x128xf32>
    %61 = arith.addf %58, %60 : vector<32x128xf32>
    %62 = vector.shape_cast %61 : vector<32x128xf32> to vector<2x16x128xf32>
    %c0_29 = arith.constant 0 : index
    %c256 = arith.constant 256 : index
    %63 = vector.load %arg1[%c0_29, %c256] : memref<128x1952xbf16, #tpu.memory_space<vmem>>, vector<128x128xbf16>
    %cst_30 = arith.constant dense<0.000000e+00> : vector<32x128xf32>
    %64 = tpu.matmul %56, %63, %cst_30 {dimension_numbers = #tpu.dot_dimension_numbers<[1], [0], [0], [1], [0, 0, 1, 1], [], []>} : vector<32x128xbf16>, vector<128x128xbf16>, vector<32x128xf32> -> vector<32x128xf32>
    %65 = vector.shape_cast %64 : vector<32x128xf32> to vector<2x16x128xf32>
    %c0_31 = arith.constant 0 : index
    %c0_32 = arith.constant 0 : index
    %66 = vector.load %arg2[%c0_31, %c0_32] : memref<32x192xf32, #tpu.memory_space<vmem>>, vector<32x128xf32>
    %cst_33 = arith.constant 0.000000e+00 : f32
    %67 = vector.broadcast %cst_33 : f32 to vector<2x32xf32>
    %cst_34 = arith.constant 0.000000e+00 : f32
    %68 = vector.broadcast %cst_34 : f32 to vector<2x32xf32>
    %69 = vector.extract_strided_slice %62 {offsets = [0, 0, 0], sizes = [2, 1, 128], strides = [1, 1, 1]} : vector<2x16x128xf32> to vector<2x1x128xf32>
    %70 = vector.shape_cast %69 : vector<2x1x128xf32> to vector<2x128xf32>
    %71 = vector.extract_strided_slice %65 {offsets = [0, 15, 0], sizes = [2, 1, 128], strides = [1, 1, 1]} : vector<2x16x128xf32> to vector<2x1x128xf32>
    %72 = vector.shape_cast %71 : vector<2x1x128xf32> to vector<2x128xf32>
    %73 = arith.addf %70, %72 : vector<2x128xf32>
    %cst_35 = arith.constant dense<0.000000e+00> : vector<2x128xf32>
    %74 = tpu.matmul %67, %66, %cst_35 {dimension_numbers = #tpu.dot_dimension_numbers<[1], [0], [0], [1], [0, 0, 1, 1], [], []>} : vector<2x32xf32>, vector<32x128xf32>, vector<2x128xf32> -> vector<2x128xf32>
    %75 = arith.addf %73, %74 : vector<2x128xf32>
    %76 = vector.extract_strided_slice %75 {offsets = [0, 0], sizes = [2, 96], strides = [1, 1]} : vector<2x128xf32> to vector<2x96xf32>
    %77 = arith.negf %76 : vector<2x96xf32>
    %78 = math.exp %77 : vector<2x96xf32>
    %cst_36 = arith.constant 1.000000e+00 : f32
    %79 = vector.broadcast %cst_36 : f32 to vector<2x96xf32>
    %80 = arith.addf %79, %78 : vector<2x96xf32>
    %81 = arith.divf %79, %80 : vector<2x96xf32>
    %82 = vector.extract_strided_slice %75 {offsets = [0, 96], sizes = [2, 32], strides = [1, 1]} : vector<2x128xf32> to vector<2x32xf32>
    %83 = math.tanh %82 : vector<2x32xf32>
    %84 = vector.extract_strided_slice %81 {offsets = [0, 32], sizes = [2, 32], strides = [1, 1]} : vector<2x96xf32> to vector<2x32xf32>
    %85 = arith.mulf %84, %68 : vector<2x32xf32>
    %86 = vector.extract_strided_slice %81 {offsets = [0, 0], sizes = [2, 32], strides = [1, 1]} : vector<2x96xf32> to vector<2x32xf32>
    %87 = arith.mulf %86, %83 : vector<2x32xf32>
    %88 = arith.addf %85, %87 : vector<2x32xf32>
    %89 = vector.extract_strided_slice %81 {offsets = [0, 64], sizes = [2, 32], strides = [1, 1]} : vector<2x96xf32> to vector<2x32xf32>
    %90 = math.tanh %88 : vector<2x32xf32>
    %91 = arith.mulf %89, %90 : vector<2x32xf32>
    %92 = vector.extract_strided_slice %62 {offsets = [0, 1, 0], sizes = [2, 1, 128], strides = [1, 1, 1]} : vector<2x16x128xf32> to vector<2x1x128xf32>
    %93 = vector.shape_cast %92 : vector<2x1x128xf32> to vector<2x128xf32>
    %94 = vector.extract_strided_slice %65 {offsets = [0, 14, 0], sizes = [2, 1, 128], strides = [1, 1, 1]} : vector<2x16x128xf32> to vector<2x1x128xf32>
    %95 = vector.shape_cast %94 : vector<2x1x128xf32> to vector<2x128xf32>
    %96 = arith.addf %93, %95 : vector<2x128xf32>
    %cst_37 = arith.constant dense<0.000000e+00> : vector<2x128xf32>
    %97 = tpu.matmul %91, %66, %cst_37 {dimension_numbers = #tpu.dot_dimension_numbers<[1], [0], [0], [1], [0, 0, 1, 1], [], []>} : vector<2x32xf32>, vector<32x128xf32>, vector<2x128xf32> -> vector<2x128xf32>
    %98 = arith.addf %96, %97 : vector<2x128xf32>
    %99 = vector.extract_strided_slice %98 {offsets = [0, 0], sizes = [2, 96], strides = [1, 1]} : vector<2x128xf32> to vector<2x96xf32>
    %100 = arith.negf %99 : vector<2x96xf32>
    %101 = math.exp %100 : vector<2x96xf32>
    %cst_38 = arith.constant 1.000000e+00 : f32
    %102 = vector.broadcast %cst_38 : f32 to vector<2x96xf32>
    %103 = arith.addf %102, %101 : vector<2x96xf32>
    %104 = arith.divf %102, %103 : vector<2x96xf32>
    %105 = vector.extract_strided_slice %98 {offsets = [0, 96], sizes = [2, 32], strides = [1, 1]} : vector<2x128xf32> to vector<2x32xf32>
    %106 = math.tanh %105 : vector<2x32xf32>
    %107 = vector.extract_strided_slice %104 {offsets = [0, 32], sizes = [2, 32], strides = [1, 1]} : vector<2x96xf32> to vector<2x32xf32>
    %108 = arith.mulf %107, %88 : vector<2x32xf32>
    %109 = vector.extract_strided_slice %104 {offsets = [0, 0], sizes = [2, 32], strides = [1, 1]} : vector<2x96xf32> to vector<2x32xf32>
    %110 = arith.mulf %109, %106 : vector<2x32xf32>
    %111 = arith.addf %108, %110 : vector<2x32xf32>
    %112 = vector.extract_strided_slice %104 {offsets = [0, 64], sizes = [2, 32], strides = [1, 1]} : vector<2x96xf32> to vector<2x32xf32>
    %113 = math.tanh %111 : vector<2x32xf32>
    %114 = arith.mulf %112, %113 : vector<2x32xf32>
    %115 = vector.extract_strided_slice %62 {offsets = [0, 2, 0], sizes = [2, 1, 128], strides = [1, 1, 1]} : vector<2x16x128xf32> to vector<2x1x128xf32>
    %116 = vector.shape_cast %115 : vector<2x1x128xf32> to vector<2x128xf32>
    %117 = vector.extract_strided_slice %65 {offsets = [0, 13, 0], sizes = [2, 1, 128], strides = [1, 1, 1]} : vector<2x16x128xf32> to vector<2x1x128xf32>
    %118 = vector.shape_cast %117 : vector<2x1x128xf32> to vector<2x128xf32>
    %119 = arith.addf %116, %118 : vector<2x128xf32>
    %cst_39 = arith.constant dense<0.000000e+00> : vector<2x128xf32>
    %120 = tpu.matmul %114, %66, %cst_39 {dimension_numbers = #tpu.dot_dimension_numbers<[1], [0], [0], [1], [0, 0, 1, 1], [], []>} : vector<2x32xf32>, vector<32x128xf32>, vector<2x128xf32> -> vector<2x128xf32>
    %121 = arith.addf %119, %120 : vector<2x128xf32>
    %122 = vector.extract_strided_slice %121 {offsets = [0, 0], sizes = [2, 96], strides = [1, 1]} : vector<2x128xf32> to vector<2x96xf32>
    %123 = arith.negf %122 : vector<2x96xf32>
    %124 = math.exp %123 : vector<2x96xf32>
    %cst_40 = arith.constant 1.000000e+00 : f32
    %125 = vector.broadcast %cst_40 : f32 to vector<2x96xf32>
    %126 = arith.addf %125, %124 : vector<2x96xf32>
    %127 = arith.divf %125, %126 : vector<2x96xf32>
    %128 = vector.extract_strided_slice %121 {offsets = [0, 96], sizes = [2, 32], strides = [1, 1]} : vector<2x128xf32> to vector<2x32xf32>
    %129 = math.tanh %128 : vector<2x32xf32>
    %130 = vector.extract_strided_slice %127 {offsets = [0, 32], sizes = [2, 32], strides = [1, 1]} : vector<2x96xf32> to vector<2x32xf32>
    %131 = arith.mulf %130, %111 : vector<2x32xf32>
    %132 = vector.extract_strided_slice %127 {offsets = [0, 0], sizes = [2, 32], strides = [1, 1]} : vector<2x96xf32> to vector<2x32xf32>
    %133 = arith.mulf %132, %129 : vector<2x32xf32>
    %134 = arith.addf %131, %133 : vector<2x32xf32>
    %135 = vector.extract_strided_slice %127 {offsets = [0, 64], sizes = [2, 32], strides = [1, 1]} : vector<2x96xf32> to vector<2x32xf32>
    %136 = math.tanh %134 : vector<2x32xf32>
    %137 = arith.mulf %135, %136 : vector<2x32xf32>
    %138 = vector.extract_strided_slice %62 {offsets = [0, 3, 0], sizes = [2, 1, 128], strides = [1, 1, 1]} : vector<2x16x128xf32> to vector<2x1x128xf32>
    %139 = vector.shape_cast %138 : vector<2x1x128xf32> to vector<2x128xf32>
    %140 = vector.extract_strided_slice %65 {offsets = [0, 12, 0], sizes = [2, 1, 128], strides = [1, 1, 1]} : vector<2x16x128xf32> to vector<2x1x128xf32>
    %141 = vector.shape_cast %140 : vector<2x1x128xf32> to vector<2x128xf32>
    %142 = arith.addf %139, %141 : vector<2x128xf32>
    %cst_41 = arith.constant dense<0.000000e+00> : vector<2x128xf32>
    %143 = tpu.matmul %137, %66, %cst_41 {dimension_numbers = #tpu.dot_dimension_numbers<[1], [0], [0], [1], [0, 0, 1, 1], [], []>} : vector<2x32xf32>, vector<32x128xf32>, vector<2x128xf32> -> vector<2x128xf32>
    %144 = arith.addf %142, %143 : vector<2x128xf32>
    %145 = vector.extract_strided_slice %144 {offsets = [0, 0], sizes = [2, 96], strides = [1, 1]} : vector<2x128xf32> to vector<2x96xf32>
    %146 = arith.negf %145 : vector<2x96xf32>
    %147 = math.exp %146 : vector<2x96xf32>
    %cst_42 = arith.constant 1.000000e+00 : f32
    %148 = vector.broadcast %cst_42 : f32 to vector<2x96xf32>
    %149 = arith.addf %148, %147 : vector<2x96xf32>
    %150 = arith.divf %148, %149 : vector<2x96xf32>
    %151 = vector.extract_strided_slice %144 {offsets = [0, 96], sizes = [2, 32], strides = [1, 1]} : vector<2x128xf32> to vector<2x32xf32>
    %152 = math.tanh %151 : vector<2x32xf32>
    %153 = vector.extract_strided_slice %150 {offsets = [0, 32], sizes = [2, 32], strides = [1, 1]} : vector<2x96xf32> to vector<2x32xf32>
    %154 = arith.mulf %153, %134 : vector<2x32xf32>
    %155 = vector.extract_strided_slice %150 {offsets = [0, 0], sizes = [2, 32], strides = [1, 1]} : vector<2x96xf32> to vector<2x32xf32>
    %156 = arith.mulf %155, %152 : vector<2x32xf32>
    %157 = arith.addf %154, %156 : vector<2x32xf32>
    %158 = vector.extract_strided_slice %150 {offsets = [0, 64], sizes = [2, 32], strides = [1, 1]} : vector<2x96xf32> to vector<2x32xf32>
    %159 = math.tanh %157 : vector<2x32xf32>
    %160 = arith.mulf %158, %159 : vector<2x32xf32>
    %161 = vector.extract_strided_slice %62 {offsets = [0, 4, 0], sizes = [2, 1, 128], strides = [1, 1, 1]} : vector<2x16x128xf32> to vector<2x1x128xf32>
    %162 = vector.shape_cast %161 : vector<2x1x128xf32> to vector<2x128xf32>
    %163 = vector.extract_strided_slice %65 {offsets = [0, 11, 0], sizes = [2, 1, 128], strides = [1, 1, 1]} : vector<2x16x128xf32> to vector<2x1x128xf32>
    %164 = vector.shape_cast %163 : vector<2x1x128xf32> to vector<2x128xf32>
    %165 = arith.addf %162, %164 : vector<2x128xf32>
    %cst_43 = arith.constant dense<0.000000e+00> : vector<2x128xf32>
    %166 = tpu.matmul %160, %66, %cst_43 {dimension_numbers = #tpu.dot_dimension_numbers<[1], [0], [0], [1], [0, 0, 1, 1], [], []>} : vector<2x32xf32>, vector<32x128xf32>, vector<2x128xf32> -> vector<2x128xf32>
    %167 = arith.addf %165, %166 : vector<2x128xf32>
    %168 = vector.extract_strided_slice %167 {offsets = [0, 0], sizes = [2, 96], strides = [1, 1]} : vector<2x128xf32> to vector<2x96xf32>
    %169 = arith.negf %168 : vector<2x96xf32>
    %170 = math.exp %169 : vector<2x96xf32>
    %cst_44 = arith.constant 1.000000e+00 : f32
    %171 = vector.broadcast %cst_44 : f32 to vector<2x96xf32>
    %172 = arith.addf %171, %170 : vector<2x96xf32>
    %173 = arith.divf %171, %172 : vector<2x96xf32>
    %174 = vector.extract_strided_slice %167 {offsets = [0, 96], sizes = [2, 32], strides = [1, 1]} : vector<2x128xf32> to vector<2x32xf32>
    %175 = math.tanh %174 : vector<2x32xf32>
    %176 = vector.extract_strided_slice %173 {offsets = [0, 32], sizes = [2, 32], strides = [1, 1]} : vector<2x96xf32> to vector<2x32xf32>
    %177 = arith.mulf %176, %157 : vector<2x32xf32>
    %178 = vector.extract_strided_slice %173 {offsets = [0, 0], sizes = [2, 32], strides = [1, 1]} : vector<2x96xf32> to vector<2x32xf32>
    %179 = arith.mulf %178, %175 : vector<2x32xf32>
    %180 = arith.addf %177, %179 : vector<2x32xf32>
    %181 = vector.extract_strided_slice %173 {offsets = [0, 64], sizes = [2, 32], strides = [1, 1]} : vector<2x96xf32> to vector<2x32xf32>
    %182 = math.tanh %180 : vector<2x32xf32>
    %183 = arith.mulf %181, %182 : vector<2x32xf32>
    %184 = vector.extract_strided_slice %62 {offsets = [0, 5, 0], sizes = [2, 1, 128], strides = [1, 1, 1]} : vector<2x16x128xf32> to vector<2x1x128xf32>
    %185 = vector.shape_cast %184 : vector<2x1x128xf32> to vector<2x128xf32>
    %186 = vector.extract_strided_slice %65 {offsets = [0, 10, 0], sizes = [2, 1, 128], strides = [1, 1, 1]} : vector<2x16x128xf32> to vector<2x1x128xf32>
    %187 = vector.shape_cast %186 : vector<2x1x128xf32> to vector<2x128xf32>
    %188 = arith.addf %185, %187 : vector<2x128xf32>
    %cst_45 = arith.constant dense<0.000000e+00> : vector<2x128xf32>
    %189 = tpu.matmul %183, %66, %cst_45 {dimension_numbers = #tpu.dot_dimension_numbers<[1], [0], [0], [1], [0, 0, 1, 1], [], []>} : vector<2x32xf32>, vector<32x128xf32>, vector<2x128xf32> -> vector<2x128xf32>
    %190 = arith.addf %188, %189 : vector<2x128xf32>
    %191 = vector.extract_strided_slice %190 {offsets = [0, 0], sizes = [2, 96], strides = [1, 1]} : vector<2x128xf32> to vector<2x96xf32>
    %192 = arith.negf %191 : vector<2x96xf32>
    %193 = math.exp %192 : vector<2x96xf32>
    %cst_46 = arith.constant 1.000000e+00 : f32
    %194 = vector.broadcast %cst_46 : f32 to vector<2x96xf32>
    %195 = arith.addf %194, %193 : vector<2x96xf32>
    %196 = arith.divf %194, %195 : vector<2x96xf32>
    %197 = vector.extract_strided_slice %190 {offsets = [0, 96], sizes = [2, 32], strides = [1, 1]} : vector<2x128xf32> to vector<2x32xf32>
    %198 = math.tanh %197 : vector<2x32xf32>
    %199 = vector.extract_strided_slice %196 {offsets = [0, 32], sizes = [2, 32], strides = [1, 1]} : vector<2x96xf32> to vector<2x32xf32>
    %200 = arith.mulf %199, %180 : vector<2x32xf32>
    %201 = vector.extract_strided_slice %196 {offsets = [0, 0], sizes = [2, 32], strides = [1, 1]} : vector<2x96xf32> to vector<2x32xf32>
    %202 = arith.mulf %201, %198 : vector<2x32xf32>
    %203 = arith.addf %200, %202 : vector<2x32xf32>
    %204 = vector.extract_strided_slice %196 {offsets = [0, 64], sizes = [2, 32], strides = [1, 1]} : vector<2x96xf32> to vector<2x32xf32>
    %205 = math.tanh %203 : vector<2x32xf32>
    %206 = arith.mulf %204, %205 : vector<2x32xf32>
    %207 = vector.extract_strided_slice %62 {offsets = [0, 6, 0], sizes = [2, 1, 128], strides = [1, 1, 1]} : vector<2x16x128xf32> to vector<2x1x128xf32>
    %208 = vector.shape_cast %207 : vector<2x1x128xf32> to vector<2x128xf32>
    %209 = vector.extract_strided_slice %65 {offsets = [0, 9, 0], sizes = [2, 1, 128], strides = [1, 1, 1]} : vector<2x16x128xf32> to vector<2x1x128xf32>
    %210 = vector.shape_cast %209 : vector<2x1x128xf32> to vector<2x128xf32>
    %211 = arith.addf %208, %210 : vector<2x128xf32>
    %cst_47 = arith.constant dense<0.000000e+00> : vector<2x128xf32>
    %212 = tpu.matmul %206, %66, %cst_47 {dimension_numbers = #tpu.dot_dimension_numbers<[1], [0], [0], [1], [0, 0, 1, 1], [], []>} : vector<2x32xf32>, vector<32x128xf32>, vector<2x128xf32> -> vector<2x128xf32>
    %213 = arith.addf %211, %212 : vector<2x128xf32>
    %214 = vector.extract_strided_slice %213 {offsets = [0, 0], sizes = [2, 96], strides = [1, 1]} : vector<2x128xf32> to vector<2x96xf32>
    %215 = arith.negf %214 : vector<2x96xf32>
    %216 = math.exp %215 : vector<2x96xf32>
    %cst_48 = arith.constant 1.000000e+00 : f32
    %217 = vector.broadcast %cst_48 : f32 to vector<2x96xf32>
    %218 = arith.addf %217, %216 : vector<2x96xf32>
    %219 = arith.divf %217, %218 : vector<2x96xf32>
    %220 = vector.extract_strided_slice %213 {offsets = [0, 96], sizes = [2, 32], strides = [1, 1]} : vector<2x128xf32> to vector<2x32xf32>
    %221 = math.tanh %220 : vector<2x32xf32>
    %222 = vector.extract_strided_slice %219 {offsets = [0, 32], sizes = [2, 32], strides = [1, 1]} : vector<2x96xf32> to vector<2x32xf32>
    %223 = arith.mulf %222, %203 : vector<2x32xf32>
    %224 = vector.extract_strided_slice %219 {offsets = [0, 0], sizes = [2, 32], strides = [1, 1]} : vector<2x96xf32> to vector<2x32xf32>
    %225 = arith.mulf %224, %221 : vector<2x32xf32>
    %226 = arith.addf %223, %225 : vector<2x32xf32>
    %227 = vector.extract_strided_slice %219 {offsets = [0, 64], sizes = [2, 32], strides = [1, 1]} : vector<2x96xf32> to vector<2x32xf32>
    %228 = math.tanh %226 : vector<2x32xf32>
    %229 = arith.mulf %227, %228 : vector<2x32xf32>
    %230 = vector.extract_strided_slice %62 {offsets = [0, 7, 0], sizes = [2, 1, 128], strides = [1, 1, 1]} : vector<2x16x128xf32> to vector<2x1x128xf32>
    %231 = vector.shape_cast %230 : vector<2x1x128xf32> to vector<2x128xf32>
    %232 = vector.extract_strided_slice %65 {offsets = [0, 8, 0], sizes = [2, 1, 128], strides = [1, 1, 1]} : vector<2x16x128xf32> to vector<2x1x128xf32>
    %233 = vector.shape_cast %232 : vector<2x1x128xf32> to vector<2x128xf32>
    %234 = arith.addf %231, %233 : vector<2x128xf32>
    %cst_49 = arith.constant dense<0.000000e+00> : vector<2x128xf32>
    %235 = tpu.matmul %229, %66, %cst_49 {dimension_numbers = #tpu.dot_dimension_numbers<[1], [0], [0], [1], [0, 0, 1, 1], [], []>} : vector<2x32xf32>, vector<32x128xf32>, vector<2x128xf32> -> vector<2x128xf32>
    %236 = arith.addf %234, %235 : vector<2x128xf32>
    %237 = vector.extract_strided_slice %236 {offsets = [0, 0], sizes = [2, 96], strides = [1, 1]} : vector<2x128xf32> to vector<2x96xf32>
    %238 = arith.negf %237 : vector<2x96xf32>
    %239 = math.exp %238 : vector<2x96xf32>
    %cst_50 = arith.constant 1.000000e+00 : f32
    %240 = vector.broadcast %cst_50 : f32 to vector<2x96xf32>
    %241 = arith.addf %240, %239 : vector<2x96xf32>
    %242 = arith.divf %240, %241 : vector<2x96xf32>
    %243 = vector.extract_strided_slice %236 {offsets = [0, 96], sizes = [2, 32], strides = [1, 1]} : vector<2x128xf32> to vector<2x32xf32>
    %244 = math.tanh %243 : vector<2x32xf32>
    %245 = vector.extract_strided_slice %242 {offsets = [0, 32], sizes = [2, 32], strides = [1, 1]} : vector<2x96xf32> to vector<2x32xf32>
    %246 = arith.mulf %245, %226 : vector<2x32xf32>
    %247 = vector.extract_strided_slice %242 {offsets = [0, 0], sizes = [2, 32], strides = [1, 1]} : vector<2x96xf32> to vector<2x32xf32>
    %248 = arith.mulf %247, %244 : vector<2x32xf32>
    %249 = arith.addf %246, %248 : vector<2x32xf32>
    %250 = vector.extract_strided_slice %242 {offsets = [0, 64], sizes = [2, 32], strides = [1, 1]} : vector<2x96xf32> to vector<2x32xf32>
    %251 = math.tanh %249 : vector<2x32xf32>
    %252 = arith.mulf %250, %251 : vector<2x32xf32>
    %253 = vector.extract_strided_slice %62 {offsets = [0, 8, 0], sizes = [2, 1, 128], strides = [1, 1, 1]} : vector<2x16x128xf32> to vector<2x1x128xf32>
    %254 = vector.shape_cast %253 : vector<2x1x128xf32> to vector<2x128xf32>
    %255 = vector.extract_strided_slice %65 {offsets = [0, 7, 0], sizes = [2, 1, 128], strides = [1, 1, 1]} : vector<2x16x128xf32> to vector<2x1x128xf32>
    %256 = vector.shape_cast %255 : vector<2x1x128xf32> to vector<2x128xf32>
    %257 = arith.addf %254, %256 : vector<2x128xf32>
    %cst_51 = arith.constant dense<0.000000e+00> : vector<2x128xf32>
    %258 = tpu.matmul %252, %66, %cst_51 {dimension_numbers = #tpu.dot_dimension_numbers<[1], [0], [0], [1], [0, 0, 1, 1], [], []>} : vector<2x32xf32>, vector<32x128xf32>, vector<2x128xf32> -> vector<2x128xf32>
    %259 = arith.addf %257, %258 : vector<2x128xf32>
    %260 = vector.extract_strided_slice %259 {offsets = [0, 0], sizes = [2, 96], strides = [1, 1]} : vector<2x128xf32> to vector<2x96xf32>
    %261 = arith.negf %260 : vector<2x96xf32>
    %262 = math.exp %261 : vector<2x96xf32>
    %cst_52 = arith.constant 1.000000e+00 : f32
    %263 = vector.broadcast %cst_52 : f32 to vector<2x96xf32>
    %264 = arith.addf %263, %262 : vector<2x96xf32>
    %265 = arith.divf %263, %264 : vector<2x96xf32>
    %266 = vector.extract_strided_slice %259 {offsets = [0, 96], sizes = [2, 32], strides = [1, 1]} : vector<2x128xf32> to vector<2x32xf32>
    %267 = math.tanh %266 : vector<2x32xf32>
    %268 = vector.extract_strided_slice %265 {offsets = [0, 32], sizes = [2, 32], strides = [1, 1]} : vector<2x96xf32> to vector<2x32xf32>
    %269 = arith.mulf %268, %249 : vector<2x32xf32>
    %270 = vector.extract_strided_slice %265 {offsets = [0, 0], sizes = [2, 32], strides = [1, 1]} : vector<2x96xf32> to vector<2x32xf32>
    %271 = arith.mulf %270, %267 : vector<2x32xf32>
    %272 = arith.addf %269, %271 : vector<2x32xf32>
    %273 = vector.extract_strided_slice %265 {offsets = [0, 64], sizes = [2, 32], strides = [1, 1]} : vector<2x96xf32> to vector<2x32xf32>
    %274 = math.tanh %272 : vector<2x32xf32>
    %275 = arith.mulf %273, %274 : vector<2x32xf32>
    %276 = vector.extract_strided_slice %62 {offsets = [0, 9, 0], sizes = [2, 1, 128], strides = [1, 1, 1]} : vector<2x16x128xf32> to vector<2x1x128xf32>
    %277 = vector.shape_cast %276 : vector<2x1x128xf32> to vector<2x128xf32>
    %278 = vector.extract_strided_slice %65 {offsets = [0, 6, 0], sizes = [2, 1, 128], strides = [1, 1, 1]} : vector<2x16x128xf32> to vector<2x1x128xf32>
    %279 = vector.shape_cast %278 : vector<2x1x128xf32> to vector<2x128xf32>
    %280 = arith.addf %277, %279 : vector<2x128xf32>
    %cst_53 = arith.constant dense<0.000000e+00> : vector<2x128xf32>
    %281 = tpu.matmul %275, %66, %cst_53 {dimension_numbers = #tpu.dot_dimension_numbers<[1], [0], [0], [1], [0, 0, 1, 1], [], []>} : vector<2x32xf32>, vector<32x128xf32>, vector<2x128xf32> -> vector<2x128xf32>
    %282 = arith.addf %280, %281 : vector<2x128xf32>
    %283 = vector.extract_strided_slice %282 {offsets = [0, 0], sizes = [2, 96], strides = [1, 1]} : vector<2x128xf32> to vector<2x96xf32>
    %284 = arith.negf %283 : vector<2x96xf32>
    %285 = math.exp %284 : vector<2x96xf32>
    %cst_54 = arith.constant 1.000000e+00 : f32
    %286 = vector.broadcast %cst_54 : f32 to vector<2x96xf32>
    %287 = arith.addf %286, %285 : vector<2x96xf32>
    %288 = arith.divf %286, %287 : vector<2x96xf32>
    %289 = vector.extract_strided_slice %282 {offsets = [0, 96], sizes = [2, 32], strides = [1, 1]} : vector<2x128xf32> to vector<2x32xf32>
    %290 = math.tanh %289 : vector<2x32xf32>
    %291 = vector.extract_strided_slice %288 {offsets = [0, 32], sizes = [2, 32], strides = [1, 1]} : vector<2x96xf32> to vector<2x32xf32>
    %292 = arith.mulf %291, %272 : vector<2x32xf32>
    %293 = vector.extract_strided_slice %288 {offsets = [0, 0], sizes = [2, 32], strides = [1, 1]} : vector<2x96xf32> to vector<2x32xf32>
    %294 = arith.mulf %293, %290 : vector<2x32xf32>
    %295 = arith.addf %292, %294 : vector<2x32xf32>
    %296 = vector.extract_strided_slice %288 {offsets = [0, 64], sizes = [2, 32], strides = [1, 1]} : vector<2x96xf32> to vector<2x32xf32>
    %297 = math.tanh %295 : vector<2x32xf32>
    %298 = arith.mulf %296, %297 : vector<2x32xf32>
    %299 = vector.extract_strided_slice %62 {offsets = [0, 10, 0], sizes = [2, 1, 128], strides = [1, 1, 1]} : vector<2x16x128xf32> to vector<2x1x128xf32>
    %300 = vector.shape_cast %299 : vector<2x1x128xf32> to vector<2x128xf32>
    %301 = vector.extract_strided_slice %65 {offsets = [0, 5, 0], sizes = [2, 1, 128], strides = [1, 1, 1]} : vector<2x16x128xf32> to vector<2x1x128xf32>
    %302 = vector.shape_cast %301 : vector<2x1x128xf32> to vector<2x128xf32>
    %303 = arith.addf %300, %302 : vector<2x128xf32>
    %cst_55 = arith.constant dense<0.000000e+00> : vector<2x128xf32>
    %304 = tpu.matmul %298, %66, %cst_55 {dimension_numbers = #tpu.dot_dimension_numbers<[1], [0], [0], [1], [0, 0, 1, 1], [], []>} : vector<2x32xf32>, vector<32x128xf32>, vector<2x128xf32> -> vector<2x128xf32>
    %305 = arith.addf %303, %304 : vector<2x128xf32>
    %306 = vector.extract_strided_slice %305 {offsets = [0, 0], sizes = [2, 96], strides = [1, 1]} : vector<2x128xf32> to vector<2x96xf32>
    %307 = arith.negf %306 : vector<2x96xf32>
    %308 = math.exp %307 : vector<2x96xf32>
    %cst_56 = arith.constant 1.000000e+00 : f32
    %309 = vector.broadcast %cst_56 : f32 to vector<2x96xf32>
    %310 = arith.addf %309, %308 : vector<2x96xf32>
    %311 = arith.divf %309, %310 : vector<2x96xf32>
    %312 = vector.extract_strided_slice %305 {offsets = [0, 96], sizes = [2, 32], strides = [1, 1]} : vector<2x128xf32> to vector<2x32xf32>
    %313 = math.tanh %312 : vector<2x32xf32>
    %314 = vector.extract_strided_slice %311 {offsets = [0, 32], sizes = [2, 32], strides = [1, 1]} : vector<2x96xf32> to vector<2x32xf32>
    %315 = arith.mulf %314, %295 : vector<2x32xf32>
    %316 = vector.extract_strided_slice %311 {offsets = [0, 0], sizes = [2, 32], strides = [1, 1]} : vector<2x96xf32> to vector<2x32xf32>
    %317 = arith.mulf %316, %313 : vector<2x32xf32>
    %318 = arith.addf %315, %317 : vector<2x32xf32>
    %319 = vector.extract_strided_slice %311 {offsets = [0, 64], sizes = [2, 32], strides = [1, 1]} : vector<2x96xf32> to vector<2x32xf32>
    %320 = math.tanh %318 : vector<2x32xf32>
    %321 = arith.mulf %319, %320 : vector<2x32xf32>
    %322 = vector.extract_strided_slice %62 {offsets = [0, 11, 0], sizes = [2, 1, 128], strides = [1, 1, 1]} : vector<2x16x128xf32> to vector<2x1x128xf32>
    %323 = vector.shape_cast %322 : vector<2x1x128xf32> to vector<2x128xf32>
    %324 = vector.extract_strided_slice %65 {offsets = [0, 4, 0], sizes = [2, 1, 128], strides = [1, 1, 1]} : vector<2x16x128xf32> to vector<2x1x128xf32>
    %325 = vector.shape_cast %324 : vector<2x1x128xf32> to vector<2x128xf32>
    %326 = arith.addf %323, %325 : vector<2x128xf32>
    %cst_57 = arith.constant dense<0.000000e+00> : vector<2x128xf32>
    %327 = tpu.matmul %321, %66, %cst_57 {dimension_numbers = #tpu.dot_dimension_numbers<[1], [0], [0], [1], [0, 0, 1, 1], [], []>} : vector<2x32xf32>, vector<32x128xf32>, vector<2x128xf32> -> vector<2x128xf32>
    %328 = arith.addf %326, %327 : vector<2x128xf32>
    %329 = vector.extract_strided_slice %328 {offsets = [0, 0], sizes = [2, 96], strides = [1, 1]} : vector<2x128xf32> to vector<2x96xf32>
    %330 = arith.negf %329 : vector<2x96xf32>
    %331 = math.exp %330 : vector<2x96xf32>
    %cst_58 = arith.constant 1.000000e+00 : f32
    %332 = vector.broadcast %cst_58 : f32 to vector<2x96xf32>
    %333 = arith.addf %332, %331 : vector<2x96xf32>
    %334 = arith.divf %332, %333 : vector<2x96xf32>
    %335 = vector.extract_strided_slice %328 {offsets = [0, 96], sizes = [2, 32], strides = [1, 1]} : vector<2x128xf32> to vector<2x32xf32>
    %336 = math.tanh %335 : vector<2x32xf32>
    %337 = vector.extract_strided_slice %334 {offsets = [0, 32], sizes = [2, 32], strides = [1, 1]} : vector<2x96xf32> to vector<2x32xf32>
    %338 = arith.mulf %337, %318 : vector<2x32xf32>
    %339 = vector.extract_strided_slice %334 {offsets = [0, 0], sizes = [2, 32], strides = [1, 1]} : vector<2x96xf32> to vector<2x32xf32>
    %340 = arith.mulf %339, %336 : vector<2x32xf32>
    %341 = arith.addf %338, %340 : vector<2x32xf32>
    %342 = vector.extract_strided_slice %334 {offsets = [0, 64], sizes = [2, 32], strides = [1, 1]} : vector<2x96xf32> to vector<2x32xf32>
    %343 = math.tanh %341 : vector<2x32xf32>
    %344 = arith.mulf %342, %343 : vector<2x32xf32>
    %345 = vector.extract_strided_slice %62 {offsets = [0, 12, 0], sizes = [2, 1, 128], strides = [1, 1, 1]} : vector<2x16x128xf32> to vector<2x1x128xf32>
    %346 = vector.shape_cast %345 : vector<2x1x128xf32> to vector<2x128xf32>
    %347 = vector.extract_strided_slice %65 {offsets = [0, 3, 0], sizes = [2, 1, 128], strides = [1, 1, 1]} : vector<2x16x128xf32> to vector<2x1x128xf32>
    %348 = vector.shape_cast %347 : vector<2x1x128xf32> to vector<2x128xf32>
    %349 = arith.addf %346, %348 : vector<2x128xf32>
    %cst_59 = arith.constant dense<0.000000e+00> : vector<2x128xf32>
    %350 = tpu.matmul %344, %66, %cst_59 {dimension_numbers = #tpu.dot_dimension_numbers<[1], [0], [0], [1], [0, 0, 1, 1], [], []>} : vector<2x32xf32>, vector<32x128xf32>, vector<2x128xf32> -> vector<2x128xf32>
    %351 = arith.addf %349, %350 : vector<2x128xf32>
    %352 = vector.extract_strided_slice %351 {offsets = [0, 0], sizes = [2, 96], strides = [1, 1]} : vector<2x128xf32> to vector<2x96xf32>
    %353 = arith.negf %352 : vector<2x96xf32>
    %354 = math.exp %353 : vector<2x96xf32>
    %cst_60 = arith.constant 1.000000e+00 : f32
    %355 = vector.broadcast %cst_60 : f32 to vector<2x96xf32>
    %356 = arith.addf %355, %354 : vector<2x96xf32>
    %357 = arith.divf %355, %356 : vector<2x96xf32>
    %358 = vector.extract_strided_slice %351 {offsets = [0, 96], sizes = [2, 32], strides = [1, 1]} : vector<2x128xf32> to vector<2x32xf32>
    %359 = math.tanh %358 : vector<2x32xf32>
    %360 = vector.extract_strided_slice %357 {offsets = [0, 32], sizes = [2, 32], strides = [1, 1]} : vector<2x96xf32> to vector<2x32xf32>
    %361 = arith.mulf %360, %341 : vector<2x32xf32>
    %362 = vector.extract_strided_slice %357 {offsets = [0, 0], sizes = [2, 32], strides = [1, 1]} : vector<2x96xf32> to vector<2x32xf32>
    %363 = arith.mulf %362, %359 : vector<2x32xf32>
    %364 = arith.addf %361, %363 : vector<2x32xf32>
    %365 = vector.extract_strided_slice %357 {offsets = [0, 64], sizes = [2, 32], strides = [1, 1]} : vector<2x96xf32> to vector<2x32xf32>
    %366 = math.tanh %364 : vector<2x32xf32>
    %367 = arith.mulf %365, %366 : vector<2x32xf32>
    %368 = vector.extract_strided_slice %62 {offsets = [0, 13, 0], sizes = [2, 1, 128], strides = [1, 1, 1]} : vector<2x16x128xf32> to vector<2x1x128xf32>
    %369 = vector.shape_cast %368 : vector<2x1x128xf32> to vector<2x128xf32>
    %370 = vector.extract_strided_slice %65 {offsets = [0, 2, 0], sizes = [2, 1, 128], strides = [1, 1, 1]} : vector<2x16x128xf32> to vector<2x1x128xf32>
    %371 = vector.shape_cast %370 : vector<2x1x128xf32> to vector<2x128xf32>
    %372 = arith.addf %369, %371 : vector<2x128xf32>
    %cst_61 = arith.constant dense<0.000000e+00> : vector<2x128xf32>
    %373 = tpu.matmul %367, %66, %cst_61 {dimension_numbers = #tpu.dot_dimension_numbers<[1], [0], [0], [1], [0, 0, 1, 1], [], []>} : vector<2x32xf32>, vector<32x128xf32>, vector<2x128xf32> -> vector<2x128xf32>
    %374 = arith.addf %372, %373 : vector<2x128xf32>
    %375 = vector.extract_strided_slice %374 {offsets = [0, 0], sizes = [2, 96], strides = [1, 1]} : vector<2x128xf32> to vector<2x96xf32>
    %376 = arith.negf %375 : vector<2x96xf32>
    %377 = math.exp %376 : vector<2x96xf32>
    %cst_62 = arith.constant 1.000000e+00 : f32
    %378 = vector.broadcast %cst_62 : f32 to vector<2x96xf32>
    %379 = arith.addf %378, %377 : vector<2x96xf32>
    %380 = arith.divf %378, %379 : vector<2x96xf32>
    %381 = vector.extract_strided_slice %374 {offsets = [0, 96], sizes = [2, 32], strides = [1, 1]} : vector<2x128xf32> to vector<2x32xf32>
    %382 = math.tanh %381 : vector<2x32xf32>
    %383 = vector.extract_strided_slice %380 {offsets = [0, 32], sizes = [2, 32], strides = [1, 1]} : vector<2x96xf32> to vector<2x32xf32>
    %384 = arith.mulf %383, %364 : vector<2x32xf32>
    %385 = vector.extract_strided_slice %380 {offsets = [0, 0], sizes = [2, 32], strides = [1, 1]} : vector<2x96xf32> to vector<2x32xf32>
    %386 = arith.mulf %385, %382 : vector<2x32xf32>
    %387 = arith.addf %384, %386 : vector<2x32xf32>
    %388 = vector.extract_strided_slice %380 {offsets = [0, 64], sizes = [2, 32], strides = [1, 1]} : vector<2x96xf32> to vector<2x32xf32>
    %389 = math.tanh %387 : vector<2x32xf32>
    %390 = arith.mulf %388, %389 : vector<2x32xf32>
    %391 = vector.extract_strided_slice %62 {offsets = [0, 14, 0], sizes = [2, 1, 128], strides = [1, 1, 1]} : vector<2x16x128xf32> to vector<2x1x128xf32>
    %392 = vector.shape_cast %391 : vector<2x1x128xf32> to vector<2x128xf32>
    %393 = vector.extract_strided_slice %65 {offsets = [0, 1, 0], sizes = [2, 1, 128], strides = [1, 1, 1]} : vector<2x16x128xf32> to vector<2x1x128xf32>
    %394 = vector.shape_cast %393 : vector<2x1x128xf32> to vector<2x128xf32>
    %395 = arith.addf %392, %394 : vector<2x128xf32>
    %cst_63 = arith.constant dense<0.000000e+00> : vector<2x128xf32>
    %396 = tpu.matmul %390, %66, %cst_63 {dimension_numbers = #tpu.dot_dimension_numbers<[1], [0], [0], [1], [0, 0, 1, 1], [], []>} : vector<2x32xf32>, vector<32x128xf32>, vector<2x128xf32> -> vector<2x128xf32>
    %397 = arith.addf %395, %396 : vector<2x128xf32>
    %398 = vector.extract_strided_slice %397 {offsets = [0, 0], sizes = [2, 96], strides = [1, 1]} : vector<2x128xf32> to vector<2x96xf32>
    %399 = arith.negf %398 : vector<2x96xf32>
    %400 = math.exp %399 : vector<2x96xf32>
    %cst_64 = arith.constant 1.000000e+00 : f32
    %401 = vector.broadcast %cst_64 : f32 to vector<2x96xf32>
    %402 = arith.addf %401, %400 : vector<2x96xf32>
    %403 = arith.divf %401, %402 : vector<2x96xf32>
    %404 = vector.extract_strided_slice %397 {offsets = [0, 96], sizes = [2, 32], strides = [1, 1]} : vector<2x128xf32> to vector<2x32xf32>
    %405 = math.tanh %404 : vector<2x32xf32>
    %406 = vector.extract_strided_slice %403 {offsets = [0, 32], sizes = [2, 32], strides = [1, 1]} : vector<2x96xf32> to vector<2x32xf32>
    %407 = arith.mulf %406, %387 : vector<2x32xf32>
    %408 = vector.extract_strided_slice %403 {offsets = [0, 0], sizes = [2, 32], strides = [1, 1]} : vector<2x96xf32> to vector<2x32xf32>
    %409 = arith.mulf %408, %405 : vector<2x32xf32>
    %410 = arith.addf %407, %409 : vector<2x32xf32>
    %411 = vector.extract_strided_slice %403 {offsets = [0, 64], sizes = [2, 32], strides = [1, 1]} : vector<2x96xf32> to vector<2x32xf32>
    %412 = math.tanh %410 : vector<2x32xf32>
    %413 = arith.mulf %411, %412 : vector<2x32xf32>
    %414 = vector.extract_strided_slice %62 {offsets = [0, 15, 0], sizes = [2, 1, 128], strides = [1, 1, 1]} : vector<2x16x128xf32> to vector<2x1x128xf32>
    %415 = vector.shape_cast %414 : vector<2x1x128xf32> to vector<2x128xf32>
    %416 = vector.extract_strided_slice %65 {offsets = [0, 0, 0], sizes = [2, 1, 128], strides = [1, 1, 1]} : vector<2x16x128xf32> to vector<2x1x128xf32>
    %417 = vector.shape_cast %416 : vector<2x1x128xf32> to vector<2x128xf32>
    %418 = arith.addf %415, %417 : vector<2x128xf32>
    %cst_65 = arith.constant dense<0.000000e+00> : vector<2x128xf32>
    %419 = tpu.matmul %413, %66, %cst_65 {dimension_numbers = #tpu.dot_dimension_numbers<[1], [0], [0], [1], [0, 0, 1, 1], [], []>} : vector<2x32xf32>, vector<32x128xf32>, vector<2x128xf32> -> vector<2x128xf32>
    %420 = arith.addf %418, %419 : vector<2x128xf32>
    %421 = vector.extract_strided_slice %420 {offsets = [0, 0], sizes = [2, 96], strides = [1, 1]} : vector<2x128xf32> to vector<2x96xf32>
    %422 = arith.negf %421 : vector<2x96xf32>
    %423 = math.exp %422 : vector<2x96xf32>
    %cst_66 = arith.constant 1.000000e+00 : f32
    %424 = vector.broadcast %cst_66 : f32 to vector<2x96xf32>
    %425 = arith.addf %424, %423 : vector<2x96xf32>
    %426 = arith.divf %424, %425 : vector<2x96xf32>
    %427 = vector.extract_strided_slice %420 {offsets = [0, 96], sizes = [2, 32], strides = [1, 1]} : vector<2x128xf32> to vector<2x32xf32>
    %428 = math.tanh %427 : vector<2x32xf32>
    %429 = vector.extract_strided_slice %426 {offsets = [0, 32], sizes = [2, 32], strides = [1, 1]} : vector<2x96xf32> to vector<2x32xf32>
    %430 = arith.mulf %429, %410 : vector<2x32xf32>
    %431 = vector.extract_strided_slice %426 {offsets = [0, 0], sizes = [2, 32], strides = [1, 1]} : vector<2x96xf32> to vector<2x32xf32>
    %432 = arith.mulf %431, %428 : vector<2x32xf32>
    %433 = arith.addf %430, %432 : vector<2x32xf32>
    %434 = vector.extract_strided_slice %426 {offsets = [0, 64], sizes = [2, 32], strides = [1, 1]} : vector<2x96xf32> to vector<2x32xf32>
    %435 = math.tanh %433 : vector<2x32xf32>
    %436 = arith.mulf %434, %435 : vector<2x32xf32>
    %437 = vector.extract_strided_slice %91 {offsets = [0, 0], sizes = [2, 16], strides = [1, 1]} : vector<2x32xf32> to vector<2x16xf32>
    %438 = vector.extract_strided_slice %114 {offsets = [0, 0], sizes = [2, 16], strides = [1, 1]} : vector<2x32xf32> to vector<2x16xf32>
    %439 = vector.extract_strided_slice %137 {offsets = [0, 0], sizes = [2, 16], strides = [1, 1]} : vector<2x32xf32> to vector<2x16xf32>
    %440 = vector.extract_strided_slice %160 {offsets = [0, 0], sizes = [2, 16], strides = [1, 1]} : vector<2x32xf32> to vector<2x16xf32>
    %441 = vector.extract_strided_slice %183 {offsets = [0, 0], sizes = [2, 16], strides = [1, 1]} : vector<2x32xf32> to vector<2x16xf32>
    %442 = vector.extract_strided_slice %206 {offsets = [0, 0], sizes = [2, 16], strides = [1, 1]} : vector<2x32xf32> to vector<2x16xf32>
    %443 = vector.extract_strided_slice %229 {offsets = [0, 0], sizes = [2, 16], strides = [1, 1]} : vector<2x32xf32> to vector<2x16xf32>
    %444 = vector.extract_strided_slice %252 {offsets = [0, 0], sizes = [2, 16], strides = [1, 1]} : vector<2x32xf32> to vector<2x16xf32>
    %445 = vector.extract_strided_slice %275 {offsets = [0, 0], sizes = [2, 16], strides = [1, 1]} : vector<2x32xf32> to vector<2x16xf32>
    %446 = vector.extract_strided_slice %298 {offsets = [0, 0], sizes = [2, 16], strides = [1, 1]} : vector<2x32xf32> to vector<2x16xf32>
    %447 = vector.extract_strided_slice %321 {offsets = [0, 0], sizes = [2, 16], strides = [1, 1]} : vector<2x32xf32> to vector<2x16xf32>
    %448 = vector.extract_strided_slice %344 {offsets = [0, 0], sizes = [2, 16], strides = [1, 1]} : vector<2x32xf32> to vector<2x16xf32>
    %449 = vector.extract_strided_slice %367 {offsets = [0, 0], sizes = [2, 16], strides = [1, 1]} : vector<2x32xf32> to vector<2x16xf32>
    %450 = vector.extract_strided_slice %390 {offsets = [0, 0], sizes = [2, 16], strides = [1, 1]} : vector<2x32xf32> to vector<2x16xf32>
    %451 = vector.extract_strided_slice %413 {offsets = [0, 0], sizes = [2, 16], strides = [1, 1]} : vector<2x32xf32> to vector<2x16xf32>
    %452 = vector.extract_strided_slice %436 {offsets = [0, 0], sizes = [2, 16], strides = [1, 1]} : vector<2x32xf32> to vector<2x16xf32>
    %453 = vector.shape_cast %437 : vector<2x16xf32> to vector<2x1x16xf32>
    %454 = vector.shape_cast %438 : vector<2x16xf32> to vector<2x1x16xf32>
    %455 = vector.shape_cast %439 : vector<2x16xf32> to vector<2x1x16xf32>
    %456 = vector.shape_cast %440 : vector<2x16xf32> to vector<2x1x16xf32>
    %457 = vector.shape_cast %441 : vector<2x16xf32> to vector<2x1x16xf32>
    %458 = vector.shape_cast %442 : vector<2x16xf32> to vector<2x1x16xf32>
    %459 = vector.shape_cast %443 : vector<2x16xf32> to vector<2x1x16xf32>
    %460 = vector.shape_cast %444 : vector<2x16xf32> to vector<2x1x16xf32>
    %461 = vector.shape_cast %445 : vector<2x16xf32> to vector<2x1x16xf32>
    %462 = vector.shape_cast %446 : vector<2x16xf32> to vector<2x1x16xf32>
    %463 = vector.shape_cast %447 : vector<2x16xf32> to vector<2x1x16xf32>
    %464 = vector.shape_cast %448 : vector<2x16xf32> to vector<2x1x16xf32>
    %465 = vector.shape_cast %449 : vector<2x16xf32> to vector<2x1x16xf32>
    %466 = vector.shape_cast %450 : vector<2x16xf32> to vector<2x1x16xf32>
    %467 = vector.shape_cast %451 : vector<2x16xf32> to vector<2x1x16xf32>
    %468 = vector.shape_cast %452 : vector<2x16xf32> to vector<2x1x16xf32>
    %469 = tpu.concatenate %453, %454, %455, %456, %457, %458, %459, %460, %461, %462, %463, %464, %465, %466, %467, %468 in 1 : vector<2x1x16xf32>, vector<2x1x16xf32>, vector<2x1x16xf32>, vector<2x1x16xf32>, vector<2x1x16xf32>, vector<2x1x16xf32>, vector<2x1x16xf32>, vector<2x1x16xf32>, vector<2x1x16xf32>, vector<2x1x16xf32>, vector<2x1x16xf32>, vector<2x1x16xf32>, vector<2x1x16xf32>, vector<2x1x16xf32>, vector<2x1x16xf32>, vector<2x1x16xf32> -> vector<2x16x16xf32>
    %470 = vector.extract_strided_slice %436 {offsets = [0, 16], sizes = [2, 16], strides = [1, 1]} : vector<2x32xf32> to vector<2x16xf32>
    %471 = vector.extract_strided_slice %413 {offsets = [0, 16], sizes = [2, 16], strides = [1, 1]} : vector<2x32xf32> to vector<2x16xf32>
    %472 = vector.extract_strided_slice %390 {offsets = [0, 16], sizes = [2, 16], strides = [1, 1]} : vector<2x32xf32> to vector<2x16xf32>
    %473 = vector.extract_strided_slice %367 {offsets = [0, 16], sizes = [2, 16], strides = [1, 1]} : vector<2x32xf32> to vector<2x16xf32>
    %474 = vector.extract_strided_slice %344 {offsets = [0, 16], sizes = [2, 16], strides = [1, 1]} : vector<2x32xf32> to vector<2x16xf32>
    %475 = vector.extract_strided_slice %321 {offsets = [0, 16], sizes = [2, 16], strides = [1, 1]} : vector<2x32xf32> to vector<2x16xf32>
    %476 = vector.extract_strided_slice %298 {offsets = [0, 16], sizes = [2, 16], strides = [1, 1]} : vector<2x32xf32> to vector<2x16xf32>
    %477 = vector.extract_strided_slice %275 {offsets = [0, 16], sizes = [2, 16], strides = [1, 1]} : vector<2x32xf32> to vector<2x16xf32>
    %478 = vector.extract_strided_slice %252 {offsets = [0, 16], sizes = [2, 16], strides = [1, 1]} : vector<2x32xf32> to vector<2x16xf32>
    %479 = vector.extract_strided_slice %229 {offsets = [0, 16], sizes = [2, 16], strides = [1, 1]} : vector<2x32xf32> to vector<2x16xf32>
    %480 = vector.extract_strided_slice %206 {offsets = [0, 16], sizes = [2, 16], strides = [1, 1]} : vector<2x32xf32> to vector<2x16xf32>
    %481 = vector.extract_strided_slice %183 {offsets = [0, 16], sizes = [2, 16], strides = [1, 1]} : vector<2x32xf32> to vector<2x16xf32>
    %482 = vector.extract_strided_slice %160 {offsets = [0, 16], sizes = [2, 16], strides = [1, 1]} : vector<2x32xf32> to vector<2x16xf32>
    %483 = vector.extract_strided_slice %137 {offsets = [0, 16], sizes = [2, 16], strides = [1, 1]} : vector<2x32xf32> to vector<2x16xf32>
    %484 = vector.extract_strided_slice %114 {offsets = [0, 16], sizes = [2, 16], strides = [1, 1]} : vector<2x32xf32> to vector<2x16xf32>
    %485 = vector.extract_strided_slice %91 {offsets = [0, 16], sizes = [2, 16], strides = [1, 1]} : vector<2x32xf32> to vector<2x16xf32>
    %486 = vector.shape_cast %470 : vector<2x16xf32> to vector<2x1x16xf32>
    %487 = vector.shape_cast %471 : vector<2x16xf32> to vector<2x1x16xf32>
    %488 = vector.shape_cast %472 : vector<2x16xf32> to vector<2x1x16xf32>
    %489 = vector.shape_cast %473 : vector<2x16xf32> to vector<2x1x16xf32>
    %490 = vector.shape_cast %474 : vector<2x16xf32> to vector<2x1x16xf32>
    %491 = vector.shape_cast %475 : vector<2x16xf32> to vector<2x1x16xf32>
    %492 = vector.shape_cast %476 : vector<2x16xf32> to vector<2x1x16xf32>
    %493 = vector.shape_cast %477 : vector<2x16xf32> to vector<2x1x16xf32>
    %494 = vector.shape_cast %478 : vector<2x16xf32> to vector<2x1x16xf32>
    %495 = vector.shape_cast %479 : vector<2x16xf32> to vector<2x1x16xf32>
    %496 = vector.shape_cast %480 : vector<2x16xf32> to vector<2x1x16xf32>
    %497 = vector.shape_cast %481 : vector<2x16xf32> to vector<2x1x16xf32>
    %498 = vector.shape_cast %482 : vector<2x16xf32> to vector<2x1x16xf32>
    %499 = vector.shape_cast %483 : vector<2x16xf32> to vector<2x1x16xf32>
    %500 = vector.shape_cast %484 : vector<2x16xf32> to vector<2x1x16xf32>
    %501 = vector.shape_cast %485 : vector<2x16xf32> to vector<2x1x16xf32>
    %502 = tpu.concatenate %486, %487, %488, %489, %490, %491, %492, %493, %494, %495, %496, %497, %498, %499, %500, %501 in 1 : vector<2x1x16xf32>, vector<2x1x16xf32>, vector<2x1x16xf32>, vector<2x1x16xf32>, vector<2x1x16xf32>, vector<2x1x16xf32>, vector<2x1x16xf32>, vector<2x1x16xf32>, vector<2x1x16xf32>, vector<2x1x16xf32>, vector<2x1x16xf32>, vector<2x1x16xf32>, vector<2x1x16xf32>, vector<2x1x16xf32>, vector<2x1x16xf32>, vector<2x1x16xf32> -> vector<2x16x16xf32>
    %503 = tpu.concatenate %469, %502 in 2 : vector<2x16x16xf32>, vector<2x16x16xf32> -> vector<2x16x32xf32>
    %504 = vector.shape_cast %503 : vector<2x16x32xf32> to vector<32x32xf32>
    %c0_67 = arith.constant 0 : index
    %c128_68 = arith.constant 128 : index
    %505 = vector.load %arg2[%c0_67, %c128_68] : memref<32x192xf32, #tpu.memory_space<vmem>>, vector<32x64xf32>
    %cst_69 = arith.constant dense<0.000000e+00> : vector<32x64xf32>
    %506 = tpu.matmul %504, %505, %cst_69 {dimension_numbers = #tpu.dot_dimension_numbers<[1], [0], [0], [1], [0, 0, 1, 1], [], []>} : vector<32x32xf32>, vector<32x64xf32>, vector<32x64xf32> -> vector<32x64xf32>
    %507 = vector.shape_cast %506 : vector<32x64xf32> to vector<2x16x64xf32>
    %508 = vector.extract_strided_slice %507 {offsets = [0, 0, 0], sizes = [2, 16, 16], strides = [1, 1, 1]} : vector<2x16x64xf32> to vector<2x16x16xf32>
    %509 = vector.extract_strided_slice %507 {offsets = [0, 0, 16], sizes = [2, 16, 16], strides = [1, 1, 1]} : vector<2x16x64xf32> to vector<2x16x16xf32>
    %510 = vector.extract_strided_slice %507 {offsets = [0, 0, 32], sizes = [2, 16, 32], strides = [1, 1, 1]} : vector<2x16x64xf32> to vector<2x16x32xf32>
    %511 = vector.extract_strided_slice %508 {offsets = [0, 0, 0], sizes = [2, 16, 4], strides = [1, 1, 1]} : vector<2x16x16xf32> to vector<2x16x4xf32>
    %512 = vector.extract_strided_slice %509 {offsets = [0, 0, 0], sizes = [2, 16, 4], strides = [1, 1, 1]} : vector<2x16x16xf32> to vector<2x16x4xf32>
    "tpu.trace_start"() <{level = 10 : i32, message = "bqd,bkd->bqk"}> : () -> ()
    %cst_70 = arith.constant dense<0.000000e+00> : vector<2x16x16xf32>
    %513 = tpu.matmul %511, %512, %cst_70 {dimension_numbers = #tpu.dot_dimension_numbers<[2], [2], [1], [1], [0, 0, 0, 1, 1, 1], [0], [0]>} : vector<2x16x4xf32>, vector<2x16x4xf32>, vector<2x16x16xf32> -> vector<2x16x16xf32>
    "tpu.trace_stop"() : () -> ()
    %514 = vector.extract_strided_slice %508 {offsets = [0, 0, 4], sizes = [2, 16, 4], strides = [1, 1, 1]} : vector<2x16x16xf32> to vector<2x16x4xf32>
    %515 = vector.extract_strided_slice %509 {offsets = [0, 0, 4], sizes = [2, 16, 4], strides = [1, 1, 1]} : vector<2x16x16xf32> to vector<2x16x4xf32>
    "tpu.trace_start"() <{level = 10 : i32, message = "bqd,bkd->bqk"}> : () -> ()
    %cst_71 = arith.constant dense<0.000000e+00> : vector<2x16x16xf32>
    %516 = tpu.matmul %514, %515, %cst_71 {dimension_numbers = #tpu.dot_dimension_numbers<[2], [2], [1], [1], [0, 0, 0, 1, 1, 1], [0], [0]>} : vector<2x16x4xf32>, vector<2x16x4xf32>, vector<2x16x16xf32> -> vector<2x16x16xf32>
    "tpu.trace_stop"() : () -> ()
    %517 = vector.extract_strided_slice %508 {offsets = [0, 0, 8], sizes = [2, 16, 4], strides = [1, 1, 1]} : vector<2x16x16xf32> to vector<2x16x4xf32>
    %518 = vector.extract_strided_slice %509 {offsets = [0, 0, 8], sizes = [2, 16, 4], strides = [1, 1, 1]} : vector<2x16x16xf32> to vector<2x16x4xf32>
    "tpu.trace_start"() <{level = 10 : i32, message = "bqd,bkd->bqk"}> : () -> ()
    %cst_72 = arith.constant dense<0.000000e+00> : vector<2x16x16xf32>
    %519 = tpu.matmul %517, %518, %cst_72 {dimension_numbers = #tpu.dot_dimension_numbers<[2], [2], [1], [1], [0, 0, 0, 1, 1, 1], [0], [0]>} : vector<2x16x4xf32>, vector<2x16x4xf32>, vector<2x16x16xf32> -> vector<2x16x16xf32>
    "tpu.trace_stop"() : () -> ()
    %520 = vector.extract_strided_slice %508 {offsets = [0, 0, 12], sizes = [2, 16, 4], strides = [1, 1, 1]} : vector<2x16x16xf32> to vector<2x16x4xf32>
    %521 = vector.extract_strided_slice %509 {offsets = [0, 0, 12], sizes = [2, 16, 4], strides = [1, 1, 1]} : vector<2x16x16xf32> to vector<2x16x4xf32>
    "tpu.trace_start"() <{level = 10 : i32, message = "bqd,bkd->bqk"}> : () -> ()
    %cst_73 = arith.constant dense<0.000000e+00> : vector<2x16x16xf32>
    %522 = tpu.matmul %520, %521, %cst_73 {dimension_numbers = #tpu.dot_dimension_numbers<[2], [2], [1], [1], [0, 0, 0, 1, 1, 1], [0], [0]>} : vector<2x16x4xf32>, vector<2x16x4xf32>, vector<2x16x16xf32> -> vector<2x16x16xf32>
    "tpu.trace_stop"() : () -> ()
    %523 = tpu.concatenate %513, %516, %519, %522 in 0 : vector<2x16x16xf32>, vector<2x16x16xf32>, vector<2x16x16xf32>, vector<2x16x16xf32> -> vector<8x16x16xf32>
    %cst_74 = arith.constant 5.000000e-01 : f32
    %524 = vector.broadcast %cst_74 : f32 to vector<8x16x16xf32>
    %525 = arith.mulf %523, %524 : vector<8x16x16xf32>
    %cst_75 = arith.constant dense<0xFF800000> : vector<8x16xf32>
    %526 = vector.multi_reduction <maximumf>, %525, %cst_75 [2] : vector<8x16x16xf32> to vector<8x16xf32>
    %527 = vector.shape_cast %526 : vector<8x16xf32> to vector<8x16x1xf32>
    %528 = vector.broadcast %527 : vector<8x16x1xf32> to vector<8x16x16xf32>
    %529 = arith.subf %525, %528 : vector<8x16x16xf32>
    %530 = math.exp %529 : vector<8x16x16xf32>
    %cst_76 = arith.constant dense<0.000000e+00> : vector<8x16xf32>
    %531 = vector.multi_reduction <add>, %530, %cst_76 [2] : vector<8x16x16xf32> to vector<8x16xf32>
    %532 = vector.shape_cast %531 : vector<8x16xf32> to vector<8x16x1xf32>
    %533 = tpu.reciprocal %532 {approx = true} : vector<8x16x1xf32> -> vector<8x16x1xf32>
    %534 = vector.broadcast %533 : vector<8x16x1xf32> to vector<8x16x16xf32>
    %535 = arith.mulf %530, %534 : vector<8x16x16xf32>
    %536 = vector.extract_strided_slice %535 {offsets = [0, 0, 0], sizes = [2, 16, 16], strides = [1, 1, 1]} : vector<8x16x16xf32> to vector<2x16x16xf32>
    %537 = vector.extract_strided_slice %510 {offsets = [0, 0, 0], sizes = [2, 16, 8], strides = [1, 1, 1]} : vector<2x16x32xf32> to vector<2x16x8xf32>
    "tpu.trace_start"() <{level = 10 : i32, message = "bqk,bkd->bqd"}> : () -> ()
    %cst_77 = arith.constant dense<0.000000e+00> : vector<2x16x8xf32>
    %538 = tpu.matmul %536, %537, %cst_77 {dimension_numbers = #tpu.dot_dimension_numbers<[2], [1], [1], [2], [0, 0, 0, 1, 1, 2], [0], [0]>} : vector<2x16x16xf32>, vector<2x16x8xf32>, vector<2x16x8xf32> -> vector<2x16x8xf32>
    "tpu.trace_stop"() : () -> ()
    %539 = vector.extract_strided_slice %535 {offsets = [2, 0, 0], sizes = [2, 16, 16], strides = [1, 1, 1]} : vector<8x16x16xf32> to vector<2x16x16xf32>
    %540 = vector.extract_strided_slice %510 {offsets = [0, 0, 8], sizes = [2, 16, 8], strides = [1, 1, 1]} : vector<2x16x32xf32> to vector<2x16x8xf32>
    "tpu.trace_start"() <{level = 10 : i32, message = "bqk,bkd->bqd"}> : () -> ()
    %cst_78 = arith.constant dense<0.000000e+00> : vector<2x16x8xf32>
    %541 = tpu.matmul %539, %540, %cst_78 {dimension_numbers = #tpu.dot_dimension_numbers<[2], [1], [1], [2], [0, 0, 0, 1, 1, 2], [0], [0]>} : vector<2x16x16xf32>, vector<2x16x8xf32>, vector<2x16x8xf32> -> vector<2x16x8xf32>
    "tpu.trace_stop"() : () -> ()
    %542 = vector.extract_strided_slice %535 {offsets = [4, 0, 0], sizes = [2, 16, 16], strides = [1, 1, 1]} : vector<8x16x16xf32> to vector<2x16x16xf32>
    %543 = vector.extract_strided_slice %510 {offsets = [0, 0, 16], sizes = [2, 16, 8], strides = [1, 1, 1]} : vector<2x16x32xf32> to vector<2x16x8xf32>
    "tpu.trace_start"() <{level = 10 : i32, message = "bqk,bkd->bqd"}> : () -> ()
    %cst_79 = arith.constant dense<0.000000e+00> : vector<2x16x8xf32>
    %544 = tpu.matmul %542, %543, %cst_79 {dimension_numbers = #tpu.dot_dimension_numbers<[2], [1], [1], [2], [0, 0, 0, 1, 1, 2], [0], [0]>} : vector<2x16x16xf32>, vector<2x16x8xf32>, vector<2x16x8xf32> -> vector<2x16x8xf32>
    "tpu.trace_stop"() : () -> ()
    %545 = vector.extract_strided_slice %535 {offsets = [6, 0, 0], sizes = [2, 16, 16], strides = [1, 1, 1]} : vector<8x16x16xf32> to vector<2x16x16xf32>
    %546 = vector.extract_strided_slice %510 {offsets = [0, 0, 24], sizes = [2, 16, 8], strides = [1, 1, 1]} : vector<2x16x32xf32> to vector<2x16x8xf32>
    "tpu.trace_start"() <{level = 10 : i32, message = "bqk,bkd->bqd"}> : () -> ()
    %cst_80 = arith.constant dense<0.000000e+00> : vector<2x16x8xf32>
    %547 = tpu.matmul %545, %546, %cst_80 {dimension_numbers = #tpu.dot_dimension_numbers<[2], [1], [1], [2], [0, 0, 0, 1, 1, 2], [0], [0]>} : vector<2x16x16xf32>, vector<2x16x8xf32>, vector<2x16x8xf32> -> vector<2x16x8xf32>
    "tpu.trace_stop"() : () -> ()
    %548 = tpu.concatenate %538, %541, %544, %547 in 2 : vector<2x16x8xf32>, vector<2x16x8xf32>, vector<2x16x8xf32>, vector<2x16x8xf32> -> vector<2x16x32xf32>
    %cst_81 = arith.constant dense<0.000000e+00> : vector<2x32xf32>
    %549 = vector.multi_reduction <add>, %548, %cst_81 [1] : vector<2x16x32xf32> to vector<2x32xf32>
    %cst_82 = arith.constant 6.250000e-02 : f32
    %550 = vector.broadcast %cst_82 : f32 to vector<2x32xf32>
    %551 = arith.mulf %549, %550 : vector<2x32xf32>
    %552 = arith.truncf %9 : vector<2x128xf32> to vector<2x128xbf16>
    %c0_83 = arith.constant 0 : index
    %c1920 = arith.constant 1920 : index
    %553 = vector.load %arg1[%c0_83, %c1920] : memref<128x1952xbf16, #tpu.memory_space<vmem>>, vector<128x32xbf16>
    %cst_84 = arith.constant dense<0.000000e+00> : vector<2x32xf32>
    %554 = tpu.matmul %552, %553, %cst_84 {dimension_numbers = #tpu.dot_dimension_numbers<[1], [0], [0], [1], [0, 0, 1, 1], [], []>} : vector<2x128xbf16>, vector<128x32xbf16>, vector<2x32xf32> -> vector<2x32xf32>
    %c0_85 = arith.constant 0 : index
    %c672 = arith.constant 672 : index
    %555 = vector.load %arg5[%c0_85, %c672] : memref<1x708xf32, #tpu.memory_space<vmem>>, vector<1x32xf32>
    %556 = vector.broadcast %555 : vector<1x32xf32> to vector<2x32xf32>
    %557 = arith.addf %554, %556 : vector<2x32xf32>
    %558 = math.tanh %54 : vector<2x32xf32>
    %559 = math.tanh %551 : vector<2x32xf32>
    %cst_86 = arith.constant 1.000000e+00 : f32
    %560 = vector.broadcast %cst_86 : f32 to vector<2x32xf32>
    %561 = arith.subf %560, %558 : vector<2x32xf32>
    %562 = arith.mulf %561, %54 : vector<2x32xf32>
    %563 = arith.mulf %558, %557 : vector<2x32xf32>
    %564 = arith.addf %562, %563 : vector<2x32xf32>
    %cst_87 = arith.constant 1.000000e+00 : f32
    %565 = vector.broadcast %cst_87 : f32 to vector<2x32xf32>
    %566 = arith.subf %565, %559 : vector<2x32xf32>
    %567 = arith.mulf %566, %551 : vector<2x32xf32>
    %568 = arith.mulf %559, %557 : vector<2x32xf32>
    %569 = arith.addf %567, %568 : vector<2x32xf32>
    %570 = tpu.concatenate %564, %569 in 1 : vector<2x32xf32>, vector<2x32xf32> -> vector<2x64xf32>
    %c0_88 = arith.constant 0 : index
    %c0_89 = arith.constant 0 : index
    %571 = vector.load %arg4[%c0_88, %c0_89] : memref<64x4xf32, #tpu.memory_space<vmem>>, vector<64x4xf32>
    %cst_90 = arith.constant dense<0.000000e+00> : vector<2x4xf32>
    %572 = tpu.matmul %570, %571, %cst_90 {dimension_numbers = #tpu.dot_dimension_numbers<[1], [0], [0], [1], [0, 0, 1, 1], [], []>} : vector<2x64xf32>, vector<64x4xf32>, vector<2x4xf32> -> vector<2x4xf32>
    %c0_91 = arith.constant 0 : index
    %c704 = arith.constant 704 : index
    %573 = vector.load %arg5[%c0_91, %c704] : memref<1x708xf32, #tpu.memory_space<vmem>>, vector<1x4xf32>
    %574 = vector.broadcast %573 : vector<1x4xf32> to vector<2x4xf32>
    %575 = arith.addf %572, %574 : vector<2x4xf32>
    %cst_92 = arith.constant dense<0xFF800000> : vector<2xf32>
    %576 = vector.multi_reduction <maximumf>, %575, %cst_92 [1] : vector<2x4xf32> to vector<2xf32>
    %577 = vector.shape_cast %576 : vector<2xf32> to vector<2x1xf32>
    %578 = vector.broadcast %577 : vector<2x1xf32> to vector<2x4xf32>
    %579 = arith.subf %575, %578 : vector<2x4xf32>
    %580 = math.exp %579 : vector<2x4xf32>
    %cst_93 = arith.constant dense<0.000000e+00> : vector<2xf32>
    %581 = vector.multi_reduction <add>, %580, %cst_93 [1] : vector<2x4xf32> to vector<2xf32>
    %582 = vector.shape_cast %581 : vector<2xf32> to vector<2x1xf32>
    %583 = vector.broadcast %582 : vector<2x1xf32> to vector<2x4xf32>
    %584 = arith.divf %580, %583 : vector<2x4xf32>
    %c0_94 = arith.constant 0 : index
    %c0_95 = arith.constant 0 : index
    %585 = vector.load %arg6[%c0_94, %c0_95] : memref<2x4xf32, #tpu.memory_space<vmem>>, vector<2x4xf32>
    tpu.vector_store %arg6[%c0_94, %c0_95], %584 {strides = array<i32>} : memref<2x4xf32, #tpu.memory_space<vmem>>, vector<2x4xf32>,
    return
  }
}

</mosaic_0001>

<bundles_post_ra>
// kernel: tpu_custom_call.1
= control target key start
LH: loop header
LB: loop body
LE: loop exit
PB: predicated region body
PF: predicated region fallthrough
CT: control target
= control target key end

     0   :  { %v9443_v3 = vmov 0.0   ;;  %v160_v8 = vlaneseq  ;;  %vm9444_vm0 = vmmov 0   ;;  %v9445_v19 = vmov 1966171168   ;;  %s11873_s0 = inlined_call_operand.vmem [shape: f32[2,16,128], index: 0, kind: input, shape index: {}]   ;;  %s11874_s1 = inlined_call_operand.vmem [shape: bf16[128,1952], index: 1, kind: input, shape index: {}]   ;;  %s11875_s2 = inlined_call_operand.vmem [shape: f32[32,192], index: 2, kind: input, shape index: {}]   ;;  %s11876_s3 = inlined_call_operand.vmem [shape: f32[384,32], index: 3, kind: input, shape index: {}]   ;;  %s11877_s4 = inlined_call_operand.vmem [shape: f32[64,4], index: 4, kind: input, shape index: {}]   ;;  %s11878_s5 = inlined_call_operand.vmem [shape: f32[1,708], index: 5, kind: input, shape index: {}]   ;;  %s11879_s6 = inlined_call_operand.hbm [shape: f32[2,4], index: 6, kind: output, shape index: {}]  }
   0x1   :  { %v31_v0 = vld [vmem:[%s11874_s1] sm:$0xf]  ;;  %v770_v2 = vld [vmem:[%s11874_s1 + $0x18] sm:$0xff]  ;;  %8173 = vmatprep.subr.bf16.mxu0 %v9443_v3  ;;  %8189 = vmatprep.mubr.msk.bf16.mxu0 %vm9444_vm0, %v9443_v3  ;;  %v158_v20 = vunpack.c.l.s4 %v9445_v19  ;;  %v9446_v36 = vmov 0   ;;  %v9629_v55 = vld [vmem:[%s11873_s0 + $0x10] sm:$0xff]  ;;  %vm59_vm1 = vcmask 1041409  }
   0x2   :  { %v32_v1 = vld [vmem:[%s11874_s1 + $0x40] sm:$0xf]  ;;  %v772_v5 = vld [vmem:[%s11874_s1 + $0x58] sm:$0xff]  ;;  %v9540_v22 = vshrl.u32 %v160_v8, 7  ;;  %962 = vmatprep.mubr.bf16.mxu1 %v9446_v36 }
   0x3   :  { %v7641_v4 = vcombine.low %v31_v0, %v32_v1  ;;  %v33_v6 = vld [vmem:[%s11874_s1 + $0x80] sm:$0xf]  ;;  %v7657_v9 = vcombine.high %v770_v2, %v772_v5  ;;  %v7656_v10 = vcombine.low %v770_v2, %v772_v5  ;;  %v774_v11 = vld [vmem:[%s11874_s1 + $0x98] sm:$0xff]  ;;  %v159_v24 = vunpack.c.0.s8 %v158_v20 }
   0x4   :  { %v34_v7 = vld [vmem:[%s11874_s1 + $0xc0] sm:$0xf]  ;;  %v776_v12 = vld [vmem:[%s11874_s1 + $0xd8] sm:$0xff]  ;;  %v30_v0 = vpack.c.bf16 %v9629_v55, %v9629_v55 }
   0x5   :  { %8174 = vmatpush3.bf16.msra.mxu0 %v7641_v4  ;;  %v7642_v13 = vcombine.low %v33_v6, %v34_v7  ;;  %v7660_v14 = vcombine.high %v774_v11, %v776_v12  ;;  %v778_v15 = vld [vmem:[%s11874_s1 + $0x118] sm:$0xff]  ;;  %930 = vmatprep.subr.bf16.mxu1 %v7657_v9  ;;  %v35_v17 = vld [vmem:[%s11874_s1 + $0x100] sm:$0xf]  ;;  %v7659_v21 = vcombine.low %v774_v11, %v776_v12  ;;  %v26_v4 = vld [vmem:[%s11873_s0 + $0x8] sm:$0xff] }
   0x6   :  { %v780_v16 = vld [vmem:[%s11874_s1 + $0x158] sm:$0xff]  ;;  %8175 = vmatprep.subr.bf16.mxu0 %v9443_v3  ;;  %v36_v18 = vld [vmem:[%s11874_s1 + $0x140] sm:$0xf]  ;;  %931 = vmatpush1.bf16.msra.mxu1 %v7656_v10  ;;  %v9559_v31 = vsub.s32 %v159_v24, %v9540_v22 }
   0x7   :  { %932 = vmatprep.subr.bf16.mxu1 %v7660_v14  ;;  %v7663_v23 = vcombine.high %v778_v15, %v780_v16  ;;  %v7643_v25 = vcombine.low %v35_v17, %v36_v18  ;;  %v782_v26 = vld [vmem:[%s11874_s1 + $0x198] sm:$0xff]  ;;  %v37_v28 = vld [vmem:[%s11874_s1 + $0x180] sm:$0xf]  ;;  %v7662_v32 = vcombine.low %v778_v15, %v780_v16  ;;  %v205_v16 = vcombine.high %v26_v4, %v26_v4 }
   0x8   :  { %v784_v27 = vld [vmem:[%s11874_s1 + $0x1d8] sm:$0xff]  ;;  %v38_v29 = vld [vmem:[%s11874_s1 + $0x1c0] sm:$0xf]  ;;  %v9669_v8 = vrot.slane %v9629_v55, %v9559_v31  ;;  %v57_v17 = vunpack.c.l.b16 %v30_v0  ;;  %v212_v19 = vrot.slane %v26_v4, %v9559_v31 }
   0x9   :  { %8176 = vmatpush3.bf16.msra.mxu0 %v7642_v13  ;;  %v39_v30 = vld [vmem:[%s11874_s1 + $0x200] sm:$0xf]  ;;  %v9567_v34 = vld [vmem:[%s11874_s1 + $0x218] sm:$0xff]  ;;  %v7666_v37 = vcombine.high %v782_v26, %v784_v27  ;;  %v7644_v41 = vcombine.low %v37_v28, %v38_v29  ;;  %v7665_v45 = vcombine.low %v782_v26, %v784_v27  ;;  %v253_v13 = vcombine.high %v9629_v55, %v9629_v55 }
   0xa   :  { %8177 = vmatprep.subr.bf16.mxu0 %v9443_v3  ;;  %933 = vmatpush1.bf16.msra.mxu1 %v7659_v21  ;;  %v40_v33 = vld [vmem:[%s11874_s1 + $0x240] sm:$0xf]  ;;  %v9572_v35 = vld [vmem:[%s11874_s1 + $0x258] sm:$0xff]  ;;  %v268_v21 = vcombine.high %v9669_v8, %v9669_v8  ;;  %v220_v27 = vcombine.high %v212_v19, %v212_v19  ;;  %v9695_v28 = vrot.slane %v212_v19, %v9559_v31 }
   0xb   :  { %934 = vmatprep.subr.bf16.mxu1 %v7663_v23  ;;  %v9578_v38 = vld [vmem:[%s11874_s1 + $0x280] sm:$0xf]  ;;  %v9591_v42 = vld [vmem:[%s11874_s1 + $0x298] sm:$0xff]  ;;  %v7645_v46 = vcombine.low %v39_v30, %v40_v33  ;;  %v7669_v50 = vcombine.high %v9567_v34, %v9572_v35  ;;  %v7668_v51 = vcombine.low %v9567_v34, %v9572_v35  ;;  %v219_v23 = vrot.slane %v205_v16, %v9559_v31 }
   0xc   :  { %v9583_v39 = vld [vmem:[%s11874_s1 + $0x2c0] sm:$0xf]  ;;  %v9596_v43 = vld [vmem:[%s11874_s1 + $0x2d8] sm:$0xff] }
   0xd   :  { %v25_v40 = vld [vmem:[%s11873_s0] sm:$0xff]  ;;  %8178 = vmatpush3.bf16.msra.mxu0 %v7643_v25  ;;  %v7646_v52 = vcombine.low %v9578_v38, %v9583_v39  ;;  %v9619_v53 = vld [vmem:[%s11874_s1 + $0x318] sm:$0xff]  ;;  %v7672_v57 = vcombine.high %v9591_v42, %v9596_v43  ;;  %v7671_v58 = vcombine.low %v9591_v42, %v9596_v43  ;;  %v221_v33 = vcombine.high %v219_v23, %v219_v23 }
   0xe   :  { %v156_v44 = vcombine.high %v25_v40, %v25_v40  ;;  %8179 = vmatprep.subr.bf16.mxu0 %v9443_v3  ;;  %v9602_v47 = vld [vmem:[%s11874_s1 + $0x300] sm:$0xf]  ;;  %v163_v49 = vrot.slane %v25_v40, %v9559_v31  ;;  %935 = vmatpush1.bf16.msra.mxu1 %v7662_v32  ;;  %v9624_v54 = vld [vmem:[%s11874_s1 + $0x358] sm:$0xff]  ;;  %v29_v10 = vpack.c.bf16 %v25_v40, %v25_v40  ;;  %v58_v38 = vrot.slane %v57_v17, 7 }
   0xf   :  { %v9607_v48 = vld [vmem:[%s11874_s1 + $0x340] sm:$0xf]  ;;  %936 = vmatprep.subr.bf16.mxu1 %v7666_v37  ;;  %v7675_v5 = vcombine.high %v9619_v53, %v9624_v54  ;;  %v7674_v6 = vcombine.low %v9619_v53, %v9624_v54  ;;  %v9701_v30 = vld [vmem:[%s11874_s1 + $0x398] sm:$0xff]  ;;  %v9709_v34 = vrot.slane %v219_v23, %v9559_v31  ;;  %v9718_v39 = vrot.slane %v220_v27, %v9559_v31 }
  0x10   :  { %v170_v56 = vrot.slane %v156_v44, %v9559_v31  ;;  %v9639_v59 = vld [vmem:[%s11874_s1 + $0x380] sm:$0xf]  ;;  %v171_v61 = vcombine.high %v163_v49, %v163_v49  ;;  %v9647_v62 = vrot.slane %v163_v49, %v9559_v31  ;;  %v7647_v63 = vcombine.low %v9602_v47, %v9607_v48  ;;  %v9706_v32 = vld [vmem:[%s11874_s1 + $0x3d8] sm:$0xff] }
  0x11   :  { %v9644_v60 = vld [vmem:[%s11874_s1 + $0x3c0] sm:$0xf]  ;;  %8180 = vmatpush3.bf16.msra.mxu0 %v7644_v41  ;;  %v56_v26 = vunpack.c.l.b16 %v29_v10  ;;  %v250_v40 = vcombine.high %v9695_v28, %v9695_v28  ;;  %v9725_v42 = vrot.slane %v268_v21, %v9559_v31  ;;  %v9728_v43 = vrot.slane %v221_v33, %v9559_v31  ;;  %v9813_v21 = vld [vmem:[%s11874_s1 + $0xcc] sm:$0xff] }
  0x12   :  { %v172_v1 = vcombine.high %v170_v56, %v170_v56  ;;  %v9654_v2 = vrot.slane %v170_v56, %v9559_v31  ;;  %8181 = vmatprep.subr.bf16.mxu0 %v9443_v3  ;;  %v9665_v7 = vrot.slane %v171_v61, %v9559_v31  ;;  %937 = vmatpush1.bf16.msra.mxu1 %v7665_v45  ;;  %v771_v49 = vld [vmem:[%s11874_s1 + $0x20] sm:$0xf] }
  0x13   :  { %v7648_v9 = vcombine.low %v9639_v59, %v9644_v60  ;;  %v201_v12 = vcombine.high %v9647_v62, %v9647_v62  ;;  %938 = vmatprep.subr.bf16.mxu1 %v7669_v50  ;;  %v9732_v44 = vcombine.high %v9709_v34, %v9709_v34  ;;  %v773_v50 = vld [vmem:[%s11874_s1 + $0x60] sm:$0xf]  ;;  %v626_v55 = vcombine.low %v9718_v39, %v250_v40  ;;  %v28_v60 = vld [vmem:[%s11873_s0 + $0x18] sm:$0xff]  ;;  %v9849_v40 = vld [vmem:[%s11874_s1 + $0x10c] sm:$0xff] }
  0x14   :  { %v9674_v11 = vrot.slane %v172_v1, %v9559_v31  ;;  %v202_v14 = vcombine.high %v9654_v2, %v9654_v2  ;;  %v203_v15 = vcombine.high %v9665_v7, %v9665_v7  ;;  %v267_v56 = vrot.slane %v253_v13, %v9559_v31  ;;  %v775_v17 = vld [vmem:[%s11874_s1 + $0xa0] sm:$0xf] }
  0x15   :  { %8182 = vmatpush3.bf16.msra.mxu0 %v7645_v46  ;;  %v577_v20 = vcombine.low %v9665_v7, %v201_v12  ;;  %v7678_v46 = vcombine.high %v9701_v30, %v9706_v32  ;;  %v9763_v61 = vcombine.high %v9728_v43, %v9728_v43  ;;  %v628_v1 = vcombine.low %v9728_v43, %v9732_v44  ;;  %v777_v53 = vld [vmem:[%s11874_s1 + $0xe0] sm:$0xf] }
  0x16   :  { %v204_v18 = vcombine.high %v9674_v11, %v9674_v11  ;;  %8183 = vmatprep.subr.bf16.mxu0 %v9443_v3  ;;  %v578_v24 = vcombine.low %v203_v15, %v9654_v2  ;;  %v579_v25 = vcombine.low %v9674_v11, %v202_v14  ;;  %939 = vmatpush1.bf16.msra.mxu1 %v7668_v51  ;;  %v779_v59 = vld [vmem:[%s11874_s1 + $0x120] sm:$0xf] }
  0x17   :  { %v587_v29 = vrot.slane %v577_v20, %v9559_v31  ;;  %940 = vmatprep.subr.bf16.mxu1 %v7672_v57  ;;  %v252_v51 = vcombine.high %v9718_v39, %v9718_v39  ;;  %v9754_v57 = vld [vmem:[%s11874_s1 + $0xc] sm:$0xff]  ;;  %v60_v4 = vsel %vm59_vm1, %v58_v38, %v56_v26  ;;  %v9776_v12 = vrot.slane %v626_v55, %v9559_v31  ;;  %v781_v38 = vld [vmem:[%s11874_s1 + $0x160] sm:$0xf] }
  0x18   :  { %v9712_v35 = vrot.slane %v578_v24, %v9559_v31  ;;  %v9715_v37 = vrot.slane %v579_v25, %v9559_v31  ;;  %v580_v41 = vcombine.low %v204_v18, %v9695_v28  ;;  %v7658_v13 = vcombine.low %v771_v49, %v773_v50  ;;  %v9808_v20 = vld [vmem:[%s11874_s1 + $0x8c] sm:$0xff]  ;;  %v785_v55 = vld [vmem:[%s11874_s1 + $0x1e0] sm:$0xf] }
  0x19   :  { %8184 = vmatpush3.bf16.msra.mxu0 %v7646_v52  ;;  %v627_v10 = vcombine.low %v252_v51, %v9709_v34  ;;  %v629_v14 = vcombine.low %v9763_v61, %v9725_v42  ;;  %v9782_v15 = vrot.slane %v628_v1, %v9559_v31  ;;  %v7677_v47 = vcombine.low %v9701_v30, %v9706_v32  ;;  %v783_v51 = vld [vmem:[%s11874_s1 + $0x1a0] sm:$0xf] }
  0x1a   :  { %8185 = vmatprep.subr.bf16.mxu0 %v9443_v3  ;;  %v1656_v45 = vcombine.low %v9712_v35, %v9715_v37  ;;  %941 = vmatpush1.bf16.msra.mxu1 %v7671_v58  ;;  %v9747_v52 = vrot.slane %v580_v41, %v9559_v31  ;;  %v9759_v58 = vld [vmem:[%s11874_s1 + $0x4c] sm:$0xff]  ;;  %v609_v0 = vcombine.low %v587_v29, %v9712_v35 }
  0x1b   :  { %942 = vmatprep.subr.bf16.mxu1 %v7675_v5  ;;  %v7681_v48 = vcombine.high %v9754_v57, %v9759_v58  ;;  %v61_v54 = vpack.c.b16 %v60_v4, %v60_v4  ;;  %v657_v19 = vrot.slane %v629_v14, %v9559_v31  ;;  %v269_v23 = vcombine.high %v267_v56, %v267_v56  ;;  %v9854_v41 = vld [vmem:[%s11874_s1 + $0x14c] sm:$0xff] }
  0x1c   :  { %v610_v5 = vcombine.low %v9715_v37, %v9747_v52  ;;  %v1657_v16 = vcombine.low %v9747_v52, %v9776_v12  ;;  %v9820_v24 = vrot.slane %v9669_v8, %v9559_v31  ;;  %v7680_v27 = vcombine.low %v9754_v57, %v9759_v58  ;;  %v9883_v14 = vld [vmem:[%s11874_s1 + $0x1cc] sm:$0xff] }
  0x1d   :  { %8186 = vmatpush3.bf16.msra.mxu0 %v7647_v63  ;;  %v9792_v63 = vrot.slane %v627_v10, %v9559_v31  ;;  %v659_v29 = vcombine.low %v9782_v15, %v657_v19  ;;  %v7661_v30 = vcombine.low %v775_v17, %v777_v53  ;;  %v9836_v8 = vrot.slane %v267_v56, %v9559_v31 }
  0x1e   :  { %8187 = vmatprep.subr.bf16.mxu0 %v9443_v3  ;;  %943 = vmatpush1.bf16.msra.mxu1 %v7674_v6  ;;  %v617_v6 = vrot.slane %v609_v0, %v9559_v31  ;;  %v624_v18 = vrot.slane %v610_v5, %v9559_v31  ;;  %v7683_v32 = vcombine.low %v9808_v20, %v9813_v21 }
  0x1f   :  { %944 = vmatprep.subr.bf16.mxu1 %v7678_v46  ;;  %v658_v25 = vcombine.low %v9776_v12, %v9792_v63  ;;  %v1689_v26 = vcombine.low %v9792_v63, %v9782_v15  ;;  %v7684_v33 = vcombine.high %v9808_v20, %v9813_v21  ;;  %v402_v46 = vcombine.low %v9732_v44, %v9820_v24 }
  0x20   :  { %v625_v49 = vcombine.low %v617_v6, %v624_v18  ;;  %v673_v50 = vrot.slane %v659_v29, %v9559_v31  ;;  %v9866_v56 = vrot.slane %v269_v23, %v9559_v31  ;;  %v302_v57 = vcombine.high %v28_v60, %v28_v60 }
  0x21   :  { %8188 = vmatpush3.bf16.msra.mxu0 %v7648_v9  ;;  %v666_v9 = vrot.slane %v658_v25, %v9559_v31  ;;  %v309_v58 = vrot.slane %v28_v60, %v9559_v31  ;;  %v7652_v0 = vcombine.high %v9820_v24, %v9725_v42  ;;  %v7664_v4 = vcombine.low %v779_v59, %v781_v38 }
  0x22   :  { %8193 = vmatprep.subr.bf16.mxu0 %v7658_v13  ;;  %945 = vmatpush1.bf16.msra.mxu1 %v7677_v47  ;;  %v7686_v5 = vcombine.low %v9849_v40, %v9854_v41  ;;  %v7687_v10 = vcombine.high %v9849_v40, %v9854_v41  ;;  %v787_v47 = vld [vmem:[%s11874_s1 + $0x220] sm:$0xf]  ;;  %v316_v17 = vrot.slane %v302_v57, %v9559_v31 }
  0x23   :  { %1160 = vmatprep.subr.bf16.mxu1 %v7681_v48  ;;  %v674_v1 = vcombine.low %v666_v9, %v673_v50  ;;  %v789_v48 = vld [vmem:[%s11874_s1 + $0x260] sm:$0xf]  ;;  %v317_v53 = vcombine.high %v309_v58, %v309_v58  ;;  %v676_v6 = vcombine.low %v9836_v8, %v9866_v56  ;;  %v7667_v19 = vcombine.low %v783_v51, %v785_v55 }
  0x24   :  { %8190 = vmatmul.mubr.bf16.vlgmr.msra.gmra.mrb[0].mxu0 %v61_v54  ;;  %v9893_v54 = vrot.slane %v309_v58, %v9559_v31  ;;  %v7653_v23 = vcombine.high %v9836_v8, %v9866_v56  ;;  %v685_v25 = vrot.slane %v7652_v0, %v9559_v31  ;;  %v318_v29 = vcombine.high %v316_v17, %v316_v17 }
  0x25   :  { %8194 = vmatpush3.bf16.msra.mxu0 %v7658_v13  ;;  %v9878_v13 = vld [vmem:[%s11874_s1 + $0x18c] sm:$0xff]  ;;  %v768_v18 = vpack.c.bf16 %v674_v1, %v625_v49  ;;  %v9901_v59 = vrot.slane %v316_v17, %v9559_v31  ;;  %v9904_v60 = vrot.slane %v317_v53, %v9559_v31  ;;  %v9907_v9 = vrot.slane %v676_v6, %v9559_v31  ;;  %v793_v53 = vld [vmem:[%s11874_s1 + $0x2e0] sm:$0xf] }
  0x26   :  { %8195 = vmatprep.subr.bf16.mxu0 %v7661_v30  ;;  %v7690_v38 = vcombine.high %v9878_v13, %v9883_v14  ;;  %v7670_v49 = vcombine.low %v787_v47, %v789_v48  ;;  %v9912_v50 = vrot.slane %v7653_v23, %v9559_v31  ;;  %v350_v58 = vcombine.low %v9647_v62, %v9665_v7 }
  0x27   :  { %963 = vmatmul.mubr.bf16.vlgmr.msra.gmra.mrb[0].mxu1 %v768_v18  ;;  %v678_v51 = vcombine.low %v9893_v54, %v9904_v60  ;;  %v707_v55 = vcombine.low %v685_v25, %v9907_v9  ;;  %v7654_v57 = vcombine.high %v9893_v54, %v9904_v60  ;;  %8209 = vmatprep.mubr.bf16.mxu0 %v768_v18  ;;  %v559_v25 = vld [vmem:[%s11874_s1 + $0x20c] sm:$0xff] }
  0x28   :  { %1161 = vmatpush1.bf16.msra.mxu1 %v7680_v27  ;;  %972 = vmatprep.mubr.bf16.mxu1 %v9446_v36  ;;  %v7649_v27 = vcombine.high %v9647_v62, %v9665_v7  ;;  %v352_v17 = vcombine.low %v9654_v2, %v9674_v11  ;;  %v7650_v62 = vcombine.high %v9654_v2, %v9674_v11 }
  0x29   :  { %8196 = vmatpush3.bf16.msra.mxu0 %v7661_v30  ;;  %v9916_v30 = vrot.slane %v318_v29, %v9559_v31  ;;  %1162 = vmatprep.subr.bf16.mxu1 %v7684_v33  ;;  %v9928_v0 = vrot.slane %v678_v51, %v9559_v31  ;;  %v715_v1 = vrot.slane %v707_v55, %v9559_v31 }
  0x2a   :  { %8197 = vmatprep.subr.bf16.mxu0 %v7664_v4  ;;  %v9936_v48 = vrot.slane %v7654_v57, %v9559_v31  ;;  %v360_v7 = vrot.slane %v350_v58, %v9559_v31  ;;  %v9961_v11 = vrot.slane %v7649_v27, %v9559_v31  ;;  %v9964_v20 = vrot.slane %v352_v17, %v9559_v31  ;;  %v795_v27 = vld [vmem:[%s11874_s1 + $0x320] sm:$0xf] }
  0x2b   :  { %v725_v47 = vcombine.low %v9901_v59, %v9916_v30  ;;  %v7655_v33 = vcombine.high %v9901_v59, %v9916_v30  ;;  %v708_v6 = vcombine.low %v9912_v50, %v9928_v0  ;;  %v9967_v21 = vrot.slane %v7650_v62, %v9559_v31 }
  0x2c   :  { %1163 = vmatpush1.bf16.msra.mxu1 %v7683_v32  ;;  %v399_v32 = vcombine.low %v9695_v28, %v9718_v39  ;;  %v7651_v23 = vcombine.high %v9695_v28, %v9718_v39  ;;  %v401_v28 = vcombine.low %v9709_v34, %v9728_v43  ;;  %v7689_v58 = vcombine.low %v9878_v13, %v9883_v14 }
  0x2d   :  { %8198 = vmatpush3.bf16.msra.mxu0 %v7664_v4  ;;  %v791_v4 = vld [vmem:[%s11874_s1 + $0x2a0] sm:$0xf]  ;;  %v9955_v18 = vrot.slane %v725_v47, %v9559_v31  ;;  %v9958_v2 = vrot.slane %v7655_v33, %v9559_v31  ;;  %1164 = vmatprep.subr.bf16.mxu1 %v7687_v10  ;;  %v561_v10 = vld [vmem:[%s11874_s1 + $0x24c] sm:$0xff]  ;;  %v722_v29 = vrot.slane %v708_v6, %v9559_v31 }
  0x2e   :  { %8199 = vmatprep.subr.bf16.mxu0 %v7667_v19  ;;  %v7673_v57 = vcombine.low %v791_v4, %v793_v53  ;;  %v9987_v39 = vrot.slane %v399_v32, %v9559_v31  ;;  %v797_v47 = vld [vmem:[%s11874_s1 + $0x360] sm:$0xf]  ;;  %v430_v40 = vrot.slane %v402_v46, %v9559_v31 }
  0x2f   :  { %v748_v51 = vcombine.low %v9936_v48, %v9955_v18  ;;  %v762_v55 = vrot.slane %v9958_v2, %v9559_v31  ;;  %v723_v33 = vcombine.low %v715_v1, %v722_v29 }
  0x30   :  { %1165 = vmatpush1.bf16.msra.mxu1 %v7686_v5 }
  0x31   :  { %8200 = vmatpush3.bf16.msra.mxu0 %v7667_v19  ;;  %v9990_v19 = vrot.slane %v7651_v23, %v9559_v31  ;;  %v755_v17 = vrot.slane %v748_v51, %v9559_v31 }
  0x32   :  { %8201 = vmatprep.subr.bf16.mxu0 %v7670_v49 }
  0x33   :  { %11 = vsyncpa [#allocation3], 0  ;;  %1166 = vmatprep.subr.bf16.mxu1 %v7690_v38  ;;  %v7693_v41 = vcombine.high %v559_v25, %v561_v10  ;;  %v382_v5 = vcombine.low %v360_v7, %v9961_v11  ;;  %v383_v13 = vcombine.low %v9964_v20, %v9967_v21  ;;  %v10012_v14 = vrot.slane %v401_v28, %v9559_v31  ;;  %v563_v1 = vld [vmem:[%s11874_s1 + $0x28c] sm:$0xff]  ;;  %v799_v32 = vld [vmem:[%s11874_s1 + $0x3a0] sm:$0xf]  ;;  %s9448_s16 = smov 96  }
  0x34   :  { %v565_v44 = vld [vmem:[%s11874_s1 + $0x2cc] sm:$0xff]  ;;  %v763_v46 = vcombine.low %v755_v17, %v762_v55  ;;  %v7676_v38 = vcombine.low %v795_v27, %v797_v47  ;;  %v431_v7 = vcombine.low %v9987_v39, %v9990_v19  ;;  %1167 = vmatpush1.bf16.msra.mxu1 %v7689_v58  ;;  %v7692_v53 = vcombine.low %v559_v25, %v561_v10  ;;  %v801_v23 = vld [vmem:[%s11874_s1 + $0x3e0] sm:$0xf]  ;;  %v544_v51 = vld [vmem:[%s11874_s1 + $0x14] sm:$0xf]  ;;  %s9449_s18 = smov 32  }
  0x35   :  { %8202 = vmatpush3.bf16.msra.mxu0 %v7670_v49  ;;  %v10023_v62 = vld [vmem:[%s11874_s1 + $0x30c] sm:$0xff]  ;;  %v432_v4 = vcombine.low %v10012_v14, %v430_v40  ;;  %1168 = vmatprep.subr.bf16.mxu1 %v7693_v41  ;;  %v7696_v29 = vcombine.high %v563_v1, %v565_v44  ;;  %v546_v25 = vld [vmem:[%s11874_s1 + $0x54] sm:$0xf]  ;;  %v390_v10 = vrot.slane %v382_v5, %v9559_v31  ;;  %v1396_v52 = vld [vmem:[%s11874_s1 + $0x2e4] sm:$0xff]  ;;  %vm2633_vm2 = vcmask 1045504   ;;  %s9450_s19 = smov 64  }
  0x36   :  { %8203 = vmatprep.subr.bf16.mxu0 %v7673_v57  ;;  %v10028_v49 = vld [vmem:[%s11874_s1 + $0x34c] sm:$0xff]  ;;  %v10033_v6 = vpack.c.bf16 %v763_v46, %v723_v33  ;;  %v397_v55 = vrot.slane %v383_v13, %v9559_v31  ;;  %v7695_v28 = vcombine.low %v563_v1, %v565_v44  ;;  %v7679_v27 = vcombine.low %v799_v32, %v801_v23  ;;  %s9452_s28 = smov 108   ;;  %s9453_s29 = smov 124  }
  0x37   :  { %v7698_v58 = vcombine.low %v10023_v62, %v10028_v49  ;;  %v439_v47 = vrot.slane %v431_v7, %v9559_v31  ;;  %v446_v33 = vrot.slane %v432_v4, %v9559_v31  ;;  %v7699_v17 = vcombine.high %v10023_v62, %v10028_v49  ;;  %v573_v46 = vld [vmem:[%s11874_s1 + $0x3cc] sm:$0xff]  ;;  %s9454_s30 = smov 104   ;;  %s9455_s7 = smov 120  }
  0x38   :  { %973 = vmatmul.mubr.bf16.gmra.mrb[4].mxu1 %v10033_v6  ;;  %v7682_v40 = vcombine.low %v544_v51, %v546_v25  ;;  %v299_v41 = vcombine.high %v9836_v8, %v9836_v8  ;;  %v398_v5 = vcombine.low %v390_v10, %v397_v55  ;;  %v10065_v13 = vcombine.high %v9725_v42, %v9725_v42  ;;  %s9456_s8 = smov 100   ;;  %s9458_s9 = smov 88  }
  0x39   :  { %8204 = vmatpush3.bf16.msra.mxu0 %v7673_v57  ;;  %1192 = vmatprep.mubr.bf16.mxu1 %v9446_v36  ;;  %v10059_v57 = vcombine.high %v9820_v24, %v9820_v24  ;;  %v301_v1 = vcombine.high %v9866_v56, %v9866_v56  ;;  %v347_v44 = vcombine.high %v9893_v54, %v9893_v54  ;;  %v571_v24 = vld [vmem:[%s11874_s1 + $0x38c] sm:$0xff]  ;;  %vm2686_vm3 = vcmask 1044480   ;;  %s9459_s10 = smov 80   ;;  %s9460_s11 = smov 72  }
  0x3a   :  { %8205 = vmatprep.subr.bf16.mxu0 %v7676_v38  ;;  %1169 = vmatpush1.bf16.msra.mxu1 %v7692_v53  ;;  %v348_v62 = vcombine.high %v9901_v59, %v9901_v59  ;;  %v349_v49 = vcombine.high %v9904_v60, %v9904_v60  ;;  %v450_v4 = vcombine.low %v9866_v56, %v299_v41  ;;  %vm2544_vm4 = vcmask 1046528   ;;  %s9461_s24 = smov 8   ;;  %s9463_s25 = smov 24  }
  0x3b   :  { %1170 = vmatprep.subr.bf16.mxu1 %v7696_v29  ;;  %v448_v7 = vcombine.low %v9725_v42, %v10059_v57  ;;  %v449_v53 = vcombine.low %v10065_v13, %v9836_v8  ;;  %v451_v32 = vcombine.low %v301_v1, %v9893_v54  ;;  %v497_v23 = vcombine.low %v9904_v60, %v347_v44  ;;  %v548_v29 = vld [vmem:[%s11874_s1 + $0x94] sm:$0xf] }
  0x3c   :  { %v550_v42 = vld [vmem:[%s11874_s1 + $0xd4] sm:$0xf]  ;;  %v10096_v51 = vrot.slane %v450_v4, %v9559_v31  ;;  %v498_v8 = vcombine.low %v349_v49, %v9901_v59  ;;  %v499_v54 = vcombine.low %v9916_v30, %v348_v62  ;;  %v7702_v60 = vcombine.high %v571_v24, %v573_v46  ;;  %v1376_v59 = vld [vmem:[%s11874_s1 + $0x64] sm:$0xff] }
  0x3d   :  { %8206 = vmatpush3.bf16.msra.mxu0 %v7676_v38  ;;  %v447_v38 = vcombine.low %v439_v47, %v446_v33  ;;  %v458_v56 = vrot.slane %v448_v7, %v9559_v31  ;;  %v10101_v25 = vrot.slane %v449_v53, %v9559_v31  ;;  %v10104_v10 = vrot.slane %v451_v32, %v9559_v31  ;;  %v1378_v32 = vld [vmem:[%s11874_s1 + $0xa4] sm:$0xff] }
  0x3e   :  { %8207 = vmatprep.subr.bf16.mxu0 %v7679_v27  ;;  %1171 = vmatpush1.bf16.msra.mxu1 %v7695_v28  ;;  %v10107_v55 = vrot.slane %v497_v23, %v9559_v31  ;;  %v1374_v28 = vld [vmem:[%s11874_s1 + $0x24] sm:$0xff]  ;;  %v10116_v47 = vrot.slane %v498_v8, %v9559_v31  ;;  %v7685_v33 = vcombine.low %v548_v29, %v550_v42  ;;  %v556_v23 = vld [vmem:[%s11874_s1 + $0x194] sm:$0xf]  ;;  %vm2990_vm5 = vcmask 785408  }
  0x3f   :  { %1172 = vmatprep.subr.bf16.mxu1 %v7699_v17  ;;  %v552_v17 = vld [vmem:[%s11874_s1 + $0x114] sm:$0xf]  ;;  %v480_v41 = vcombine.low %v458_v56, %v10101_v25  ;;  %v481_v1 = vcombine.low %v10096_v51, %v10104_v10  ;;  %v10128_v44 = vrot.slane %v499_v54, %v9559_v31  ;;  %v7701_v62 = vcombine.low %v571_v24, %v573_v46  ;;  %v1382_v54 = vld [vmem:[%s11874_s1 + $0x124] sm:$0xff] }
  0x40   :  { %v541_v49 = vpack.c.bf16 %v447_v38, %v398_v5  ;;  %v521_v7 = vcombine.low %v10107_v55, %v10116_v47  ;;  %v7706_v4 = vcombine.high %v1374_v28, %v1376_v59  ;;  %v1269_v53 = vrot.slane %v9443_v3, %v9559_v31  ;;  %v558_v29 = vld [vmem:[%s11874_s1 + $0x1d4] sm:$0xf] }
  0x41   :  { %8208 = vmatpush3.bf16.msra.mxu0 %v7679_v27  ;;  %v554_v27 = vld [vmem:[%s11874_s1 + $0x154] sm:$0xf]  ;;  %v488_v24 = vrot.slane %v480_v41, %v9559_v31  ;;  %v7705_v38 = vcombine.low %v1374_v28, %v1376_v59  ;;  %v7691_v28 = vcombine.low %v556_v23, %v558_v29  ;;  %v1277_v35 = vcombine.low %v9961_v11, %v9964_v20 }
  0x42   :  { %8213 = vmatprep.subr.bf16.mxu0 %v7682_v40  ;;  %1173 = vmatpush1.bf16.msra.mxu1 %v7698_v58  ;;  %v1380_v58 = vld [vmem:[%s11874_s1 + $0xe4] sm:$0xff]  ;;  %v7688_v5 = vcombine.low %v552_v17, %v554_v27  ;;  %v528_v46 = vrot.slane %v521_v7, %v9559_v31  ;;  %v1648_v42 = vcombine.high %v1269_v53, %v1269_v53  ;;  %v560_v41 = vld [vmem:[%s11874_s1 + $0x214] sm:$0xf]  ;;  %vm3167_vm6 = vcmask 261120  }
  0x43   :  { %1174 = vmatprep.subr.bf16.mxu1 %v7702_v60  ;;  %v7709_v56 = vcombine.high %v1378_v32, %v1380_v58  ;;  %v10153_v8 = vrot.slane %v1269_v53, %v9559_v31  ;;  %v1384_v60 = vld [vmem:[%s11874_s1 + $0x164] sm:$0xff]  ;;  %v7708_v27 = vcombine.low %v1378_v32, %v1380_v58  ;;  %v564_v58 = vld [vmem:[%s11874_s1 + $0x294] sm:$0xf]  ;;  %v1697_v37 = vrot.slane %v1689_v26, %v9559_v31 }
  0x44   :  { %8210 = vmatmul.mubr.bf16.vlgmr.msra.gmra.mrb[4].mxu0 %v10033_v6  ;;  %v495_v6 = vrot.slane %v481_v1, %v9559_v31  ;;  %v10169_v1 = vrot.slane %v1648_v42, %v9559_v31  ;;  %v1388_v7 = vld [vmem:[%s11874_s1 + $0x1e4] sm:$0xff]  ;;  %v1707_v11 = vcombine.low %v9928_v0, %v9936_v48  ;;  %v1278_v15 = vcombine.low %v9967_v21, %v9987_v39 }
  0x45   :  { %8214 = vmatpush3.bf16.msra.mxu0 %v7682_v40  ;;  %8229 = vmatprep.mubr.bf16.mxu0 %v541_v49  ;;  %v535_v40 = vrot.slane %v10128_v44, %v9559_v31  ;;  %v10185_v32 = vld [vmem:[%s11874_s1 + $0x264] sm:$0xff]  ;;  %v1310_v63 = vcombine.low %v9990_v19, %v10012_v14  ;;  %v1731_v20 = vcombine.low %v9955_v18, %v9958_v2  ;;  %vm5431_vm7 = vcmask 1040384  }
  0x46   :  { %8215 = vmatprep.subr.bf16.mxu0 %v7685_v33  ;;  %1175 = vmatpush1.bf16.msra.mxu1 %v7701_v62  ;;  %v496_v59 = vcombine.low %v488_v24, %v495_v6  ;;  %v7712_v62 = vcombine.high %v1382_v54, %v1384_v60  ;;  %v1295_v6 = vcombine.low %v10153_v8, %v10059_v57  ;;  %vm5434_vm8 = vcmask 1041408  }
  0x47   :  { %1534 = vmatprep.subr.bf16.mxu1 %v7706_v4  ;;  %v536_v17 = vcombine.low %v528_v46, %v535_v40  ;;  %v10180_v4 = vld [vmem:[%s11874_s1 + $0x224] sm:$0xff]  ;;  %v7704_v46 = vcombine.high %v9709_v34, %v9728_v43  ;;  %v1673_v40 = vcombine.low %v9763_v61, %v10153_v8  ;;  %v1674_v23 = vcombine.low %v10169_v1, %v10065_v13  ;;  %v568_v34 = vld [vmem:[%s11874_s1 + $0x314] sm:$0xf] }
  0x48   :  { %v570_v43 = vld [vmem:[%s11874_s1 + $0x354] sm:$0xf]  ;;  %v1309_v57 = vrot.slane %v1295_v6, %v9559_v31  ;;  %v1664_v13 = vrot.slane %v1656_v45, %v9559_v31  ;;  %v1394_v45 = vld [vmem:[%s11874_s1 + $0x2a4] sm:$0xff]  ;;  %v1723_v26 = vcombine.low %v10153_v8, %v10169_v1  ;;  %v1721_v39 = vrot.slane %v1707_v11, %v9559_v31 }
  0x49   :  { %8216 = vmatpush3.bf16.msra.mxu0 %v7685_v33  ;;  %1193 = vmatmul.mubr.bf16.vlgmr.msra.gmra.mrb[0].mxu1 %v541_v49  ;;  %v562_v33 = vld [vmem:[%s11874_s1 + $0x254] sm:$0xf]  ;;  %v1386_v49 = vld [vmem:[%s11874_s1 + $0x1a4] sm:$0xff]  ;;  %v10193_v24 = vpack.c.bf16 %v536_v17, %v496_v59  ;;  %v1302_v61 = vrot.slane %v7704_v46, %v9559_v31  ;;  %v7718_v17 = vcombine.high %v10180_v4, %v10185_v32  ;;  %vm5437_vm9 = vcmask 1042432  }
  0x4a   :  { %8217 = vmatprep.subr.bf16.mxu0 %v7688_v5  ;;  %1535 = vmatpush1.bf16.msra.mxu1 %v7705_v38  ;;  %v7694_v53 = vcombine.low %v560_v41, %v562_v33  ;;  %v7711_v38 = vcombine.low %v1382_v54, %v1384_v60  ;;  %v7715_v29 = vcombine.high %v1386_v49, %v1388_v7  ;;  %v1398_v33 = vld [vmem:[%s11874_s1 + $0x324] sm:$0xff]  ;;  %vm5440_vm10 = vcmask 1043456  }
  0x4b   :  { %1202 = vmatprep.mubr.bf16.mxu1 %v9446_v36  ;;  %1536 = vmatprep.subr.bf16.mxu1 %v7709_v56  ;;  %v7714_v42 = vcombine.low %v1386_v49, %v1388_v7  ;;  %v7717_v56 = vcombine.low %v10180_v4, %v10185_v32  ;;  %v1671_v54 = vrot.slane %v1657_v16, %v9559_v31  ;;  %v1400_v1 = vld [vmem:[%s11874_s1 + $0x364] sm:$0xff]  ;;  %vm5586_vm11 = vcmask 130048  }
  0x4c   :  { %v1681_v60 = vrot.slane %v1673_v40, %v9559_v31  ;;  %v1706_v41 = vcombine.low %v9907_v9, %v9912_v50  ;;  %v572_v9 = vld [vmem:[%s11874_s1 + $0x394] sm:$0xf]  ;;  %v1311_v0 = vcombine.low %v1302_v61, %v1309_v57  ;;  %v7721_v19 = vcombine.high %v1394_v45, %v1396_v52 }
  0x4d   :  { %8218 = vmatpush3.bf16.msra.mxu0 %v7688_v5  ;;  %v566_v5 = vld [vmem:[%s11874_s1 + $0x2d4] sm:$0xf]  ;;  %v1672_v12 = vcombine.low %v1664_v13, %v1671_v54  ;;  %v1730_v18 = vrot.slane %v1723_v26, %v9559_v31  ;;  %v1738_v2 = vrot.slane %v1731_v20, %v9559_v31  ;;  %v7720_v14 = vcombine.low %v1394_v45, %v1396_v52  ;;  %v1389_v26 = vld [vmem:[%s11874_s1 + $0x1ec] sm:$0xf] }
  0x4e   :  { %8219 = vmatprep.subr.bf16.mxu0 %v7691_v28  ;;  %1537 = vmatpush1.bf16.msra.mxu1 %v7708_v27  ;;  %v7697_v59 = vcombine.low %v564_v58, %v566_v5  ;;  %v7700_v27 = vcombine.low %v568_v34, %v570_v43  ;;  %v574_v50 = vld [vmem:[%s11874_s1 + $0x3d4] sm:$0xf]  ;;  %v1714_v21 = vrot.slane %v1706_v41, %v9559_v31  ;;  %v1375_v58 = vld [vmem:[%s11874_s1 + $0x2c] sm:$0xf]  ;;  %vm5698_vm12 = vcmask 31744  }
  0x4f   :  { %1538 = vmatprep.subr.bf16.mxu1 %v7712_v62  ;;  %v7703_v7 = vcombine.low %v572_v9, %v574_v50  ;;  %v1285_v4 = vrot.slane %v1277_v35, %v9559_v31  ;;  %v1745_v32 = vrot.slane %v1730_v18, %v9559_v31  ;;  %v1377_v5 = vld [vmem:[%s11874_s1 + $0x6c] sm:$0xf]  ;;  %v1292_v6 = vrot.slane %v1278_v15, %v9559_v31  ;;  %v1761_v9 = vld [vmem:[%s11874_s1 + $0x130] sm:$0xff]  ;;  %vm11489_vm13 = vmpackc.low %vm5698_vm12, %vm5698_vm12 }
  0x50   :  { %v1722_v49 = vcombine.low %v1714_v21, %v1721_v39  ;;  %v1318_v46 = vrot.slane %v1310_v63, %v9559_v31  ;;  %v1325_v40 = vrot.slane %v1311_v0, %v9559_v31  ;;  %v1381_v34 = vld [vmem:[%s11874_s1 + $0xec] sm:$0xf]  ;;  %v7723_v57 = vcombine.low %v1398_v33, %v1400_v1  ;;  %v1763_v50 = vld [vmem:[%s11874_s1 + $0x170] sm:$0xff] }
  0x51   :  { %8220 = vmatpush3.bf16.msra.mxu0 %v7691_v28  ;;  %1203 = vmatmul.mubr.bf16.gmra.mrb[4].mxu1 %v10193_v24  ;;  %v1688_v28 = vrot.slane %v1674_v23, %v9559_v31  ;;  %v1746_v23 = vcombine.low %v1738_v2, %v1745_v32  ;;  %v1293_v13 = vcombine.low %v1285_v4, %v1292_v6  ;;  %v1385_v35 = vld [vmem:[%s11874_s1 + $0x16c] sm:$0xf]  ;;  %v1769_v32 = vld [vmem:[%s11874_s1 + $0x230] sm:$0xff]  ;;  %vm7353_vm14 = vcmask 64512  }
  0x52   :  { %8221 = vmatprep.subr.bf16.mxu0 %v7694_v53  ;;  %1539 = vmatpush1.bf16.msra.mxu1 %v7711_v38  ;;  %v1326_v54 = vcombine.low %v1318_v46, %v1325_v40  ;;  %v1328_v45 = vcombine.low %v10104_v10, %v10107_v55  ;;  %v1387_v63 = vld [vmem:[%s11874_s1 + $0x1ac] sm:$0xf]  ;;  %v7736_v2 = vcombine.high %v1761_v9, %v1763_v50  ;;  %vm7362_vm15 = vcmask 195584  }
  0x53   :  { %1566 = vmatprep.mubr.bf16.mxu1 %v9446_v36  ;;  %1540 = vmatprep.subr.bf16.mxu1 %v7715_v29  ;;  %v1690_v16 = vcombine.low %v1681_v60, %v1688_v28  ;;  %v1402_v29 = vld [vmem:[%s11874_s1 + $0x3a4] sm:$0xff]  ;;  %v10296_v61 = vpack.c.bf16 %v1746_v23, %v1722_v49  ;;  %v1753_v28 = vld [vmem:[%s11874_s1 + $0x30] sm:$0xff]  ;;  %v7716_v0 = vcombine.low %v1387_v63, %v1389_v26  ;;  %v1393_v18 = vld [vmem:[%s11874_s1 + $0x26c] sm:$0xf] }
  0x54   :  { %v1372_v41 = vpack.c.bf16 %v1326_v54, %v1293_v13  ;;  %v7735_v49 = vcombine.low %v1761_v9, %v1763_v50  ;;  %v1397_v4 = vld [vmem:[%s11874_s1 + $0x2ec] sm:$0xf]  ;;  %v1773_v23 = vld [vmem:[%s11874_s1 + $0x2b0] sm:$0xff]  ;;  %v1774_v26 = vld [vmem:[%s11874_s1 + $0x2b8] sm:$0xf] }
  0x55   :  { %8222 = vmatpush3.bf16.msra.mxu0 %v7694_v53  ;;  %v1704_v48 = vrot.slane %v1690_v16, %v9559_v31  ;;  %v576_v53 = vcombine.high %v9916_v30, %v9916_v30  ;;  %v7724_v30 = vcombine.high %v1398_v33, %v1400_v1  ;;  %v1767_v33 = vld [vmem:[%s11874_s1 + $0x1f0] sm:$0xff]  ;;  %v1399_v46 = vld [vmem:[%s11874_s1 + $0x32c] sm:$0xf]  ;;  %v1780_v9 = vld [vmem:[%s11874_s1 + $0x378] sm:$0xf] }
  0x56   :  { %8223 = vmatprep.subr.bf16.mxu0 %v7697_v59  ;;  %1541 = vmatpush1.bf16.msra.mxu1 %v7714_v42  ;;  %v1404_v42 = vld [vmem:[%s11874_s1 + $0x3e4] sm:$0xff]  ;;  %v1401_v40 = vld [vmem:[%s11874_s1 + $0x36c] sm:$0xf]  ;;  %v1779_v13 = vld [vmem:[%s11874_s1 + $0x370] sm:$0xff] }
  0x57   :  { %1542 = vmatprep.subr.bf16.mxu1 %v7718_v17  ;;  %v1705_v62 = vcombine.low %v1697_v37, %v1704_v48  ;;  %v1344_v43 = vcombine.low %v576_v53, %v10153_v8  ;;  %v7727_v60 = vcombine.high %v1402_v29, %v1404_v42  ;;  %v1755_v17 = vld [vmem:[%s11874_s1 + $0x70] sm:$0xff]  ;;  %v1383_v8 = vld [vmem:[%s11874_s1 + $0x12c] sm:$0xf]  ;;  %v1327_v37 = vcombine.low %v10101_v25, %v10096_v51 }
  0x58   :  { %v7726_v16 = vcombine.low %v1402_v29, %v1404_v42  ;;  %v7730_v11 = vcombine.high %v1753_v28, %v1755_v17  ;;  %v1757_v51 = vld [vmem:[%s11874_s1 + $0xb0] sm:$0xff]  ;;  %v7713_v10 = vcombine.low %v1383_v8, %v1385_v35  ;;  %v7729_v15 = vcombine.low %v1753_v28, %v1755_v17  ;;  %v1754_v28 = vld [vmem:[%s11874_s1 + $0x38] sm:$0xf] }
  0x59   :  { %8224 = vmatpush3.bf16.msra.mxu0 %v7697_v59  ;;  %v10281_v38 = vpack.c.bf16 %v1705_v62, %v1672_v12  ;;  %v1379_v59 = vld [vmem:[%s11874_s1 + $0xac] sm:$0xf]  ;;  %v1351_v52 = vrot.slane %v1344_v43, %v9559_v31  ;;  %v1352_v12 = vcombine.low %v10116_v47, %v10128_v44  ;;  %v1759_v25 = vld [vmem:[%s11874_s1 + $0xf0] sm:$0xff]  ;;  %v1335_v55 = vrot.slane %v1327_v37, %v9559_v31  ;;  %v1756_v17 = vld [vmem:[%s11874_s1 + $0x78] sm:$0xf] }
  0x5a   :  { %8225 = vmatprep.subr.bf16.mxu0 %v7700_v27  ;;  %1543 = vmatpush1.bf16.msra.mxu1 %v7717_v56  ;;  %v7707_v56 = vcombine.low %v1375_v58, %v1377_v5  ;;  %v1342_v47 = vrot.slane %v1328_v45, %v9559_v31  ;;  %v7733_v20 = vcombine.high %v1757_v51, %v1759_v25  ;;  %v1771_v58 = vld [vmem:[%s11874_s1 + $0x270] sm:$0xff] }
  0x5b   :  { %1544 = vmatprep.subr.bf16.mxu1 %v7721_v19  ;;  %v1359_v44 = vrot.slane %v1352_v12, %v9559_v31  ;;  %v7732_v39 = vcombine.low %v1757_v51, %v1759_v25  ;;  %v1391_v19 = vld [vmem:[%s11874_s1 + $0x22c] sm:$0xf]  ;;  %v1775_v29 = vld [vmem:[%s11874_s1 + $0x2f0] sm:$0xff]  ;;  %v7725_v42 = vcombine.low %v1399_v46, %v1401_v40  ;;  %v7731_v37 = vcombine.low %v1754_v28, %v1756_v17  ;;  %v1760_v12 = vld [vmem:[%s11874_s1 + $0xf8] sm:$0xf] }
  0x5c   :  { %v1343_v48 = vcombine.low %v1335_v55, %v1342_v47  ;;  %v7719_v1 = vcombine.low %v1391_v19, %v1393_v18  ;;  %v7745_v43 = vcombine.high %v1773_v23, %v1775_v29  ;;  %v1781_v8 = vld [vmem:[%s11874_s1 + $0x3b0] sm:$0xff]  ;;  %v1762_v51 = vld [vmem:[%s11874_s1 + $0x138] sm:$0xf] }
  0x5d   :  { %8226 = vmatpush3.bf16.msra.mxu0 %v7700_v27  ;;  %v7710_v27 = vcombine.low %v1379_v59, %v1381_v34  ;;  %v1403_v59 = vld [vmem:[%s11874_s1 + $0x3ac] sm:$0xf]  ;;  %v1783_v35 = vld [vmem:[%s11874_s1 + $0x3f0] sm:$0xff]  ;;  %v1764_v25 = vld [vmem:[%s11874_s1 + $0x178] sm:$0xf] }
  0x5e   :  { %8227 = vmatprep.subr.bf16.mxu0 %v7703_v7  ;;  %1545 = vmatpush1.bf16.msra.mxu1 %v7720_v14  ;;  %v1765_v14 = vld [vmem:[%s11874_s1 + $0x1b0] sm:$0xff]  ;;  %v1405_v34 = vld [vmem:[%s11874_s1 + $0x3ec] sm:$0xf]  ;;  %v1766_v55 = vld [vmem:[%s11874_s1 + $0x1b8] sm:$0xf] }
  0x5f   :  { %1546 = vmatprep.subr.bf16.mxu1 %v7724_v30  ;;  %v7739_v53 = vcombine.high %v1765_v14, %v1767_v33  ;;  %v7738_v6 = vcombine.low %v1765_v14, %v1767_v33  ;;  %v7742_v30 = vcombine.high %v1769_v32, %v1771_v58  ;;  %v7728_v54 = vcombine.low %v1403_v59, %v1405_v34  ;;  %v1768_v47 = vld [vmem:[%s11874_s1 + $0x1f8] sm:$0xf]  ;;  %v2731_v14 = vld [vmem:[%s11876_s3 + $0x80] sm:$0xff]  ;;  %v2732_v33 = vld [vmem:[%s11876_s3 + $0x88] sm:$0xff] }
  0x60   :  { %v2750_v40 = vld [vmem:[%s11876_s3 + $0x118] sm:$0xff]  ;;  %v2736_v59 = vld [vmem:[%s11876_s3 + $0xa8] sm:$0xff]  ;;  %v2751_v34 = vld [vmem:[%s11876_s3 + $0x120] sm:$0xff] }
  0x61   :  { %8228 = vmatpush3.bf16.msra.mxu0 %v7703_v7  ;;  %v1395_v7 = vld [vmem:[%s11874_s1 + $0x2ac] sm:$0xf]  ;;  %v2737_v17 = vld [vmem:[%s11876_s3 + $0xb0] sm:$0xff] }
  0x62   :  { %8233 = vmatprep.subr.bf16.mxu0 %v7707_v56  ;;  %1547 = vmatpush1.bf16.msra.mxu1 %v7723_v57  ;;  %v7722_v5 = vcombine.low %v1395_v7, %v1397_v4  ;;  %v1777_v57 = vld [vmem:[%s11874_s1 + $0x330] sm:$0xff]  ;;  %v2716_v7 = vld [vmem:[%s11876_s3 + $0x8] sm:$0xff]  ;;  %v9447_v4 = vmov 0.0|0.0  }
  0x63   :  { %1548 = vmatprep.subr.bf16.mxu1 %v7727_v60  ;;  %v7744_v60 = vcombine.low %v1773_v23, %v1775_v29  ;;  %v7747_v45 = vcombine.low %v1777_v57, %v1779_v13  ;;  %v2718_v23 = vld [vmem:[%s11876_s3 + $0x18] sm:$0xff] }
  0x64   :  { %8230 = vmatmul.mubr.bf16.vlgmr.msra.gmra.mrb[4].mxu0 %v10193_v24  ;;  %v1366_v24 = vrot.slane %v1351_v52, %v9559_v31  ;;  %v1758_v52 = vld [vmem:[%s11874_s1 + $0xb8] sm:$0xf] }
  0x65   :  { %8234 = vmatpush3.bf16.msra.mxu0 %v7707_v56  ;;  %8249 = vmatprep.mubr.bf16.mxu0 %v1372_v41  ;;  %v7741_v56 = vcombine.low %v1769_v32, %v1771_v58  ;;  %v2733_v58 = vld [vmem:[%s11876_s3 + $0x90] sm:$0xff] }
  0x66   :  { %8235 = vmatprep.subr.bf16.mxu0 %v7710_v27  ;;  %1549 = vmatpush1.bf16.msra.mxu1 %v7726_v16  ;;  %v1367_v21 = vcombine.low %v1359_v44, %v1366_v24  ;;  %v7751_v16 = vcombine.high %v1781_v8, %v1783_v35  ;;  %v7740_v44 = vcombine.low %v1766_v55, %v1768_v47  ;;  %v1770_v24 = vld [vmem:[%s11874_s1 + $0x238] sm:$0xf]  ;;  %v2723_v55 = vld [vmem:[%s11876_s3 + $0x40] sm:$0xff]  ;;  %v2724_v47 = vld [vmem:[%s11876_s3 + $0x48] sm:$0xff] }
  0x67   :  { %1913 = vmatprep.subr.bf16.mxu1 %v7730_v11  ;;  %v7750_v11 = vcombine.low %v1781_v8, %v1783_v35  ;;  %v2753_v8 = vld [vmem:[%s11876_s3 + $0x130] sm:$0xff] }
  0x68   :  { %v1373_v62 = vpack.c.bf16 %v1367_v21, %v1343_v48  ;;  %v1784_v48 = vld [vmem:[%s11874_s1 + $0x3f8] sm:$0xf] }
  0x69   :  { %8236 = vmatpush3.bf16.msra.mxu0 %v7710_v27  ;;  %1567 = vmatmul.mubr.bf16.vlgmr.msra.gmra.mrb[0].mxu1 %v1372_v41  ;;  %v7748_v27 = vcombine.high %v1777_v57, %v1779_v13  ;;  %v7734_v41 = vcombine.low %v1758_v52, %v1760_v12  ;;  %v2752_v57 = vld [vmem:[%s11876_s3 + $0x128] sm:$0xff]  ;;  %v2719_v13 = vld [vmem:[%s11876_s3 + $0x20] sm:$0xff]  ;;  %v2722_v52 = vld [vmem:[%s11876_s3 + $0x38] sm:$0xff] }
  0x6a   :  { %8237 = vmatprep.subr.bf16.mxu0 %v7713_v10  ;;  %1914 = vmatpush1.bf16.msra.mxu1 %v7729_v15  ;;  %v1772_v15 = vld [vmem:[%s11874_s1 + $0x278] sm:$0xf] }
  0x6b   :  { %1576 = vmatprep.mubr.bf16.mxu1 %v9446_v36  ;;  %1915 = vmatprep.subr.bf16.mxu1 %v7733_v20  ;;  %v7743_v63 = vcombine.low %v1770_v24, %v1772_v15  ;;  %v1778_v20 = vld [vmem:[%s11874_s1 + $0x338] sm:$0xf]  ;;  %v8707_v24 = vpack.c.bf16 %v2724_v47, %v2723_v55  ;;  %v2741_v15 = vld [vmem:[%s11876_s3 + $0xd0] sm:$0xff] }
  0x6c   :  { %v7749_v50 = vcombine.low %v1778_v20, %v1780_v9  ;;  %v2725_v20 = vld [vmem:[%s11876_s3 + $0x50] sm:$0xff]  ;;  %v2726_v9 = vld [vmem:[%s11876_s3 + $0x58] sm:$0xff] }
  0x6d   :  { %8238 = vmatpush3.bf16.msra.mxu0 %v7713_v10  ;;  %v7737_v10 = vcombine.low %v1762_v51, %v1764_v25  ;;  %v2755_v51 = vld [vmem:[%s11876_s3 + $0x140] sm:$0xff] }
  0x6e   :  { %8239 = vmatprep.subr.bf16.mxu0 %v7716_v0  ;;  %1916 = vmatpush1.bf16.msra.mxu1 %v7732_v39 }
  0x6f   :  { %1917 = vmatprep.subr.bf16.mxu1 %v7736_v2 }
  0x71   :  { %8240 = vmatpush3.bf16.msra.mxu0 %v7716_v0  ;;  %1577 = vmatmul.mubr.bf16.gmra.mrb[4].mxu1 %v1373_v62  ;;  %v1782_v0 = vld [vmem:[%s11874_s1 + $0x3b8] sm:$0xf] }
  0x72   :  { %8241 = vmatprep.subr.bf16.mxu0 %v7719_v1  ;;  %1918 = vmatpush1.bf16.msra.mxu1 %v7735_v49  ;;  %v7752_v21 = vcombine.low %v1782_v0, %v1784_v48  ;;  %v2715_v49 = vld [vmem:[%s11876_s3] sm:$0xff]  ;;  %v2744_v0 = vld [vmem:[%s11876_s3 + $0xe8] sm:$0xff] }
  0x73   :  { %1945 = vmatprep.mubr.bf16.mxu1 %v9446_v36  ;;  %1919 = vmatprep.subr.bf16.mxu1 %v7739_v53  ;;  %v8691_v32 = vpack.c.bf16 %v2716_v7, %v2715_v49  ;;  %v2761_v7 = vld [vmem:[%s11876_s3 + $0x170] sm:$0xff] }
  0x75   :  { %8242 = vmatpush3.bf16.msra.mxu0 %v7719_v1  ;;  %v8689_v1 = vpack.c.bf16 %v2732_v33, %v2731_v14  ;;  %v2727_v14 = vld [vmem:[%s11876_s3 + $0x60] sm:$0xff]  ;;  %v2728_v33 = vld [vmem:[%s11876_s3 + $0x68] sm:$0xff] }
  0x76   :  { %8243 = vmatprep.subr.bf16.mxu0 %v7722_v5  ;;  %1920 = vmatpush1.bf16.msra.mxu1 %v7738_v6  ;;  %v2749_v6 = vld [vmem:[%s11876_s3 + $0x110] sm:$0xff]  ;;  %v8715_v49 = vpack.c.bf16 %v2728_v33, %v2727_v14  ;;  %v2039_v14 = vsub.s32 2, %v9540_v22 }
  0x77   :  { %1921 = vmatprep.subr.bf16.mxu1 %v7742_v30  ;;  %v2717_v30 = vld [vmem:[%s11876_s3 + $0x10] sm:$0xff]  ;;  %v8725_v29 = vpack.c.bf16 %v2750_v40, %v2749_v6  ;;  %v3042_v6 = vld [vmem:[%s11874_s1 + $0x8] sm:$0xf] }
  0x79   :  { %8244 = vmatpush3.bf16.msra.mxu0 %v7722_v5  ;;  %v2734_v5 = vld [vmem:[%s11876_s3 + $0x98] sm:$0xff] }
  0x7a   :  { %8245 = vmatprep.subr.bf16.mxu0 %v7725_v42  ;;  %1922 = vmatpush1.bf16.msra.mxu1 %v7741_v56  ;;  %v8693_v46 = vpack.c.bf16 %v2734_v5, %v2733_v58  ;;  %v2735_v56 = vld [vmem:[%s11876_s3 + $0xa0] sm:$0xff]  ;;  %v2729_v58 = vld [vmem:[%s11876_s3 + $0x70] sm:$0xff]  ;;  %v2730_v5 = vld [vmem:[%s11876_s3 + $0x78] sm:$0xff] }
  0x7b   :  { %1923 = vmatprep.subr.bf16.mxu1 %v7745_v43  ;;  %v8697_v43 = vpack.c.bf16 %v2736_v59, %v2735_v56  ;;  %v2031_v59 = vsub.s32 0, %v9540_v22 }
  0x7d   :  { %8246 = vmatpush3.bf16.msra.mxu0 %v7725_v42  ;;  %v8695_v42 = vpack.c.bf16 %v2718_v23, %v2717_v30  ;;  %v8719_v30 = vpack.c.bf16 %v2730_v5, %v2729_v58 }
  0x7e   :  { %8247 = vmatprep.subr.bf16.mxu0 %v7728_v54  ;;  %1924 = vmatpush1.bf16.msra.mxu1 %v7744_v60  ;;  %v8728_v60 = vpack.c.bf16 %v2752_v57, %v2751_v34  ;;  %v2027_v34 = vld [vmem:[%s11878_s5 + $0x1] sm:$0x7]  ;;  %v2928_v57 = vld [vmem:[%s11878_s5 + $0x4] sm:$0x3] }
  0x7f   :  { %1925 = vmatprep.subr.bf16.mxu1 %v7748_v27  ;;  %v2738_v27 = vld [vmem:[%s11876_s3 + $0xb8] sm:$0xff]  ;;  %v2040_v33 = vrot.slane %v2027_v34, %v2039_v14 }
  0x80   :  { %v8701_v35 = vpack.c.bf16 %v2738_v27, %v2737_v17 }
  0x81   :  { %8248 = vmatpush3.bf16.msra.mxu0 %v7728_v54  ;;  %v2720_v54 = vld [vmem:[%s11876_s3 + $0x28] sm:$0xff] }
  0x82   :  { %8253 = vmatprep.subr.bf16.mxu0 %v7731_v37  ;;  %1926 = vmatpush1.bf16.msra.mxu1 %v7747_v45  ;;  %v8699_v28 = vpack.c.bf16 %v2720_v54, %v2719_v13  ;;  %v2721_v45 = vld [vmem:[%s11876_s3 + $0x30] sm:$0xff]  ;;  %v2933_v13 = vrot.slane %v2928_v57, %v2031_v59  ;;  %v2032_v54 = vrot.slane %v2027_v34, %v2031_v59 }
  0x83   :  { %1927 = vmatprep.subr.bf16.mxu1 %v7751_v16  ;;  %v8703_v16 = vpack.c.bf16 %v2722_v52, %v2721_v45 }
  0x84   :  { %8250 = vmatmul.mubr.bf16.vlgmr.msra.gmra.mrb[4].mxu0 %v1373_v62  ;;  %v2748_v62 = vld [vmem:[%s11876_s3 + $0x108] sm:$0xff]  ;;  %2986 = vrot.lane.b32.xlu0 %v2933_v13, %s9448_s16 }
  0x85   :  { %8254 = vmatpush3.bf16.msra.mxu0 %v7731_v37  ;;  %8269 = vmatprep.mubr.bf16.mxu0 %v10281_v38  ;;  %v2754_v37 = vld [vmem:[%s11876_s3 + $0x138] sm:$0xff] }
  0x86   :  { %8255 = vmatprep.subr.bf16.mxu0 %v7734_v41  ;;  %1928 = vmatpush1.bf16.msra.mxu1 %v7750_v11  ;;  %v8731_v12 = vpack.c.bf16 %v2754_v37, %v2753_v8  ;;  %v2740_v11 = vld [vmem:[%s11876_s3 + $0xc8] sm:$0xff] }
  0x87   :  { %8690 = vmatprep.subr.bf16.mxu1 %v8689_v1  ;;  %v2746_v1 = vld [vmem:[%s11876_s3 + $0xf8] sm:$0xff] }
  0x89   :  { %8256 = vmatpush3.bf16.msra.mxu0 %v7734_v41  ;;  %1946 = vmatmul.mubr.bf16.vlgmr.msra.gmra.mrb[0].mxu1 %v10281_v38  ;;  %v1776_v38 = vld [vmem:[%s11874_s1 + $0x2f8] sm:$0xf]  ;;  %v2739_v41 = vld [vmem:[%s11876_s3 + $0xc0] sm:$0xff] }
  0x8a   :  { %8257 = vmatprep.subr.bf16.mxu0 %v7737_v10  ;;  %1955 = vmatprep.mubr.bf16.mxu1 %v9446_v36  ;;  %v7746_v36 = vcombine.low %v1774_v26, %v1776_v38  ;;  %v8705_v25 = vpack.c.bf16 %v2740_v11, %v2739_v41  ;;  %v2757_v26 = vld [vmem:[%s11876_s3 + $0x150] sm:$0xff] }
  0x8b   :  { %8692 = vmatpush3.bf16.msra.mxu1 %v8691_v32  ;;  %v2762_v32 = vld [vmem:[%s11876_s3 + $0x178] sm:$0xff] }
  0x8c   :  { %8694 = vmatprep.subr.bf16.mxu1 %v8693_v46  ;;  %v3043_v46 = vld [vmem:[%s11874_s1 + $0x48] sm:$0xf]  ;;  %v8743_v40 = vpack.c.bf16 %v2762_v32, %v2761_v7 }
  0x8d   :  { %8258 = vmatpush3.bf16.msra.mxu0 %v7737_v10  ;;  %v2756_v10 = vld [vmem:[%s11876_s3 + $0x148] sm:$0xff]  ;;  %v10611_v23 = vcombine.low %v3042_v6, %v3043_v46 }
  0x8e   :  { %8259 = vmatprep.subr.bf16.mxu0 %v7740_v44 }
  0x8f   :  { %8696 = vmatpush3.bf16.msra.mxu1 %v8695_v42  ;;  %v2913_v42 = vld [vmem:[%s11874_s1 + $0x44] sm:$0xf] }
  0x90   :  { %8698 = vmatprep.subr.bf16.mxu1 %v8697_v43  ;;  %v2035_v43 = vsub.s32 1, %v9540_v22 }
  0x91   :  { %8260 = vmatpush3.bf16.msra.mxu0 %v7740_v44  ;;  %1956 = vmatmul.mubr.bf16.gmra.mrb[4].mxu1 %v10296_v61  ;;  %v8734_v44 = vpack.c.bf16 %v2756_v10, %v2755_v51 }
  0x92   :  { %8261 = vmatprep.subr.bf16.mxu0 %v7743_v63 }
  0x93   :  { %8700 = vmatpush3.bf16.msra.mxu1 %v8699_v28  ;;  %v2937_v28 = vrot.slane %v2928_v57, %v2035_v43 }
  0x94   :  { %8702 = vmatprep.subr.bf16.mxu1 %v8701_v35 }
  0x95   :  { %8262 = vmatpush3.bf16.msra.mxu0 %v7743_v63  ;;  %v2742_v63 = vld [vmem:[%s11876_s3 + $0xd8] sm:$0xff]  ;;  %2988 = vrot.lane.b32.xlu0 %v2937_v28, %s9448_s16 }
  0x96   :  { %8263 = vmatprep.subr.bf16.mxu0 %v7746_v36  ;;  %v8709_v38 = vpack.c.bf16 %v2742_v63, %v2741_v15 }
  0x97   :  { %8704 = vmatpush3.bf16.msra.mxu1 %v8703_v16 }
  0x98   :  { %8706 = vmatprep.subr.bf16.mxu1 %v8705_v25 }
  0x99   :  { %8264 = vmatpush3.bf16.msra.mxu0 %v7746_v36  ;;  %v2758_v36 = vld [vmem:[%s11876_s3 + $0x158] sm:$0xff] }
  0x9a   :  { %8265 = vmatprep.subr.bf16.mxu0 %v7749_v50  ;;  %v8737_v48 = vpack.c.bf16 %v2758_v36, %v2757_v26 }
  0x9b   :  { %8708 = vmatpush3.bf16.msra.mxu1 %v8707_v24 }
  0x9c   :  { %8710 = vmatprep.subr.bf16.mxu1 %v8709_v38 }
  0x9d   :  { %8266 = vmatpush3.bf16.msra.mxu0 %v7749_v50  ;;  %v2743_v50 = vld [vmem:[%s11876_s3 + $0xe0] sm:$0xff] }
  0x9e   :  { %8267 = vmatprep.subr.bf16.mxu0 %v7752_v21 }
  0xa1   :  { %8268 = vmatpush3.bf16.msra.mxu0 %v7752_v21  ;;  %v8711_v21 = vpack.c.bf16 %v2726_v9, %v2725_v20 }
  0xa2   :  { %8721 = vmatprep.subr.bf16.mxu0 %v9447_v4 }
  0xa3   :  { %8712 = vmatpush3.bf16.msra.mxu1 %v8711_v21 }
  0xa4   :  { %8270 = vmatmul.mubr.bf16.vlgmr.msra.gmra.mrb[4].mxu0 %v10296_v61  ;;  %v2747_v61 = vld [vmem:[%s11876_s3 + $0x100] sm:$0xff] }
  0xa5   :  { %8305 = vmatprep.mubr.msk.f32.mxu0 %vm9444_vm0, %v9443_v3  ;;  %v8722_v53 = vpack.c.bf16 %v2748_v62, %v2747_v61  ;;  %v2745_v61 = vld [vmem:[%s11876_s3 + $0xf0] sm:$0xff] }
  0xa7   :  { %8723 = vmatpush3.bf16.msra.mxu0 %v8722_v53  ;;  %v8717_v53 = vpack.c.bf16 %v2746_v1, %v2745_v61 }
  0xa8   :  { %8724 = vmatprep.subr.bf16.mxu0 %v9447_v4 }
  0xab   :  { %8726 = vmatpush3.bf16.msra.mxu0 %v8725_v29  ;;  %v2912_v29 = vld [vmem:[%s11874_s1 + $0x4] sm:$0xf] }
  0xac   :  { %8727 = vmatprep.subr.bf16.mxu0 %v9447_v4  ;;  %v10620_v56 = vcombine.low %v2912_v29, %v2913_v42 }
  0xaf   :  { %8729 = vmatpush3.bf16.msra.mxu0 %v8728_v60  ;;  %v2036_v60 = vrot.slane %v2027_v34, %v2035_v43 }
  0xb0   :  { %8730 = vmatprep.subr.bf16.mxu0 %v9447_v4 }
  0xb3   :  { %8732 = vmatpush3.bf16.msra.mxu0 %v8731_v12 }
  0xb4   :  { %8733 = vmatprep.subr.bf16.mxu0 %v9447_v4 }
  0xb7   :  { %8735 = vmatpush3.bf16.msra.mxu0 %v8734_v44 }
  0xb8   :  { %8736 = vmatprep.subr.bf16.mxu0 %v9447_v4 }
  0xbb   :  { %8738 = vmatpush3.bf16.msra.mxu0 %v8737_v48 }
  0xbc   :  { %8739 = vmatprep.subr.bf16.mxu0 %v9447_v4 }
  0xf7   :  { %v10451_v39 = vpop.f32.mrb[0].mxu0 }
  0xf8   :  { %v8191_v19 = vpop.f32.mrb[1].mxu0 }
  0xf9   :  { %v148_v18 = vpop.f32.mrb[2].mxu0  ;;  %v2759_v19 = vld [vmem:[%s11876_s3 + $0x160] sm:$0xff] }
  0xfa   :  { %v8192_v2 = vpop.f32.mrb[3].mxu0  ;;  %v8713_v18 = vpack.c.bf16 %v2744_v0, %v2743_v50 }
  0xfb   :  { %v2760_v2 = vld [vmem:[%s11876_s3 + $0x168] sm:$0xff]  ;;  %s9457_s3 = smov 116  }
  0xfc   :  { %v8740_v62 = vpack.c.bf16 %v2760_v2, %v2759_v19  ;;  %8714 = vmatprep.subr.bf16.mxu1 %v8713_v18 }
  0xfd   :  { %8716 = vmatpush3.bf16.msra.mxu1 %v8715_v49 }
  0xfe   :  { %8741 = vmatpush3.bf16.msra.mxu0 %v8740_v62  ;;  %8718 = vmatprep.subr.bf16.mxu1 %v8717_v53 }
  0xff   :  { %8742 = vmatprep.subr.bf16.mxu0 %v9447_v4 }
 0x101   :  { %8720 = vmatpush3.bf16.msra.mxu1 %v8719_v30 }
 0x102   :  { %8744 = vmatpush3.bf16.msra.mxu0 %v8743_v40  ;;  %8308 = vmatprep.subr.bf16.mxu1 %v10620_v56 }
 0x103   :  { %8328 = vmatprep.subr.bf16.mxu0 %v10611_v23 }
 0x15c   :  { %v1947_v17 = vpop.f32.mrb[0].mxu1 }
 0x15d   :  { %v2044_v27 = vadd.f32 %v2032_v54, %v1947_v17  ;;  %v1949_v8 = vpop.f32.mrb[1].mxu1 }
 0x15e   :  { %v2045_v35 = vadd.f32 %v2036_v60, %v1949_v8  ;;  %v1951_v37 = vpop.f32.mrb[2].mxu1 }
 0x15f   :  { %v2056_v45 = vmax.f32 %v2044_v27, 0.0  ;;  %v2047_v52 = vadd.f32 %v2032_v54, %v1951_v37  ;;  %v1953_v12 = vpop.f32.mrb[3].mxu1 }
 0x160   :  { %v2057_v16 = vmax.f32 %v2045_v35, 0.0  ;;  %v2048_v41 = vadd.f32 %v2036_v60, %v1953_v12 }
 0x161   :  { %v2059_v11 = vmax.f32 %v2047_v52, 0.0 }
 0x162   :  { %v2080_v51 = vcombine.low %v2056_v45, %v2057_v16  ;;  %v2081_v25 = vcombine.high %v2056_v45, %v2057_v16  ;;  %v2060_v10 = vmax.f32 %v2048_v41, 0.0 }
 0x164   :  { %v2147_v55 = vcombine.low %v2059_v11, %v2060_v10  ;;  %v10633_v47 = vcombine.high %v2059_v11, %v2060_v10  ;;  %v1957_v44 = vpop.f32.mrb[4].mxu1  ;;  %v2089_v53 = vrot.slane %v2080_v51, %v9559_v31  ;;  %v2096_v32 = vrot.slane %v2081_v25, %v9559_v31 }
 0x165   :  { %v2050_v24 = vadd.f32 %v2032_v54, %v1957_v44  ;;  %v1959_v15 = vpop.f32.mrb[5].mxu1 }
 0x166   :  { %v2051_v63 = vadd.f32 %v2036_v60, %v1959_v15  ;;  %v1961_v26 = vpop.f32.mrb[6].mxu1  ;;  %v10639_v46 = vrot.slane %v2147_v55, %v9559_v31 }
 0x167   :  { %v2062_v38 = vmax.f32 %v2050_v24, 0.0  ;;  %v2053_v36 = vadd.f32 %v2032_v54, %v1961_v26  ;;  %v1963_v20 = vpop.f32.mrb[7].mxu1 }
 0x168   :  { %v2063_v9 = vmax.f32 %v2051_v63, 0.0  ;;  %v2054_v50 = vadd.f32 %v2036_v60, %v1963_v20 }
 0x169   :  { %v2065_v0 = vmax.f32 %v2053_v36, 0.0 }
 0x16a   :  { %v2214_v48 = vcombine.low %v2062_v38, %v2063_v9  ;;  %v2215_v21 = vcombine.high %v2062_v38, %v2063_v9  ;;  %v2066_v19 = vmax.f32 %v2054_v50, 0.0 }
 0x16c   :  { %v2281_v18 = vcombine.low %v2065_v0, %v2066_v19  ;;  %v2282_v2 = vcombine.high %v2065_v0, %v2066_v19  ;;  %v2223_v40 = vrot.slane %v2214_v48, %v9559_v31  ;;  %v2230_v29 = vrot.slane %v2215_v21, %v9559_v31 }
 0x16e   :  { %v2290_v43 = vrot.slane %v2281_v18, %v9559_v31  ;;  %v2297_v57 = vrot.slane %v2282_v2, %v9559_v31 }
 0x177   :  { %v8271_v61 = vpop.f32.mrb[4].mxu0 }
 0x178   :  { %v2052_v1 = vadd.f32 %v8271_v61, %v2040_v33  ;;  %v2000_v62 = vpop.f32.mrb[5].mxu0 }
 0x179   :  { %v2046_v49 = vadd.f32 %v2040_v33, %v2000_v62  ;;  %v8272_v7 = vpop.f32.mrb[6].mxu0 }
 0x17a   :  { %v2064_v58 = vmax.f32 %v2052_v1, 0.0  ;;  %v2055_v5 = vadd.f32 %v8272_v7, %v2040_v33  ;;  %v2003_v6 = vpop.f32.mrb[7].mxu0 }
 0x17b   :  { %v2058_v30 = vmax.f32 %v2046_v49, 0.0  ;;  %v2049_v22 = vadd.f32 %v2040_v33, %v2003_v6  ;;  %v2163_v6 = vrot.slane %v10633_v47, %v9559_v31 }
 0x17c   :  { %v2216_v42 = vcombine.high %v2064_v58, %v2064_v58  ;;  %v2237_v59 = vrot.slane %v2064_v58, %v9559_v31  ;;  %v2067_v34 = vmax.f32 %v2055_v5, 0.0 }
 0x17d   :  { %v2082_v13 = vcombine.high %v2058_v30, %v2058_v30  ;;  %v2103_v54 = vrot.slane %v2058_v30, %v9559_v31  ;;  %v2061_v27 = vmax.f32 %v2049_v22, 0.0 }
 0x17e   :  { %v2244_v60 = vrot.slane %v2216_v42, %v9559_v31  ;;  %v2245_v28 = vcombine.low %v2223_v40, %v2237_v59  ;;  %v2246_v17 = vcombine.high %v2223_v40, %v2237_v59  ;;  %v2283_v45 = vcombine.high %v2067_v34, %v2067_v34 }
 0x17f   :  { %v2110_v8 = vrot.slane %v2082_v13, %v9559_v31  ;;  %v2111_v35 = vcombine.low %v2089_v53, %v2103_v54  ;;  %v2112_v37 = vcombine.high %v2089_v53, %v2103_v54  ;;  %v2304_v0 = vrot.slane %v2067_v34, %v9559_v31 }
 0x180   :  { %v2247_v52 = vcombine.low %v2230_v29, %v2244_v60  ;;  %v2248_v12 = vcombine.high %v2230_v29, %v2244_v60  ;;  %v10650_v16 = vrot.slane %v2245_v28, %v9559_v31  ;;  %v2269_v41 = vrot.slane %v2246_v17, %v9559_v31 }
 0x181   :  { %v2113_v11 = vcombine.low %v2096_v32, %v2110_v8  ;;  %v2114_v51 = vcombine.high %v2096_v32, %v2110_v8  ;;  %v2121_v25 = vrot.slane %v2111_v35, %v9559_v31  ;;  %v2135_v10 = vrot.slane %v2112_v37, %v9559_v31 }
 0x182   :  { %v2262_v55 = vrot.slane %v2247_v52, %v9559_v31  ;;  %v2276_v44 = vrot.slane %v2248_v12, %v9559_v31  ;;  %v2277_v24 = vcombine.high %v10650_v16, %v10650_v16  ;;  %v2279_v15 = vcombine.high %v2269_v41, %v2269_v41 }
 0x183   :  { %v2128_v63 = vrot.slane %v2113_v11, %v9559_v31  ;;  %v2142_v26 = vrot.slane %v2114_v51, %v9559_v31  ;;  %v2346_v38 = vcombine.low %v2121_v25, %v2135_v10  ;;  %v7753_v36 = vcombine.high %v2121_v25, %v2135_v10 }
 0x184   :  { %v2278_v20 = vcombine.high %v2262_v55, %v2262_v55  ;;  %v10661_v9 = vcombine.low %v2269_v41, %v2277_v24  ;;  %v2445_v50 = vcombine.low %v2279_v15, %v2262_v55  ;;  %v2280_v33 = vcombine.high %v2276_v44, %v2276_v44 }
 0x185   :  { %v2348_v48 = vcombine.low %v2128_v63, %v2142_v26  ;;  %v7754_v21 = vcombine.high %v2128_v63, %v2142_v26  ;;  %v2356_v19 = vrot.slane %v2346_v38, %v9559_v31  ;;  %v2363_v18 = vrot.slane %v7753_v36, %v9559_v31 }
 0x186   :  { %v2446_v2 = vcombine.low %v2276_v44, %v2278_v20  ;;  %v10667_v14 = vrot.slane %v2445_v50, %v9559_v31  ;;  %v2311_v61 = vrot.slane %v2283_v45, %v9559_v31  ;;  %v2312_v32 = vcombine.low %v2290_v43, %v2304_v0 }
 0x187   :  { %v2370_v1 = vrot.slane %v2348_v48, %v9559_v31  ;;  %v2377_v62 = vrot.slane %v7754_v21, %v9559_v31  ;;  %v2378_v49 = vcombine.low %v2356_v19, %v2363_v18  ;;  %v2561_v7 = vcombine.high %v2356_v19, %v2363_v18 }
 0x188   :  { %v10673_v53 = vrot.slane %v2446_v2, %v9559_v31  ;;  %v2313_v58 = vcombine.high %v2290_v43, %v2304_v0  ;;  %v2314_v5 = vcombine.low %v2297_v57, %v2311_v61  ;;  %v2315_v59 = vcombine.high %v2297_v57, %v2311_v61 }
 0x189   :  { %v2379_v40 = vcombine.low %v2370_v1, %v2377_v62  ;;  %v10678_v30 = vrot.slane %v2378_v49, %v9559_v31  ;;  %v2562_v22 = vcombine.high %v2370_v1, %v2377_v62  ;;  %v2322_v34 = vrot.slane %v2312_v32, %v9559_v31 }
 0x18a   :  { %v2476_v29 = vcombine.low %v10667_v14, %v10673_v53  ;;  %v2596_v42 = vcombine.high %v10667_v14, %v10673_v53  ;;  %v2329_v13 = vrot.slane %v2314_v5, %v9559_v31  ;;  %v2336_v47 = vrot.slane %v2313_v58, %v9559_v31 }
 0x18b   :  { %v10686_v43 = vrot.slane %v2379_v40, %v9559_v31  ;;  %v2149_v54 = vcombine.high %v2061_v27, %v2061_v27  ;;  %v10691_v60 = vrot.slane %v2561_v7, %v9559_v31  ;;  %v2343_v28 = vrot.slane %v2315_v59, %v9559_v31 }
 0x18c   :  { %v2344_v17 = vcombine.high %v2322_v34, %v2322_v34  ;;  %v2492_v8 = vcombine.low %v2280_v33, %v2322_v34  ;;  %v2345_v35 = vcombine.high %v2336_v47, %v2336_v47  ;;  %v2170_v37 = vrot.slane %v2061_v27, %v9559_v31 }
 0x18d   :  { %v2394_v57 = vcombine.low %v10678_v30, %v10686_v43  ;;  %v2177_v45 = vrot.slane %v2149_v54, %v9559_v31  ;;  %v2522_v41 = vrot.slane %v2343_v28, %v9559_v31  ;;  %v10701_v11 = vrot.slane %v2562_v22, %v9559_v31 }
 0x18e   :  { %v2493_v52 = vcombine.low %v2336_v47, %v2344_v17  ;;  %v2501_v12 = vrot.slane %v2492_v8, %v9559_v31  ;;  %v2494_v51 = vcombine.low %v2345_v35, %v2329_v13  ;;  %v2673_v25 = vrot.slane %v2345_v35, %v9559_v31 }
 0x18f   :  { %v2178_v10 = vcombine.low %v10639_v46, %v2170_v37  ;;  %v2179_v55 = vcombine.high %v10639_v46, %v2170_v37  ;;  %v2180_v27 = vcombine.low %v2163_v6, %v2177_v45  ;;  %v2181_v24 = vcombine.high %v2163_v6, %v2177_v45 }
 0x190   :  { %v2508_v44 = vrot.slane %v2493_v52, %v9559_v31  ;;  %v2577_v15 = vcombine.low %v10691_v60, %v10701_v11  ;;  %v2515_v63 = vrot.slane %v2494_v51, %v9559_v31  ;;  %v2680_v26 = vrot.slane %v2673_v25, %v9559_v31 }
 0x191   :  { %v2188_v38 = vrot.slane %v2178_v10, %v9559_v31  ;;  %v2202_v36 = vrot.slane %v2179_v55, %v9559_v31  ;;  %v2195_v0 = vrot.slane %v2180_v27, %v9559_v31  ;;  %v2209_v46 = vrot.slane %v2181_v24, %v9559_v31 }
 0x192   :  { %v2523_v20 = vcombine.low %v2501_v12, %v2508_v44  ;;  %v2612_v50 = vcombine.high %v2501_v12, %v2508_v44  ;;  %v2524_v48 = vcombine.low %v2515_v63, %v2522_v41  ;;  %v2613_v21 = vcombine.high %v2515_v63, %v2515_v63 }
 0x193   :  { %v2395_v19 = vcombine.low %v2188_v38, %v2202_v36  ;;  %v7755_v18 = vcombine.high %v2188_v38, %v2202_v36  ;;  %v2211_v61 = vcombine.high %v2195_v0, %v2195_v0  ;;  %v2213_v1 = vcombine.high %v2209_v46, %v2209_v46 }
 0x194   :  { %v2531_v2 = vrot.slane %v2523_v20, %v9559_v31  ;;  %v2620_v33 = vrot.slane %v2612_v50, %v9559_v31  ;;  %v2538_v62 = vrot.slane %v2524_v48, %v9559_v31  ;;  %v2627_v49 = vrot.slane %v2613_v21, %v9559_v31 }
 0x195   :  { %v2397_v7 = vcombine.low %v2195_v0, %v2209_v46  ;;  %v2404_v32 = vrot.slane %v2395_v19, %v9559_v31  ;;  %v2411_v5 = vrot.slane %v7755_v18, %v9559_v31  ;;  %v2425_v6 = vrot.slane %v2211_v61, %v9559_v31 }
 0x196   :  { %v2681_v58 = vcombine.high %v2531_v2, %v2680_v26  ;;  %v2443_v40 = vcombine.low %v2213_v1, %v10650_v16  ;;  %v2460_v22 = vrot.slane %v10661_v9, %v9559_v31  ;;  %v2539_v59 = vcombine.low %v2531_v2, %v2538_v62 }
 0x197   :  { %v2418_v34 = vrot.slane %v2397_v7, %v9559_v31  ;;  %v2657_v13 = vrot.slane %v2195_v0, %v9559_v31  ;;  %v2426_v47 = vcombine.low %v2404_v32, %v2411_v5  ;;  %v2578_v28 = vcombine.high %v2404_v32, %v2411_v5 }
 0x198   :  { %v2453_v54 = vrot.slane %v2443_v40, %v9559_v31  ;;  %v2628_v17 = vcombine.low %v2620_v33, %v2627_v49  ;;  %v2650_v37 = vcombine.high %v10678_v30, %v10686_v43  ;;  %v2490_v12 = vrot.slane %v2476_v29, %v9559_v31 }
 0x199   :  { %v2427_v8 = vcombine.low %v2418_v34, %v2425_v6  ;;  %v2579_v35 = vcombine.high %v2418_v34, %v2418_v34  ;;  %v2434_v16 = vrot.slane %v2426_v47, %v9559_v31  ;;  %v2664_v52 = vrot.slane %v2657_v13, %v9559_v31 }
 0x19a   :  { %v2475_v45 = vcombine.low %v2453_v54, %v2460_v22  ;;  %v2595_v9 = vcombine.high %v2453_v54, %v2460_v22  ;;  %v2586_v51 = vrot.slane %v2578_v28, %v9559_v31  ;;  %v2610_v55 = vrot.slane %v2596_v42, %v9559_v31  ;;  %v3044_v28 = vld [vmem:[%s11874_s1 + $0x88] sm:$0xf] }
 0x19b   :  { %v2441_v41 = vrot.slane %v2427_v8, %v9559_v31  ;;  %v2593_v25 = vrot.slane %v2579_v35, %v9559_v31  ;;  %v2665_v27 = vcombine.high %v2434_v16, %v2664_v52  ;;  %v2642_v29 = vsel %vm2633_vm2, %v2628_v17, -inf  ;;  %v2914_v52 = vld [vmem:[%s11874_s1 + $0x84] sm:$0xf] }
 0x19c   :  { %v2603_v10 = vrot.slane %v2595_v9, %v9559_v31  ;;  %v2483_v44 = vrot.slane %v2475_v45, %v9559_v31  ;;  %v2695_v26 = vsel %vm2686_vm3, %v2681_v58, -inf  ;;  %v2553_v53 = vsel %vm2544_vm4, %v2539_v59, -inf }
 0x19d   :  { %v2442_v24 = vcombine.low %v2434_v16, %v2441_v41  ;;  %v2594_v63 = vcombine.low %v2586_v51, %v2593_v25  ;;  %v2687_v20 = vsel %vm2686_vm3, %v2665_v27, -inf  ;;  %v3045_v16 = vld [vmem:[%s11874_s1 + $0xc8] sm:$0xf] }
 0x19e   :  { %v2611_v38 = vcombine.low %v2603_v10, %v2610_v55  ;;  %v2666_v36 = vcombine.high %v2483_v44, %v2490_v12  ;;  %v2491_v50 = vcombine.low %v2483_v44, %v2490_v12  ;;  %v2688_v46 = vmax.f32 %v2650_v37, %v2687_v20  ;;  %v2915_v12 = vld [vmem:[%s11874_s1 + $0xc4] sm:$0xf] }
 0x19f   :  { %v2634_v0 = vsel %vm2633_vm2, %v2594_v63, -inf  ;;  %v2545_v14 = vsel %vm2544_vm4, %v2442_v24, -inf  ;;  %v7766_v44 = vcombine.low %v3044_v28, %v3045_v16  ;;  %v7758_v63 = vcombine.low %v2914_v52, %v2915_v12  ;;  %v9417_v28 = vld [vmem:[%s11873_s0 + $0x10] sm:$0xff] }
 0x1a0   :  { %v2635_v31 = vmax.f32 %v2577_v15, %v2634_v0  ;;  %v2643_v42 = vmax.f32 %v2611_v38, %v2642_v29  ;;  %v2696_v48 = vmax.f32 %v2666_v36, %v2695_v26  ;;  %v2546_v21 = vmax.f32 %v2394_v57, %v2545_v14  ;;  %v3046_v29 = vld [vmem:[%s11874_s1 + $0x108] sm:$0xf]  ;;  %v9415_v38 = vld [vmem:[%s11873_s0] sm:$0xff]  ;;  %v3158_v16 = vld [vmem:[%s11875_s2 + $0x30] sm:$0xff] }
 0x1a1   :  { %v2689_v19 = vrot.slane %v2688_v46, 4  ;;  %v2554_v18 = vmax.f32 %v2491_v50, %v2553_v53  ;;  %v3047_v26 = vld [vmem:[%s11874_s1 + $0x148] sm:$0xf]  ;;  %v2916_v0 = vld [vmem:[%s11874_s1 + $0x104] sm:$0xf] }
 0x1a2   :  { %v2636_v2 = vrot.slane %v2635_v31, 4  ;;  %v2644_v33 = vrot.slane %v2643_v42, 4  ;;  %v2697_v61 = vrot.slane %v2696_v48, 4  ;;  %v2547_v1 = vrot.slane %v2546_v21, 4  ;;  %v9416_v36 = vld [vmem:[%s11873_s0 + $0x8] sm:$0xff] }
 0x1a3   :  { %v2690_v62 = vmax.f32 %v2688_v46, %v2689_v19  ;;  %v2555_v49 = vrot.slane %v2554_v18, 4  ;;  %v2910_v20 = vpack.c.bf16 %v9416_v36, %v9415_v38  ;;  %v2917_v46 = vld [vmem:[%s11874_s1 + $0x144] sm:$0xf]  ;;  %v7767_v14 = vcombine.low %v3046_v29, %v3047_v26  ;;  %v3050_v19 = vld [vmem:[%s11874_s1 + $0x208] sm:$0xf] }
 0x1a4   :  { %v2637_v7 = vmax.f32 %v2635_v31, %v2636_v2  ;;  %v2645_v32 = vmax.f32 %v2643_v42, %v2644_v33  ;;  %v2698_v58 = vmax.f32 %v2696_v48, %v2697_v61  ;;  %v2548_v5 = vmax.f32 %v2546_v21, %v2547_v1  ;;  %v3048_v31 = vld [vmem:[%s11874_s1 + $0x188] sm:$0xf]  ;;  %v2920_v2 = vld [vmem:[%s11874_s1 + $0x204] sm:$0xf] }
 0x1a5   :  { %v2691_v60 = vrot.slane %v2690_v62, 2  ;;  %v2556_v11 = vmax.f32 %v2554_v18, %v2555_v49  ;;  %v7759_v53 = vcombine.low %v2916_v0, %v2917_v46  ;;  %v3049_v42 = vld [vmem:[%s11874_s1 + $0x1c8] sm:$0xf]  ;;  %v2921_v33 = vld [vmem:[%s11874_s1 + $0x244] sm:$0xf] }
 0x1a6   :  { %v2638_v15 = vrot.slane %v2637_v7, 2  ;;  %v2646_v6 = vrot.slane %v2645_v32, 2  ;;  %v2699_v40 = vrot.slane %v2698_v58, 2  ;;  %v2549_v22 = vrot.slane %v2548_v5, 2  ;;  %v3051_v18 = vld [vmem:[%s11874_s1 + $0x248] sm:$0xf] }
 0x1a7   :  { %v2692_v30 = vmax.f32 %v2690_v62, %v2691_v60  ;;  %v2557_v43 = vrot.slane %v2556_v11, 2  ;;  %v7768_v48 = vcombine.low %v3048_v31, %v3049_v42  ;;  %v7769_v61 = vcombine.low %v3050_v19, %v3051_v18  ;;  %v3052_v62 = vld [vmem:[%s11874_s1 + $0x288] sm:$0xf] }
 0x1a8   :  { %v2639_v57 = vmax.f32 %v2637_v7, %v2638_v15  ;;  %v2647_v59 = vmax.f32 %v2645_v32, %v2646_v6  ;;  %v2700_v34 = vmax.f32 %v2698_v58, %v2699_v40  ;;  %v2550_v13 = vmax.f32 %v2548_v5, %v2549_v22  ;;  %v3053_v49 = vld [vmem:[%s11874_s1 + $0x2c8] sm:$0xf]  ;;  %v2922_v7 = vld [vmem:[%s11874_s1 + $0x284] sm:$0xf] }
 0x1a9   :  { %v2693_v47 = vrot.slane %v2692_v30, 1  ;;  %v2558_v54 = vmax.f32 %v2556_v11, %v2557_v43  ;;  %v7761_v1 = vcombine.low %v2920_v2, %v2921_v33  ;;  %v2923_v32 = vld [vmem:[%s11874_s1 + $0x2c4] sm:$0xf]  ;;  %v7770_v58 = vcombine.low %v3052_v62, %v3053_v49  ;;  %v3054_v60 = vld [vmem:[%s11874_s1 + $0x308] sm:$0xf] }
 0x1aa   :  { %v2640_v17 = vrot.slane %v2639_v57, 1  ;;  %v2648_v8 = vrot.slane %v2647_v59, 1  ;;  %v2701_v35 = vrot.slane %v2700_v34, 1  ;;  %v2551_v37 = vrot.slane %v2550_v13, 1  ;;  %v3055_v11 = vld [vmem:[%s11874_s1 + $0x348] sm:$0xf] }
 0x1ab   :  { %v2694_v45 = vmax.f32 %v2692_v30, %v2693_v47  ;;  %v2559_v9 = vrot.slane %v2558_v54, 1  ;;  %v7762_v5 = vcombine.low %v2922_v7, %v2923_v32  ;;  %v2924_v15 = vld [vmem:[%s11874_s1 + $0x304] sm:$0xf]  ;;  %v7771_v40 = vcombine.low %v3054_v60, %v3055_v11  ;;  %v3056_v30 = vld [vmem:[%s11874_s1 + $0x388] sm:$0xf] }
 0x1ac   :  { %v2641_v41 = vmax.f32 %v2639_v57, %v2640_v17  ;;  %v2649_v51 = vmax.f32 %v2647_v59, %v2648_v8  ;;  %v2702_v25 = vmax.f32 %v2700_v34, %v2701_v35  ;;  %v2552_v10 = vmax.f32 %v2550_v13, %v2551_v37  ;;  %v2925_v6 = vld [vmem:[%s11874_s1 + $0x344] sm:$0xf]  ;;  %v3057_v43 = vld [vmem:[%s11874_s1 + $0x3c8] sm:$0xf]  ;;  %v9418_v17 = vld [vmem:[%s11873_s0 + $0x18] sm:$0xff] }
 0x1ad   :  { %v2560_v55 = vmax.f32 %v2558_v54, %v2559_v9  ;;  %v7763_v22 = vcombine.low %v2924_v15, %v2925_v6  ;;  %v2926_v57 = vld [vmem:[%s11874_s1 + $0x384] sm:$0xf]  ;;  %v7772_v34 = vcombine.low %v3056_v30, %v3057_v43  ;;  %v3156_v54 = vld [vmem:[%s11875_s2 + $0x10] sm:$0xff]  ;;  %v2911_v8 = vpack.c.bf16 %v9418_v17, %v9417_v28 }
 0x1ae   :  { %v2709_v27 = vsel %vm59_vm1, %v2649_v51, %v2641_v41  ;;  %v2713_v24 = vsel %vm59_vm1, %v2702_v25, %v2694_v45  ;;  %v2927_v59 = vld [vmem:[%s11874_s1 + $0x3c4] sm:$0xf] }
 0x1af   :  { %2834 = vmatprep.mubr.f32.mxu1 %v2709_v27  ;;  %8306 = vmatmul.mubr.f32.vlgmr.msra.gmra.mrb[8].mxu0 %v2713_v24  ;;  %v2705_v50 = vsel %vm59_vm1, %v2560_v55, %v2552_v10  ;;  %v7764_v13 = vcombine.low %v2926_v57, %v2927_v59  ;;  %v3155_v47 = vld [vmem:[%s11875_s2] sm:$0xff] }
 0x1b0   :  { %8329 = vmatpush3.bf16.msra.mxu0 %v10611_v23  ;;  %2835 = vmatmul.mubr.f32.vlgmr.msra.gmra.mrb[8].mxu1 %v2705_v50  ;;  %v2918_v23 = vld [vmem:[%s11874_s1 + $0x184] sm:$0xf]  ;;  %v10864_v35 = vpack.c.bf16 %v3156_v54, %v3155_v47 }
 0x1b1   :  { %8309 = vmatpush3.bf16.msra.mxu1 %v10620_v56  ;;  %8330 = vmatprep.subr.bf16.mxu0 %v7766_v44  ;;  %v2919_v56 = vld [vmem:[%s11874_s1 + $0x1c4] sm:$0xf] }
 0x1b2   :  { %8310 = vmatprep.subr.bf16.mxu1 %v7758_v63  ;;  %8344 = vmatprep.mubr.bf16.mxu0 %v2910_v20  ;;  %v7760_v21 = vcombine.low %v2918_v23, %v2919_v56  ;;  %v3157_v37 = vld [vmem:[%s11875_s2 + $0x20] sm:$0xff] }
 0x1b3   :  { %8324 = vmatprep.mubr.bf16.mxu1 %v2910_v20  ;;  %v10876_v45 = vpack.c.bf16 %v3158_v16, %v3157_v37  ;;  %v7756_v41 = vld [vmem:[%s11878_s5 + $0x4] ss:$0 sm:$0xff] }
 0x1b4   :  { %8331 = vmatpush3.bf16.msra.mxu0 %v7766_v44  ;;  %v2987_v44 = vpop.permute.xlu0 %2986 }
 0x1b5   :  { %8311 = vmatpush3.bf16.msra.mxu1 %v7758_v63  ;;  %8332 = vmatprep.subr.bf16.mxu0 %v7767_v14 }
 0x1b6   :  { %8312 = vmatprep.subr.bf16.mxu1 %v7759_v53 }
 0x1b8   :  { %8333 = vmatpush3.bf16.msra.mxu0 %v7767_v14  ;;  %v2989_v27 = vpop.permute.xlu0 %2988 }
 0x1b9   :  { %8313 = vmatpush3.bf16.msra.mxu1 %v7759_v53  ;;  %8334 = vmatprep.subr.bf16.mxu0 %v7768_v48  ;;  %v2991_v24 = vsel %vm2990_vm5, %v2987_v44, %v2989_v27 }
 0x1ba   :  { %8314 = vmatprep.subr.bf16.mxu1 %v7760_v21 }
 0x1bc   :  { %8335 = vmatpush3.bf16.msra.mxu0 %v7768_v48 }
 0x1bd   :  { %8315 = vmatpush3.bf16.msra.mxu1 %v7760_v21  ;;  %8336 = vmatprep.subr.bf16.mxu0 %v7769_v61 }
 0x1be   :  { %8316 = vmatprep.subr.bf16.mxu1 %v7761_v1 }
 0x1c0   :  { %8337 = vmatpush3.bf16.msra.mxu0 %v7769_v61 }
 0x1c1   :  { %8317 = vmatpush3.bf16.msra.mxu1 %v7761_v1  ;;  %8338 = vmatprep.subr.bf16.mxu0 %v7770_v58 }
 0x1c2   :  { %8318 = vmatprep.subr.bf16.mxu1 %v7762_v5 }
 0x1c4   :  { %8339 = vmatpush3.bf16.msra.mxu0 %v7770_v58 }
 0x1c5   :  { %8319 = vmatpush3.bf16.msra.mxu1 %v7762_v5  ;;  %8340 = vmatprep.subr.bf16.mxu0 %v7771_v40 }
 0x1c6   :  { %8320 = vmatprep.subr.bf16.mxu1 %v7763_v22 }
 0x1c8   :  { %8341 = vmatpush3.bf16.msra.mxu0 %v7771_v40 }
 0x1c9   :  { %8321 = vmatpush3.bf16.msra.mxu1 %v7763_v22  ;;  %8342 = vmatprep.subr.bf16.mxu0 %v7772_v34 }
 0x1ca   :  { %8322 = vmatprep.subr.bf16.mxu1 %v7764_v13 }
 0x1cc   :  { %8343 = vmatpush3.bf16.msra.mxu0 %v7772_v34 }
 0x1cd   :  { %8323 = vmatpush3.bf16.msra.mxu1 %v7764_v13  ;;  %8781 = vmatprep.subr.bf16.mxu0 %v9447_v4 }
 0x1ce   :  { %8745 = vmatprep.subr.bf16.mxu1 %v9447_v4 }
 0x1cf   :  { %8345 = vmatmul.mubr.bf16.vlgmr.msra.gmra.mrb[12].mxu0 %v2911_v8 }
 0x1d0   :  { %8325 = vmatmul.mubr.bf16.vlgmr.msra.gmra.mrb[12].mxu1 %v2911_v8  ;;  %8783 = vmatpush3.bf16.msra.mxu0 %v10864_v35 }
 0x1d1   :  { %8747 = vmatpush3.bf16.msra.mxu1 %v10864_v35  ;;  %8356 = vmatprep.mubr.msk.f32.mxu1 %vm9444_vm0, %v9443_v3 }
 0x1d2   :  { %8748 = vmatprep.subr.bf16.mxu1 %v9447_v4  ;;  %8784 = vmatprep.subr.bf16.mxu0 %v9447_v4 }
 0x1d3   :  { %8422 = vmatprep.mubr.msk.f32.mxu0 %vm9444_vm0, %v9443_v3 }
 0x1d4   :  { %8786 = vmatpush3.bf16.msra.mxu0 %v10876_v45 }
 0x1d5   :  { %8750 = vmatpush3.bf16.msra.mxu1 %v10876_v45  ;;  %8793 = vmatprep.subr.bf16.mxu0 %v9447_v4 }
 0x1d6   :  { %8751 = vmatprep.subr.bf16.mxu1 %v9447_v4 }
 0x1d8   :  { %8357 = vmatmul.mubr.f32.vlgmr.msra.gmra.mrb[10].mxu1 %v9443_v3 }
 0x1d9   :  { %8753 = vmatpush3.bf16.msra.mxu1 %v10864_v35  ;;  %8367 = vmatprep.mubr.msk.f32.mxu1 %vm9444_vm0, %v9443_v3 }
 0x1da   :  { %8754 = vmatprep.subr.bf16.mxu1 %v9447_v4 }
 0x1dd   :  { %8756 = vmatpush3.bf16.msra.mxu1 %v10876_v45 }
 0x1de   :  { %8757 = vmatprep.subr.bf16.mxu1 %v9447_v4 }
 0x282   :  { %v2906_v9 = vpop.f32.mrb[8].mxu0 }
 0x283   :  { %v7963_v52 = vpop.f32.mrb[8].mxu1  ;;  %v8307_v12 = vpop.f32.mrb[9].mxu0 }
 0x284   :  { %v7964_v51 = vpop.f32.mrb[9].mxu1 }
 0x285   :  { %v7965_v25 = vadd.f32 %v7964_v51, %v7963_v52 }
 0x287   :  { %v2837_v10 = vadd.f32 %v7965_v25, %v7756_v41 }
 0x289   :  { %v10898_v55 = vadd.f32 %v2906_v9, %v2837_v10 }
 0x2a2   :  { %v8346_v63 = vpop.f32.mrb[12].mxu0 }
 0x2a3   :  { %v4292_v29 = vrot.slane %v8346_v63, 7  ;;  %v4581_v26 = vrot.slane %v8346_v63, 3  ;;  %v4726_v38 = vrot.slane %v8346_v63, 1  ;;  %v8326_v36 = vpop.f32.mrb[12].mxu1  ;;  %v3140_v20 = vpop.f32.mrb[13].mxu0  ;;  %v4437_v50 = vrot.slane %v8346_v63, 5 }
 0x2a4   :  { %v3036_v0 = vadd.f32 %v8326_v36, %v2991_v24  ;;  %v4436_v46 = vrot.slane %v3140_v20, 5  ;;  %v4580_v14 = vrot.slane %v3140_v20, 3  ;;  %v4725_v53 = vrot.slane %v3140_v20, 1  ;;  %v3027_v31 = vpop.f32.mrb[13].mxu1  ;;  %v8347_v42 = vpop.f32.mrb[14].mxu0 }
 0x2a5   :  { %v3028_v23 = vadd.f32 %v3027_v31, %v2991_v24  ;;  %v3162_v56 = vrot.slane %v8347_v42, 7  ;;  %v3439_v48 = vrot.slane %v8347_v42, 3  ;;  %v3584_v21 = vrot.slane %v8347_v42, 1  ;;  %v8327_v19 = vpop.f32.mrb[14].mxu1  ;;  %v3143_v18 = vpop.f32.mrb[15].mxu0 }
 0x2a6   :  { %v3039_v2 = vadd.f32 %v8327_v19, %v2991_v24  ;;  %v3294_v33 = vrot.slane %v3143_v18, 5  ;;  %v3438_v61 = vrot.slane %v3143_v18, 3  ;;  %v3583_v1 = vrot.slane %v3143_v18, 1  ;;  %v3030_v62 = vpop.f32.mrb[15].mxu1 }
 0x2a7   :  { %v3031_v49 = vadd.f32 %v3030_v62, %v2991_v24  ;;  %v3161_v7 = vrot.slane %v3143_v18, 7  ;;  %v10900_v32 = vadd.f32 %v3162_v56, %v3036_v0  ;;  %v3295_v58 = vrot.slane %v8347_v42, 5 }
 0x2a8   :  { %v10902_v5 = vadd.f32 %v3294_v33, %v3028_v23  ;;  %v10904_v60 = vadd.f32 %v3438_v61, %v3028_v23  ;;  %v10906_v11 = vadd.f32 %v3439_v48, %v3036_v0  ;;  %v10908_v15 = vadd.f32 %v3583_v1, %v3028_v23 }
 0x2a9   :  { %v10910_v6 = vadd.f32 %v3161_v7, %v3028_v23  ;;  %v10912_v40 = vadd.f32 %v3295_v58, %v3036_v0  ;;  %v10914_v22 = vadd.f32 %v3584_v21, %v3036_v0  ;;  %v4291_v30 = vrot.slane %v3140_v20, 7 }
 0x2aa   :  { %v10916_v43 = vadd.f32 %v4292_v29, %v3039_v2  ;;  %v10918_v57 = vadd.f32 %v4436_v46, %v3031_v49  ;;  %v10920_v59 = vadd.f32 %v4437_v50, %v3039_v2  ;;  %v10922_v34 = vadd.f32 %v4580_v14, %v3031_v49 }
 0x2ab   :  { %v3236_v13 = vpop.f32.mrb[10].mxu1  ;;  %v10924_v47 = vadd.f32 %v4291_v30, %v3031_v49  ;;  %v10926_v54 = vadd.f32 %v4581_v26, %v3039_v2  ;;  %v10928_v28 = vadd.f32 %v4725_v53, %v3031_v49  ;;  %v10930_v17 = vadd.f32 %v4726_v38, %v3039_v2 }
 0x2ac   :  { %v3241_v8 = vrot.slane %v3236_v13, 1  ;;  %v8358_v37 = vpop.f32.mrb[11].mxu1  ;;  %v3244_v9 = vadd.f32 %v3236_v13, %v10910_v6 }
 0x2ae   :  { %v3245_v16 = vadd.f32 %v3241_v8, %v10900_v32  ;;  %v7773_v51 = vmul.f32 -1.442695, %v3244_v9 }
 0x2b0   :  { %9083 = vtanh.f32 %v3245_v16  ;;  %v7774_v41 = vmul.f32 -1.442695, %v3245_v16 }
 0x2b1   :  { %9085 = vtanh.f32 %v3244_v9 }
 0x2b2   :  { %9087 = vpow2.f32 %v7774_v41 }
 0x2b3   :  { %9089 = vpow2.f32 %v7773_v51 }
 0x2ba   :  { %v9084_v52 = vpop.eup %9083 }
 0x2bb   :  { %3266 = vrot.lane.b32.xlu1 %v9084_v52, %s9449_s18  ;;  %v9086_v12 = vpop.eup %9085 }
 0x2bc   :  { %v9088_v25 = vpop.eup %9087 }
 0x2bd   :  { %v3253_v10 = vadd.f32 1.0, %v9088_v25  ;;  %v9090_v44 = vpop.eup %9089 }
 0x2be   :  { %v3252_v27 = vadd.f32 1.0, %v9090_v44 }
 0x2bf   :  { %3264 = vrot.lane.b32.xlu1 %v9086_v12, %s9449_s18  ;;  %9091 = vrcp.f32 %v3253_v10 }
 0x2c0   :  { %9093 = vrcp.f32 %v3252_v27 }
 0x2c9   :  { %v9092_v24 = vpop.eup %9091 }
 0x2ca   :  { %v9094_v26 = vpop.eup %9093  ;;  %v3261_v20 = vmul.f32 0.0, %v9092_v24 }
 0x2cb   :  { %v3260_v46 = vmul.f32 0.0, %v9094_v26 }
 0x32d   :  { %v3267_v63 = vpop.permute.xlu1 %3266 }
 0x32e   :  { %v3271_v29 = vmul.f32 %v9092_v24, %v3267_v63 }
 0x330   :  { %3276 = vrot.lane.b32.xlu0 %v3271_v29, %s9449_s18 }
 0x331   :  { %v3265_v38 = vpop.permute.xlu1 %3264 }
 0x332   :  { %v3270_v36 = vmul.f32 %v9094_v26, %v3265_v38 }
 0x334   :  { %3274 = vrot.lane.b32.xlu1 %v3270_v36, %s9449_s18 }
 0x3a2   :  { %v3277_v50 = vpop.permute.xlu0 %3276 }
 0x3a3   :  { %v3281_v0 = vadd.f32 %v3277_v50, %v3261_v20 }
 0x3a5   :  { %9095 = vtanh.f32 %v3281_v0  ;;  %v3401_v44 = vrot.slane %v3281_v0, 7 }
 0x3a6   :  { %v3275_v14 = vpop.permute.xlu1 %3274 }
 0x3a7   :  { %v3280_v53 = vadd.f32 %v3275_v14, %v3260_v46 }
 0x3a9   :  { %9097 = vtanh.f32 %v3280_v53 }
 0x3af   :  { %v9096_v31 = vpop.eup %9095 }
 0x3b0   :  { %3288 = vrot.lane.b32.xlu0 %v9096_v31, %s9449_s18 }
 0x3b3   :  { %v9098_v42 = vpop.eup %9097 }
 0x3b4   :  { %3286 = vrot.lane.b32.xlu1 %v9098_v42, %s9449_s18 }
 0x422   :  { %v3289_v23 = vpop.permute.xlu0 %3288 }
 0x423   :  { %v10940_v56 = vmul.f32 %v9092_v24, %v3289_v23  ;;  %v3400_v24 = vrot.slane %v3280_v53, 7 }
 0x425   :  { %v3302_v19 = vrot.slane %v10940_v56, 7 }
 0x426   :  { %v3287_v48 = vpop.permute.xlu1 %3286 }
 0x427   :  { %v10942_v21 = vmul.f32 %v9094_v26, %v3287_v48 }
 0x429   :  { %v3303_v18 = vsel %vm59_vm1, %v3302_v19, %v10942_v21 }
 0x42a   :  { %3304 = vrot.lane.b32.xlu0 %v3303_v18, %s9450_s19 }
 0x49c   :  { %v3305_v2 = vpop.permute.xlu0 %3304 }
 0x49d   :  { %8368 = vmatmul.mubr.msk.f32.vlgmr.msra.gmra.mrb[16].mxu1 %vm3167_vm6, %v3305_v2 }
 0x49e   :  { %8759 = vmatpush3.bf16.msra.mxu1 %v10864_v35  ;;  %8378 = vmatprep.mubr.msk.f32.mxu1 %vm9444_vm0, %v9443_v3 }
 0x49f   :  { %8760 = vmatprep.subr.bf16.mxu1 %v9447_v4 }
 0x4a2   :  { %8762 = vmatpush3.bf16.msra.mxu1 %v10876_v45 }
 0x4a3   :  { %8763 = vmatprep.subr.bf16.mxu1 %v9447_v4 }
 0x570   :  { %v3374_v33 = vpop.f32.mrb[16].mxu1 }
 0x571   :  { %v3379_v61 = vrot.slane %v3374_v33, 7  ;;  %v3383_v1 = vadd.f32 %v3374_v33, %v10912_v40  ;;  %v8369_v62 = vpop.f32.mrb[17].mxu1 }
 0x573   :  { %v3382_v49 = vadd.f32 %v3379_v61, %v10902_v5  ;;  %9099 = vtanh.f32 %v3383_v1  ;;  %v7777_v30 = vmul.f32 -1.442695, %v3383_v1 }
 0x575   :  { %9101 = vtanh.f32 %v3382_v49  ;;  %v7776_v13 = vmul.f32 -1.442695, %v3382_v49 }
 0x576   :  { %9103 = vpow2.f32 %v7777_v30 }
 0x577   :  { %9105 = vpow2.f32 %v7776_v13 }
 0x57d   :  { %v9100_v7 = vpop.eup %9099 }
 0x57e   :  { %3410 = vrot.lane.b32.xlu0 %v9100_v7, %s9449_s18 }
 0x57f   :  { %v9102_v58 = vpop.eup %9101 }
 0x580   :  { %3408 = vrot.lane.b32.xlu1 %v9102_v58, %s9449_s18  ;;  %v9104_v8 = vpop.eup %9103 }
 0x581   :  { %v9106_v37 = vpop.eup %9105  ;;  %v3391_v16 = vadd.f32 1.0, %v9104_v8 }
 0x582   :  { %v3390_v9 = vadd.f32 1.0, %v9106_v37 }
 0x583   :  { %9107 = vrcp.f32 %v3391_v16 }
 0x584   :  { %9109 = vrcp.f32 %v3390_v9 }
 0x58d   :  { %v9108_v52 = vpop.eup %9107 }
 0x58e   :  { %v9110_v51 = vpop.eup %9109  ;;  %v3405_v27 = vmul.f32 %v9108_v52, %v3401_v44 }
 0x58f   :  { %v3404_v26 = vmul.f32 %v9110_v51, %v3400_v24 }
 0x5f0   :  { %v3411_v12 = vpop.permute.xlu0 %3410 }
 0x5f1   :  { %v3415_v41 = vmul.f32 %v9108_v52, %v3411_v12 }
 0x5f2   :  { %v3409_v25 = vpop.permute.xlu1 %3408 }
 0x5f3   :  { %3420 = vrot.lane.b32.xlu0 %v3415_v41, %s9449_s18  ;;  %v3414_v10 = vmul.f32 %v9110_v51, %v3409_v25 }
 0x5f5   :  { %3418 = vrot.lane.b32.xlu1 %v3414_v10, %s9449_s18 }
 0x665   :  { %v3421_v63 = vpop.permute.xlu0 %3420 }
 0x666   :  { %v3425_v29 = vadd.f32 %v3421_v63, %v3405_v27 }
 0x667   :  { %v3419_v38 = vpop.permute.xlu1 %3418 }
 0x668   :  { %9111 = vtanh.f32 %v3425_v29  ;;  %v3424_v36 = vadd.f32 %v3419_v38, %v3404_v26  ;;  %v3546_v25 = vrot.slane %v3425_v29, 7 }
 0x66a   :  { %9113 = vtanh.f32 %v3424_v36 }
 0x672   :  { %v9112_v20 = vpop.eup %9111 }
 0x673   :  { %3432 = vrot.lane.b32.xlu0 %v9112_v20, %s9449_s18 }
 0x674   :  { %v9114_v50 = vpop.eup %9113 }
 0x675   :  { %3430 = vrot.lane.b32.xlu1 %v9114_v50, %s9449_s18 }
 0x6e5   :  { %v3433_v46 = vpop.permute.xlu0 %3432 }
 0x6e6   :  { %v10965_v0 = vmul.f32 %v9108_v52, %v3433_v46 }
 0x6e7   :  { %v3431_v14 = vpop.permute.xlu1 %3430 }
 0x6e8   :  { %v10963_v31 = vmul.f32 %v9110_v51, %v3431_v14  ;;  %v3545_v51 = vrot.slane %v3424_v36, 7 }
 0x6ea   :  { %v3446_v53 = vrot.slane %v10963_v31, 1  ;;  %v5432_v29 = vsel %vm5431_vm7, %v10942_v21, %v10963_v31 }
 0x6ec   :  { %v3447_v42 = vsel %vm59_vm1, %v10965_v0, %v3446_v53  ;;  %v5433_v53 = vsel %vm5431_vm7, %v10940_v56, %v10965_v0 }
 0x6ed   :  { %3448 = vrot.lane.b32.xlu1 %v3447_v42, %s9450_s19 }
 0x75f   :  { %v3449_v23 = vpop.permute.xlu1 %3448 }
 0x760   :  { %8379 = vmatmul.mubr.msk.f32.vlgmr.msra.gmra.mrb[18].mxu1 %vm3167_vm6, %v3449_v23 }
 0x761   :  { %8765 = vmatpush3.bf16.msra.mxu1 %v10864_v35  ;;  %8389 = vmatprep.mubr.msk.f32.mxu1 %vm9444_vm0, %v9443_v3 }
 0x762   :  { %8766 = vmatprep.subr.bf16.mxu1 %v9447_v4 }
 0x765   :  { %8768 = vmatpush3.bf16.msra.mxu1 %v10876_v45 }
 0x766   :  { %8769 = vmatprep.subr.bf16.mxu1 %v9447_v4 }
 0x833   :  { %v3518_v48 = vpop.f32.mrb[18].mxu1 }
 0x834   :  { %v3523_v19 = vrot.slane %v3518_v48, 6  ;;  %v3524_v18 = vrot.slane %v3518_v48, 7  ;;  %v8380_v2 = vpop.f32.mrb[19].mxu1 }
 0x836   :  { %v3527_v33 = vadd.f32 %v3523_v19, %v10904_v60  ;;  %v3528_v61 = vadd.f32 %v3524_v18, %v10906_v11 }
 0x838   :  { %9115 = vtanh.f32 %v3527_v33  ;;  %v7779_v49 = vmul.f32 -1.442695, %v3527_v33  ;;  %v7780_v7 = vmul.f32 -1.442695, %v3528_v61 }
 0x839   :  { %9117 = vtanh.f32 %v3528_v61 }
 0x83a   :  { %9119 = vpow2.f32 %v7779_v49 }
 0x83b   :  { %9121 = vpow2.f32 %v7780_v7 }
 0x842   :  { %v9116_v1 = vpop.eup %9115 }
 0x843   :  { %v9118_v62 = vpop.eup %9117  ;;  %3553 = vrot.lane.b32.xlu0 %v9116_v1, %s9449_s18 }
 0x844   :  { %3555 = vrot.lane.b32.xlu1 %v9118_v62, %s9449_s18  ;;  %v9120_v58 = vpop.eup %9119 }
 0x845   :  { %v9122_v30 = vpop.eup %9121  ;;  %v3535_v13 = vadd.f32 1.0, %v9120_v58 }
 0x846   :  { %v3536_v8 = vadd.f32 1.0, %v9122_v30 }
 0x847   :  { %9123 = vrcp.f32 %v3535_v13 }
 0x848   :  { %9125 = vrcp.f32 %v3536_v8 }
 0x851   :  { %v9124_v37 = vpop.eup %9123 }
 0x852   :  { %v9126_v9 = vpop.eup %9125  ;;  %v3549_v10 = vmul.f32 %v9124_v37, %v3545_v51 }
 0x853   :  { %v3550_v44 = vmul.f32 %v9126_v9, %v3546_v25 }
 0x8b5   :  { %v3554_v16 = vpop.permute.xlu0 %3553 }
 0x8b6   :  { %v3556_v52 = vpop.permute.xlu1 %3555  ;;  %v3559_v12 = vmul.f32 %v9124_v37, %v3554_v16 }
 0x8b7   :  { %v3560_v41 = vmul.f32 %v9126_v9, %v3556_v52 }
 0x8b8   :  { %3563 = vrot.lane.b32.xlu0 %v3559_v12, %s9449_s18 }
 0x8b9   :  { %3565 = vrot.lane.b32.xlu1 %v3560_v41, %s9449_s18 }
 0x92a   :  { %v3564_v27 = vpop.permute.xlu0 %3563 }
 0x92b   :  { %v3566_v24 = vpop.permute.xlu1 %3565  ;;  %v3569_v63 = vadd.f32 %v3564_v27, %v3549_v10 }
 0x92c   :  { %v3570_v26 = vadd.f32 %v3566_v24, %v3550_v44 }
 0x92d   :  { %9127 = vtanh.f32 %v3569_v63  ;;  %v3691_v27 = vrot.slane %v3569_v63, 7 }
 0x92e   :  { %9129 = vtanh.f32 %v3570_v26  ;;  %v3692_v24 = vrot.slane %v3570_v26, 7 }
 0x937   :  { %v9128_v38 = vpop.eup %9127 }
 0x938   :  { %v9130_v20 = vpop.eup %9129  ;;  %3575 = vrot.lane.b32.xlu0 %v9128_v38, %s9449_s18 }
 0x939   :  { %3577 = vrot.lane.b32.xlu1 %v9130_v20, %s9449_s18 }
 0x9aa   :  { %v3576_v50 = vpop.permute.xlu0 %3575 }
 0x9ab   :  { %v3578_v46 = vpop.permute.xlu1 %3577  ;;  %v10986_v36 = vmul.f32 %v9124_v37, %v3576_v50 }
 0x9ac   :  { %v10991_v14 = vmul.f32 %v9126_v9, %v3578_v46 }
 0x9ad   :  { %v10998_v42 = vsel %vm5434_vm8, %v5432_v29, %v10986_v36  ;;  %v3591_v23 = vrot.slane %v10986_v36, 2 }
 0x9ae   :  { %v11003_v48 = vsel %vm5434_vm8, %v5433_v53, %v10991_v14  ;;  %v3592_v19 = vrot.slane %v10991_v14, 1 }
 0x9b0   :  { %v3593_v18 = vsel %vm59_vm1, %v3592_v19, %v3591_v23 }
 0x9b1   :  { %3594 = vrot.lane.b32.xlu0 %v3593_v18, %s9450_s19 }
 0xa23   :  { %v3595_v2 = vpop.permute.xlu0 %3594 }
 0xa24   :  { %8390 = vmatmul.mubr.msk.f32.vlgmr.msra.gmra.mrb[20].mxu1 %vm3167_vm6, %v3595_v2 }
 0xa25   :  { %8771 = vmatpush3.bf16.msra.mxu1 %v10864_v35  ;;  %8400 = vmatprep.mubr.msk.f32.mxu1 %vm9444_vm0, %v9443_v3 }
 0xa26   :  { %8772 = vmatprep.subr.bf16.mxu1 %v9447_v4 }
 0xa29   :  { %8774 = vmatpush3.bf16.msra.mxu1 %v10876_v45 }
 0xa2a   :  { %8775 = vmatprep.subr.bf16.mxu1 %v9447_v4 }
 0xaf7   :  { %v3664_v33 = vpop.f32.mrb[20].mxu1 }
 0xaf8   :  { %v3669_v61 = vrot.slane %v3664_v33, 5  ;;  %v3670_v1 = vrot.slane %v3664_v33, 6  ;;  %v8391_v62 = vpop.f32.mrb[21].mxu1 }
 0xafa   :  { %v3673_v49 = vadd.f32 %v3669_v61, %v10908_v15  ;;  %v3674_v7 = vadd.f32 %v3670_v1, %v10914_v22 }
 0xafc   :  { %9131 = vtanh.f32 %v3673_v49  ;;  %v7782_v13 = vmul.f32 -1.442695, %v3673_v49  ;;  %v7783_v8 = vmul.f32 -1.442695, %v3674_v7 }
 0xafd   :  { %9133 = vtanh.f32 %v3674_v7 }
 0xafe   :  { %9135 = vpow2.f32 %v7782_v13 }
 0xaff   :  { %9137 = vpow2.f32 %v7783_v8 }
 0xb06   :  { %v9132_v58 = vpop.eup %9131 }
 0xb07   :  { %v9134_v30 = vpop.eup %9133  ;;  %3699 = vrot.lane.b32.xlu1 %v9132_v58, %s9449_s18 }
 0xb08   :  { %3701 = vrot.lane.b32.xlu0 %v9134_v30, %s9449_s18  ;;  %v9136_v37 = vpop.eup %9135 }
 0xb09   :  { %v9138_v16 = vpop.eup %9137  ;;  %v3681_v9 = vadd.f32 1.0, %v9136_v37 }
 0xb0a   :  { %v3682_v52 = vadd.f32 1.0, %v9138_v16 }
 0xb0b   :  { %9139 = vrcp.f32 %v3681_v9 }
 0xb0c   :  { %9141 = vrcp.f32 %v3682_v52 }
 0xb15   :  { %v9140_v12 = vpop.eup %9139 }
 0xb16   :  { %v9142_v51 = vpop.eup %9141  ;;  %v3695_v38 = vmul.f32 %v9140_v12, %v3691_v27 }
 0xb17   :  { %v3696_v20 = vmul.f32 %v9142_v51, %v3692_v24 }
 0xb79   :  { %v3700_v41 = vpop.permute.xlu1 %3699 }
 0xb7a   :  { %v3702_v25 = vpop.permute.xlu0 %3701  ;;  %v3705_v10 = vmul.f32 %v9140_v12, %v3700_v41 }
 0xb7b   :  { %v3706_v44 = vmul.f32 %v9142_v51, %v3702_v25 }
 0xb7c   :  { %3709 = vrot.lane.b32.xlu1 %v3705_v10, %s9449_s18 }
 0xb7d   :  { %3711 = vrot.lane.b32.xlu0 %v3706_v44, %s9449_s18 }
 0xbee   :  { %v3710_v50 = vpop.permute.xlu1 %3709 }
 0xbef   :  { %v3712_v46 = vpop.permute.xlu0 %3711  ;;  %v3715_v29 = vadd.f32 %v3710_v50, %v3695_v38 }
 0xbf0   :  { %v3716_v53 = vadd.f32 %v3712_v46, %v3696_v20 }
 0xbf1   :  { %9143 = vtanh.f32 %v3715_v29  ;;  %v3831_v38 = vrot.slane %v3715_v29, 7 }
 0xbf2   :  { %9145 = vtanh.f32 %v3716_v53  ;;  %v3832_v20 = vrot.slane %v3716_v53, 7 }
 0xbfb   :  { %v9144_v23 = vpop.eup %9143 }
 0xbfc   :  { %v9146_v19 = vpop.eup %9145  ;;  %3721 = vrot.lane.b32.xlu1 %v9144_v23, %s9449_s18 }
 0xbfd   :  { %3723 = vrot.lane.b32.xlu0 %v9146_v19, %s9449_s18 }
 0xc6e   :  { %v3722_v18 = vpop.permute.xlu1 %3721 }
 0xc6f   :  { %v3724_v2 = vpop.permute.xlu0 %3723  ;;  %v11023_v33 = vmul.f32 %v9140_v12, %v3722_v18 }
 0xc70   :  { %v11025_v63 = vmul.f32 %v9142_v51, %v3724_v2 }
 0xc71   :  { %v11030_v26 = vsel %vm5437_vm9, %v10998_v42, %v11023_v33  ;;  %v3731_v61 = vrot.slane %v11023_v33, 3 }
 0xc72   :  { %v11036_v1 = vsel %vm5437_vm9, %v11003_v48, %v11025_v63  ;;  %v3732_v62 = vrot.slane %v11025_v63, 2 }
 0xc74   :  { %v3733_v49 = vsel %vm59_vm1, %v3732_v62, %v3731_v61 }
 0xc75   :  { %3734 = vrot.lane.b32.xlu1 %v3733_v49, %s9450_s19 }
 0xce7   :  { %v3735_v7 = vpop.permute.xlu1 %3734 }
 0xce8   :  { %8401 = vmatmul.mubr.msk.f32.vlgmr.msra.gmra.mrb[22].mxu1 %vm3167_vm6, %v3735_v7 }
 0xce9   :  { %8777 = vmatpush3.bf16.msra.mxu1 %v10864_v35  ;;  %8411 = vmatprep.mubr.msk.f32.mxu1 %vm9444_vm0, %v9443_v3 }
 0xcea   :  { %8778 = vmatprep.subr.bf16.mxu1 %v9447_v4 }
 0xced   :  { %8780 = vmatpush3.bf16.msra.mxu1 %v10876_v45 }
 0xcee   :  { %8787 = vmatprep.subr.bf16.mxu1 %v9447_v4 }
 0xdbb   :  { %v3804_v42 = vpop.f32.mrb[22].mxu1 }
 0xdbc   :  { %v3809_v48 = vrot.slane %v3804_v42, 4  ;;  %v3810_v58 = vrot.slane %v3804_v42, 5  ;;  %v8402_v30 = vpop.f32.mrb[23].mxu1 }
 0xdbe   :  { %v3813_v13 = vadd.f32 %v3809_v48, %v10910_v6  ;;  %v3814_v8 = vadd.f32 %v3810_v58, %v10900_v32 }
 0xdc0   :  { %9147 = vtanh.f32 %v3813_v13  ;;  %v7785_v9 = vmul.f32 -1.442695, %v3813_v13  ;;  %v7786_v52 = vmul.f32 -1.442695, %v3814_v8 }
 0xdc1   :  { %9149 = vtanh.f32 %v3814_v8 }
 0xdc2   :  { %9151 = vpow2.f32 %v7785_v9 }
 0xdc3   :  { %9153 = vpow2.f32 %v7786_v52 }
 0xdca   :  { %v9148_v37 = vpop.eup %9147 }
 0xdcb   :  { %v9150_v16 = vpop.eup %9149  ;;  %3839 = vrot.lane.b32.xlu0 %v9148_v37, %s9449_s18 }
 0xdcc   :  { %3841 = vrot.lane.b32.xlu1 %v9150_v16, %s9449_s18  ;;  %v9152_v12 = vpop.eup %9151 }
 0xdcd   :  { %v9154_v41 = vpop.eup %9153  ;;  %v3821_v51 = vadd.f32 1.0, %v9152_v12 }
 0xdce   :  { %v3822_v25 = vadd.f32 1.0, %v9154_v41 }
 0xdcf   :  { %9155 = vrcp.f32 %v3821_v51 }
 0xdd0   :  { %9157 = vrcp.f32 %v3822_v25 }
 0xdd9   :  { %v9156_v6 = vpop.eup %9155 }
 0xdda   :  { %v9158_v10 = vpop.eup %9157  ;;  %v3835_v50 = vmul.f32 %v9156_v6, %v3831_v38 }
 0xddb   :  { %v3836_v46 = vmul.f32 %v9158_v10, %v3832_v20 }
 0xe3d   :  { %v3840_v32 = vpop.permute.xlu0 %3839 }
 0xe3e   :  { %v3842_v44 = vpop.permute.xlu1 %3841  ;;  %v3845_v27 = vmul.f32 %v9156_v6, %v3840_v32 }
 0xe3f   :  { %v3846_v24 = vmul.f32 %v9158_v10, %v3842_v44 }
 0xe40   :  { %3849 = vrot.lane.b32.xlu0 %v3845_v27, %s9449_s18 }
 0xe41   :  { %3851 = vrot.lane.b32.xlu1 %v3846_v24, %s9449_s18 }
 0xeb2   :  { %v3850_v23 = vpop.permute.xlu0 %3849 }
 0xeb3   :  { %v3852_v19 = vpop.permute.xlu1 %3851  ;;  %v3855_v18 = vadd.f32 %v3850_v23, %v3835_v50 }
 0xeb4   :  { %v3856_v2 = vadd.f32 %v3852_v19, %v3836_v46 }
 0xeb5   :  { %9159 = vtanh.f32 %v3855_v18  ;;  %v3971_v50 = vrot.slane %v3855_v18, 7 }
 0xeb6   :  { %9161 = vtanh.f32 %v3856_v2  ;;  %v3972_v46 = vrot.slane %v3856_v2, 7 }
 0xebf   :  { %v9160_v61 = vpop.eup %9159 }
 0xec0   :  { %v9162_v62 = vpop.eup %9161  ;;  %3861 = vrot.lane.b32.xlu0 %v9160_v61, %s9449_s18 }
 0xec1   :  { %3863 = vrot.lane.b32.xlu1 %v9162_v62, %s9449_s18 }
 0xf32   :  { %v3862_v49 = vpop.permute.xlu0 %3861 }
 0xf33   :  { %v3864_v7 = vpop.permute.xlu1 %3863  ;;  %v11056_v42 = vmul.f32 %v9156_v6, %v3862_v49 }
 0xf34   :  { %v11058_v29 = vmul.f32 %v9158_v10, %v3864_v7 }
 0xf35   :  { %v5441_v53 = vsel %vm5440_vm10, %v11030_v26, %v11056_v42  ;;  %v3871_v48 = vrot.slane %v11056_v42, 4 }
 0xf36   :  { %v5442_v58 = vsel %vm5440_vm10, %v11036_v1, %v11058_v29  ;;  %v3872_v30 = vrot.slane %v11058_v29, 3 }
 0xf38   :  { %v3873_v13 = vsel %vm59_vm1, %v3872_v30, %v3871_v48 }
 0xf39   :  { %3874 = vrot.lane.b32.xlu0 %v3873_v13, %s9450_s19 }
 0xfab   :  { %v3875_v8 = vpop.permute.xlu0 %3874 }
 0xfac   :  { %8412 = vmatmul.mubr.msk.f32.vlgmr.msra.gmra.mrb[24].mxu1 %vm3167_vm6, %v3875_v8 }
 0xfad   :  { %8789 = vmatpush3.bf16.msra.mxu1 %v10864_v35  ;;  %8433 = vmatprep.mubr.msk.f32.mxu1 %vm9444_vm0, %v9443_v3 }
 0xfae   :  { %8790 = vmatprep.subr.bf16.mxu1 %v9447_v4 }
 0xfb1   :  { %8792 = vmatpush3.bf16.msra.mxu1 %v10876_v45 }
 0xfb2   :  { %8799 = vmatprep.subr.bf16.mxu1 %v9447_v4 }
0x107f   :  { %v3944_v26 = vpop.f32.mrb[24].mxu1 }
0x1080   :  { %v3949_v1 = vrot.slane %v3944_v26, 3  ;;  %v3950_v37 = vrot.slane %v3944_v26, 4  ;;  %v8413_v16 = vpop.f32.mrb[25].mxu1 }
0x1082   :  { %v3953_v9 = vadd.f32 %v3949_v1, %v10902_v5  ;;  %v3954_v52 = vadd.f32 %v3950_v37, %v10912_v40 }
0x1084   :  { %9163 = vtanh.f32 %v3953_v9  ;;  %v7788_v51 = vmul.f32 -1.442695, %v3953_v9  ;;  %v7789_v25 = vmul.f32 -1.442695, %v3954_v52 }
0x1085   :  { %9165 = vtanh.f32 %v3954_v52 }
0x1086   :  { %9167 = vpow2.f32 %v7788_v51 }
0x1087   :  { %9169 = vpow2.f32 %v7789_v25 }
0x108e   :  { %v9164_v12 = vpop.eup %9163 }
0x108f   :  { %v9166_v41 = vpop.eup %9165  ;;  %3979 = vrot.lane.b32.xlu1 %v9164_v12, %s9449_s18 }
0x1090   :  { %3981 = vrot.lane.b32.xlu0 %v9166_v41, %s9449_s18  ;;  %v9168_v6 = vpop.eup %9167 }
0x1091   :  { %v9170_v32 = vpop.eup %9169  ;;  %v3961_v10 = vadd.f32 1.0, %v9168_v6 }
0x1092   :  { %v3962_v44 = vadd.f32 1.0, %v9170_v32 }
0x1093   :  { %9171 = vrcp.f32 %v3961_v10 }
0x1094   :  { %9173 = vrcp.f32 %v3962_v44 }
0x109d   :  { %v9172_v5 = vpop.eup %9171 }
0x109e   :  { %v9174_v27 = vpop.eup %9173  ;;  %v3975_v23 = vmul.f32 %v9172_v5, %v3971_v50 }
0x109f   :  { %v3976_v19 = vmul.f32 %v9174_v27, %v3972_v46 }
0x1101   :  { %v3980_v40 = vpop.permute.xlu1 %3979 }
0x1102   :  { %v3982_v24 = vpop.permute.xlu0 %3981  ;;  %v3985_v38 = vmul.f32 %v9172_v5, %v3980_v40 }
0x1103   :  { %v3986_v20 = vmul.f32 %v9174_v27, %v3982_v24 }
0x1104   :  { %3989 = vrot.lane.b32.xlu1 %v3985_v38, %s9449_s18 }
0x1105   :  { %3991 = vrot.lane.b32.xlu0 %v3986_v20, %s9449_s18 }
0x1176   :  { %v3990_v61 = vpop.permute.xlu1 %3989 }
0x1177   :  { %v3992_v62 = vpop.permute.xlu0 %3991  ;;  %v3995_v49 = vadd.f32 %v3990_v61, %v3975_v23 }
0x1178   :  { %v3996_v7 = vadd.f32 %v3992_v62, %v3976_v19 }
0x1179   :  { %9175 = vtanh.f32 %v3995_v49  ;;  %v4111_v23 = vrot.slane %v3995_v49, 7 }
0x117a   :  { %9177 = vtanh.f32 %v3996_v7  ;;  %v4112_v19 = vrot.slane %v3996_v7, 7 }
0x1183   :  { %v9176_v48 = vpop.eup %9175 }
0x1184   :  { %v9178_v30 = vpop.eup %9177  ;;  %4001 = vrot.lane.b32.xlu1 %v9176_v48, %s9449_s18 }
0x1185   :  { %4003 = vrot.lane.b32.xlu0 %v9178_v30, %s9449_s18 }
0x11f6   :  { %v4002_v13 = vpop.permute.xlu1 %4001 }
0x11f7   :  { %v4004_v8 = vpop.permute.xlu0 %4003  ;;  %v11085_v26 = vmul.f32 %v9172_v5, %v4002_v13 }
0x11f8   :  { %v11087_v18 = vmul.f32 %v9174_v27, %v4004_v8 }
0x11f9   :  { %v11091_v2 = vsel %vm2686_vm3, %v5441_v53, %v11085_v26  ;;  %v4011_v1 = vrot.slane %v11085_v26, 5 }
0x11fa   :  { %v11096_v37 = vsel %vm2686_vm3, %v5442_v58, %v11087_v18  ;;  %v4012_v16 = vrot.slane %v11087_v18, 4 }
0x11fc   :  { %v4013_v9 = vsel %vm59_vm1, %v4012_v16, %v4011_v1 }
0x11fd   :  { %4014 = vrot.lane.b32.xlu1 %v4013_v9, %s9450_s19 }
0x126f   :  { %v4015_v52 = vpop.permute.xlu1 %4014 }
0x1270   :  { %8423 = vmatmul.mubr.msk.f32.vlgmr.msra.gmra.mrb[10].mxu0 %vm3167_vm6, %v4015_v52 }
0x1271   :  { %8795 = vmatpush3.bf16.msra.mxu0 %v10864_v35  ;;  %8444 = vmatprep.mubr.msk.f32.mxu0 %vm9444_vm0, %v9443_v3 }
0x1272   :  { %8796 = vmatprep.subr.bf16.mxu0 %v9447_v4 }
0x1275   :  { %8798 = vmatpush3.bf16.msra.mxu0 %v10876_v45 }
0x1276   :  { %8805 = vmatprep.subr.bf16.mxu0 %v9447_v4 }
0x1343   :  { %v4084_v53 = vpop.f32.mrb[10].mxu0 }
0x1344   :  { %v4089_v58 = vrot.slane %v4084_v53, 2  ;;  %v4090_v12 = vrot.slane %v4084_v53, 3  ;;  %v8424_v41 = vpop.f32.mrb[11].mxu0 }
0x1346   :  { %v4093_v51 = vadd.f32 %v4089_v58, %v10904_v60  ;;  %v4094_v25 = vadd.f32 %v4090_v12, %v10906_v11 }
0x1348   :  { %9179 = vtanh.f32 %v4093_v51  ;;  %v7791_v10 = vmul.f32 -1.442695, %v4093_v51  ;;  %v7792_v44 = vmul.f32 -1.442695, %v4094_v25 }
0x1349   :  { %9181 = vtanh.f32 %v4094_v25 }
0x134a   :  { %9183 = vpow2.f32 %v7791_v10 }
0x134b   :  { %9185 = vpow2.f32 %v7792_v44 }
0x1352   :  { %v9180_v6 = vpop.eup %9179 }
0x1353   :  { %v9182_v32 = vpop.eup %9181  ;;  %4119 = vrot.lane.b32.xlu0 %v9180_v6, %s9449_s18 }
0x1354   :  { %4121 = vrot.lane.b32.xlu1 %v9182_v32, %s9449_s18  ;;  %v9184_v5 = vpop.eup %9183 }
0x1355   :  { %v9186_v40 = vpop.eup %9185  ;;  %v4101_v27 = vadd.f32 1.0, %v9184_v5 }
0x1356   :  { %v4102_v24 = vadd.f32 1.0, %v9186_v40 }
0x1357   :  { %9187 = vrcp.f32 %v4101_v27 }
0x1358   :  { %9189 = vrcp.f32 %v4102_v24 }
0x1361   :  { %v9188_v60 = vpop.eup %9187 }
0x1362   :  { %v9190_v38 = vpop.eup %9189  ;;  %v4115_v61 = vmul.f32 %v9188_v60, %v4111_v23 }
0x1363   :  { %v4116_v62 = vmul.f32 %v9190_v38, %v4112_v19 }
0x13c5   :  { %v4120_v11 = vpop.permute.xlu0 %4119 }
0x13c6   :  { %v4122_v20 = vpop.permute.xlu1 %4121  ;;  %v4125_v50 = vmul.f32 %v9188_v60, %v4120_v11 }
0x13c7   :  { %v4126_v46 = vmul.f32 %v9190_v38, %v4122_v20 }
0x13c8   :  { %4129 = vrot.lane.b32.xlu0 %v4125_v50, %s9449_s18 }
0x13c9   :  { %4131 = vrot.lane.b32.xlu1 %v4126_v46, %s9449_s18 }
0x143a   :  { %v4130_v48 = vpop.permute.xlu0 %4129 }
0x143b   :  { %v4132_v30 = vpop.permute.xlu1 %4131  ;;  %v4135_v13 = vadd.f32 %v4130_v48, %v4115_v61 }
0x143c   :  { %v4136_v8 = vadd.f32 %v4132_v30, %v4116_v62 }
0x143d   :  { %9191 = vtanh.f32 %v4135_v13  ;;  %v4251_v61 = vrot.slane %v4135_v13, 7 }
0x143e   :  { %9193 = vtanh.f32 %v4136_v8  ;;  %v4252_v62 = vrot.slane %v4136_v8, 7 }
0x1447   :  { %v9192_v1 = vpop.eup %9191 }
0x1448   :  { %v9194_v16 = vpop.eup %9193  ;;  %4141 = vrot.lane.b32.xlu0 %v9192_v1, %s9449_s18 }
0x1449   :  { %4143 = vrot.lane.b32.xlu1 %v9194_v16, %s9449_s18 }
0x14ba   :  { %v4142_v9 = vpop.permute.xlu0 %4141 }
0x14bb   :  { %v4144_v52 = vpop.permute.xlu1 %4143  ;;  %v11116_v53 = vmul.f32 %v9188_v60, %v4142_v9 }
0x14bc   :  { %v11118_v49 = vmul.f32 %v9190_v38, %v4144_v52 }
0x14bd   :  { %v4151_v7 = vrot.slane %v11116_v53, 6  ;;  %v11124_v58 = vsel %vm2633_vm2, %v11091_v2, %v11116_v53 }
0x14be   :  { %v4152_v12 = vrot.slane %v11118_v49, 5  ;;  %v11130_v41 = vsel %vm2633_vm2, %v11096_v37, %v11118_v49  ;;  %v5515_v49 = vrot.slane %v10991_v14, 5 }
0x14c0   :  { %v4153_v51 = vsel %vm59_vm1, %v4152_v12, %v4151_v7 }
0x14c1   :  { %4154 = vrot.lane.b32.xlu0 %v4153_v51, %s9450_s19 }
0x1533   :  { %v4155_v25 = vpop.permute.xlu0 %4154 }
0x1534   :  { %8434 = vmatmul.mubr.msk.f32.vlgmr.msra.gmra.mrb[26].mxu1 %vm3167_vm6, %v4155_v25 }
0x1535   :  { %8801 = vmatpush3.bf16.msra.mxu1 %v10864_v35  ;;  %8455 = vmatprep.mubr.msk.f32.mxu1 %vm9444_vm0, %v9443_v3 }
0x1536   :  { %8802 = vmatprep.subr.bf16.mxu1 %v9447_v4 }
0x1539   :  { %8804 = vmatpush3.bf16.msra.mxu1 %v10876_v45 }
0x153a   :  { %8811 = vmatprep.subr.bf16.mxu1 %v9447_v4 }
0x1607   :  { %v4224_v2 = vpop.f32.mrb[26].mxu1 }
0x1608   :  { %v4229_v37 = vrot.slane %v4224_v2, 1  ;;  %v4230_v6 = vrot.slane %v4224_v2, 2  ;;  %v8435_v32 = vpop.f32.mrb[27].mxu1 }
0x160a   :  { %v4233_v10 = vadd.f32 %v4229_v37, %v10908_v15  ;;  %v4234_v44 = vadd.f32 %v4230_v6, %v10914_v22  ;;  %v5499_v37 = vrot.slane %v11116_v53, 5 }
0x160c   :  { %9195 = vtanh.f32 %v4233_v10  ;;  %v7794_v27 = vmul.f32 -1.442695, %v4233_v10  ;;  %v7795_v24 = vmul.f32 -1.442695, %v4234_v44  ;;  %v5502_v10 = vrot.slane %v11085_v26, 3 }
0x160d   :  { %9197 = vtanh.f32 %v4234_v44 }
0x160e   :  { %9199 = vpow2.f32 %v7794_v27  ;;  %v5510_v27 = vrot.slane %v11023_v33, 7  ;;  %v5511_v33 = vrot.slane %v11025_v63, 7 }
0x160f   :  { %9201 = vpow2.f32 %v7795_v24  ;;  %v5506_v24 = vrot.slane %v11056_v42, 1 }
0x1616   :  { %v9196_v5 = vpop.eup %9195 }
0x1617   :  { %v9198_v40 = vpop.eup %9197  ;;  %4259 = vrot.lane.b32.xlu1 %v9196_v5, %s9449_s18 }
0x1618   :  { %4261 = vrot.lane.b32.xlu0 %v9198_v40, %s9449_s18  ;;  %v9200_v60 = vpop.eup %9199 }
0x1619   :  { %v9202_v11 = vpop.eup %9201  ;;  %v4241_v38 = vadd.f32 1.0, %v9200_v60  ;;  %v5503_v60 = vrot.slane %v11087_v18, 3 }
0x161a   :  { %v4242_v20 = vadd.f32 1.0, %v9202_v11  ;;  %v5507_v11 = vrot.slane %v11058_v29, 1  ;;  %v5518_v29 = vrot.slane %v10963_v31, 3 }
0x161b   :  { %9203 = vrcp.f32 %v4241_v38 }
0x161c   :  { %9205 = vrcp.f32 %v4242_v20 }
0x1625   :  { %v9204_v15 = vpop.eup %9203 }
0x1626   :  { %v9206_v50 = vpop.eup %9205  ;;  %v4255_v48 = vmul.f32 %v9204_v15, %v4251_v61 }
0x1627   :  { %v4256_v30 = vmul.f32 %v9206_v50, %v4252_v62 }
0x1689   :  { %v4260_v22 = vpop.permute.xlu1 %4259 }
0x168a   :  { %v4262_v46 = vpop.permute.xlu0 %4261  ;;  %v4265_v23 = vmul.f32 %v9204_v15, %v4260_v22 }
0x168b   :  { %v4266_v19 = vmul.f32 %v9206_v50, %v4262_v46 }
0x168c   :  { %4269 = vrot.lane.b32.xlu1 %v4265_v23, %s9449_s18 }
0x168d   :  { %4271 = vrot.lane.b32.xlu0 %v4266_v19, %s9449_s18 }
0x16fe   :  { %v4270_v1 = vpop.permute.xlu1 %4269 }
0x16ff   :  { %v4272_v16 = vpop.permute.xlu0 %4271  ;;  %v11149_v9 = vadd.f32 %v4270_v1, %v4255_v48 }
0x1700   :  { %v11151_v52 = vadd.f32 %v4272_v16, %v4256_v30 }
0x1701   :  { %9207 = vtanh.f32 %v11149_v9 }
0x1702   :  { %9209 = vtanh.f32 %v11151_v52 }
0x170b   :  { %v9208_v7 = vpop.eup %9207 }
0x170c   :  { %v9210_v51 = vpop.eup %9209  ;;  %4281 = vrot.lane.b32.xlu1 %v9208_v7, %s9449_s18 }
0x170d   :  { %4283 = vrot.lane.b32.xlu0 %v9210_v51, %s9449_s18 }
0x177e   :  { %v4282_v13 = vpop.permute.xlu1 %4281 }
0x177f   :  { %v4284_v8 = vpop.permute.xlu0 %4283  ;;  %v4287_v25 = vmul.f32 %v9204_v15, %v4282_v13  ;;  %v5519_v15 = vrot.slane %v10965_v0, 3 }
0x1780   :  { %v4288_v2 = vmul.f32 %v9206_v50, %v4284_v8 }
0x1781   :  { %v4299_v6 = vrot.slane %v4287_v25, 7  ;;  %v11160_v32 = vsel %vm2544_vm4, %v11124_v58, %v4287_v25 }
0x1782   :  { %v5496_v44 = vrot.slane %v4288_v2, 7  ;;  %v4300_v5 = vrot.slane %v4288_v2, 6  ;;  %v11165_v40 = vsel %vm2544_vm4, %v11130_v41, %v4288_v2  ;;  %v5514_v41 = vrot.slane %v10986_v36, 5 }
0x1783   :  { %v5540_v53 = vsel %vm5431_vm7, %v4299_v6, %v5499_v37 }
0x1784   :  { %v5541_v26 = vsel %vm5431_vm7, %v5496_v44, %v4152_v12  ;;  %v5542_v58 = vsel %vm5434_vm8, %v5540_v53, %v5502_v10  ;;  %v4301_v38 = vsel %vm59_vm1, %v4300_v5, %v4299_v6  ;;  %v4398_v44 = vrot.slane %v11149_v9, 7 }
0x1785   :  { %v5543_v42 = vsel %vm5434_vm8, %v5541_v26, %v5503_v60  ;;  %4302 = vrot.lane.b32.xlu1 %v4301_v38, %s9450_s19  ;;  %v5544_v18 = vsel %vm5437_vm9, %v5542_v58, %v5506_v24 }
0x1786   :  { %v5546_v12 = vsel %vm5440_vm10, %v5544_v18, %v5510_v27  ;;  %v5545_v20 = vsel %vm5437_vm9, %v5543_v42, %v5507_v11  ;;  %v4399_v27 = vrot.slane %v11151_v52, 7 }
0x1787   :  { %v5548_v36 = vsel %vm2686_vm3, %v5546_v12, %v5514_v41  ;;  %v5547_v63 = vsel %vm5440_vm10, %v5545_v20, %v5511_v33 }
0x1788   :  { %v11190_v22 = vsel %vm2633_vm2, %v5548_v36, %v5518_v29  ;;  %v5549_v50 = vsel %vm2686_vm3, %v5547_v63, %v5515_v49 }
0x1789   :  { %v11194_v46 = vsel %vm2633_vm2, %v5549_v50, %v5519_v15 }
0x17f7   :  { %v4303_v31 = vpop.permute.xlu1 %4302 }
0x17f8   :  { %8445 = vmatmul.mubr.msk.f32.vlgmr.msra.gmra.mrb[16].mxu0 %vm3167_vm6, %v4303_v31 }
0x17f9   :  { %8807 = vmatpush3.bf16.msra.mxu0 %v10864_v35  ;;  %8466 = vmatprep.mubr.msk.f32.mxu0 %vm9444_vm0, %v9443_v3 }
0x17fa   :  { %8808 = vmatprep.subr.bf16.mxu0 %v9447_v4 }
0x17fd   :  { %8810 = vmatpush3.bf16.msra.mxu0 %v10876_v45 }
0x17fe   :  { %8817 = vmatprep.subr.bf16.mxu0 %v9447_v4 }
0x18cb   :  { %v4372_v0 = vpop.f32.mrb[16].mxu0 }
0x18cc   :  { %v4377_v14 = vrot.slane %v4372_v0, 1  ;;  %v4380_v23 = vadd.f32 %v4372_v0, %v10924_v47  ;;  %v8446_v19 = vpop.f32.mrb[17].mxu0 }
0x18ce   :  { %v4381_v61 = vadd.f32 %v4377_v14, %v10916_v43  ;;  %9211 = vtanh.f32 %v4380_v23  ;;  %v7797_v30 = vmul.f32 -1.442695, %v4380_v23 }
0x18d0   :  { %9213 = vtanh.f32 %v4381_v61  ;;  %v7798_v1 = vmul.f32 -1.442695, %v4381_v61 }
0x18d1   :  { %9215 = vpow2.f32 %v7797_v30 }
0x18d2   :  { %9217 = vpow2.f32 %v7798_v1 }
0x18d8   :  { %v9212_v62 = vpop.eup %9211 }
0x18d9   :  { %4406 = vrot.lane.b32.xlu1 %v9212_v62, %s9449_s18 }
0x18da   :  { %v9214_v48 = vpop.eup %9213 }
0x18db   :  { %4408 = vrot.lane.b32.xlu0 %v9214_v48, %s9449_s18  ;;  %v9216_v16 = vpop.eup %9215 }
0x18dc   :  { %v9218_v7 = vpop.eup %9217  ;;  %v4388_v51 = vadd.f32 1.0, %v9216_v16 }
0x18dd   :  { %v4389_v13 = vadd.f32 1.0, %v9218_v7 }
0x18de   :  { %9219 = vrcp.f32 %v4388_v51 }
0x18df   :  { %9221 = vrcp.f32 %v4389_v13 }
0x18e8   :  { %v9220_v8 = vpop.eup %9219 }
0x18e9   :  { %v9222_v37 = vpop.eup %9221  ;;  %v4402_v5 = vmul.f32 %v9220_v8, %v4398_v44 }
0x18ea   :  { %v4403_v53 = vmul.f32 %v9222_v37, %v4399_v27 }
0x194b   :  { %v4407_v25 = vpop.permute.xlu1 %4406 }
0x194c   :  { %v4412_v2 = vmul.f32 %v9220_v8, %v4407_v25 }
0x194d   :  { %v4409_v6 = vpop.permute.xlu0 %4408 }
0x194e   :  { %4416 = vrot.lane.b32.xlu1 %v4412_v2, %s9449_s18  ;;  %v4413_v10 = vmul.f32 %v9222_v37, %v4409_v6 }
0x1950   :  { %4418 = vrot.lane.b32.xlu0 %v4413_v10, %s9449_s18 }
0x19c0   :  { %v4417_v24 = vpop.permute.xlu1 %4416 }
0x19c1   :  { %v4422_v60 = vadd.f32 %v4417_v24, %v4402_v5 }
0x19c2   :  { %v4419_v11 = vpop.permute.xlu0 %4418 }
0x19c3   :  { %9223 = vtanh.f32 %v4422_v60  ;;  %v4423_v26 = vadd.f32 %v4419_v11, %v4403_v53 }
0x19c5   :  { %9225 = vtanh.f32 %v4423_v26  ;;  %v4543_v51 = vrot.slane %v4423_v26, 7 }
0x19cd   :  { %v9224_v58 = vpop.eup %9223 }
0x19ce   :  { %4428 = vrot.lane.b32.xlu1 %v9224_v58, %s9449_s18 }
0x19cf   :  { %v9226_v38 = vpop.eup %9225 }
0x19d0   :  { %4430 = vrot.lane.b32.xlu0 %v9226_v38, %s9449_s18 }
0x1a40   :  { %v4429_v41 = vpop.permute.xlu1 %4428 }
0x1a41   :  { %v11215_v9 = vmul.f32 %v9220_v8, %v4429_v41  ;;  %v4542_v8 = vrot.slane %v4422_v60, 7 }
0x1a42   :  { %v4431_v33 = vpop.permute.xlu0 %4430 }
0x1a43   :  { %v11213_v42 = vmul.f32 %v9222_v37, %v4431_v33 }
0x1a45   :  { %v4444_v52 = vrot.slane %v11213_v42, 7 }
0x1a47   :  { %v4445_v18 = vsel %vm59_vm1, %v4444_v52, %v11215_v9 }
0x1a48   :  { %4446 = vrot.lane.b32.xlu0 %v4445_v18, %s9450_s19 }
0x1aba   :  { %v4447_v29 = vpop.permute.xlu0 %4446 }
0x1abb   :  { %8456 = vmatmul.mubr.msk.f32.vlgmr.msra.gmra.mrb[28].mxu1 %vm3167_vm6, %v4447_v29 }
0x1abc   :  { %8813 = vmatpush3.bf16.msra.mxu1 %v10864_v35  ;;  %8477 = vmatprep.mubr.msk.f32.mxu1 %vm9444_vm0, %v9443_v3 }
0x1abd   :  { %8814 = vmatprep.subr.bf16.mxu1 %v9447_v4 }
0x1ac0   :  { %8816 = vmatpush3.bf16.msra.mxu1 %v10876_v45 }
0x1ac1   :  { %8823 = vmatprep.subr.bf16.mxu1 %v9447_v4 }
0x1b8e   :  { %v4516_v49 = vpop.f32.mrb[28].mxu1 }
0x1b8f   :  { %v4521_v12 = vrot.slane %v4516_v49, 7  ;;  %v4525_v20 = vadd.f32 %v4516_v49, %v10920_v59  ;;  %v8457_v15 = vpop.f32.mrb[29].mxu1 }
0x1b91   :  { %v4524_v36 = vadd.f32 %v4521_v12, %v10918_v57  ;;  %9227 = vtanh.f32 %v4525_v20  ;;  %v7801_v31 = vmul.f32 -1.442695, %v4525_v20 }
0x1b93   :  { %9229 = vtanh.f32 %v4524_v36  ;;  %v7800_v0 = vmul.f32 -1.442695, %v4524_v36 }
0x1b94   :  { %9231 = vpow2.f32 %v7801_v31 }
0x1b95   :  { %9233 = vpow2.f32 %v7800_v0 }
0x1b9b   :  { %v9228_v63 = vpop.eup %9227 }
0x1b9c   :  { %4552 = vrot.lane.b32.xlu0 %v9228_v63, %s9449_s18 }
0x1b9d   :  { %v9230_v50 = vpop.eup %9229 }
0x1b9e   :  { %4550 = vrot.lane.b32.xlu1 %v9230_v50, %s9449_s18  ;;  %v9232_v14 = vpop.eup %9231 }
0x1b9f   :  { %v9234_v23 = vpop.eup %9233  ;;  %v4533_v19 = vadd.f32 1.0, %v9232_v14 }
0x1ba0   :  { %v4532_v61 = vadd.f32 1.0, %v9234_v23 }
0x1ba1   :  { %9235 = vrcp.f32 %v4533_v19 }
0x1ba2   :  { %9237 = vrcp.f32 %v4532_v61 }
0x1bab   :  { %v9236_v62 = vpop.eup %9235 }
0x1bac   :  { %v9238_v1 = vpop.eup %9237  ;;  %v4547_v13 = vmul.f32 %v9236_v62, %v4543_v51 }
0x1bad   :  { %v4546_v37 = vmul.f32 %v9238_v1, %v4542_v8 }
0x1c0e   :  { %v4553_v48 = vpop.permute.xlu0 %4552 }
0x1c0f   :  { %v4557_v30 = vmul.f32 %v9236_v62, %v4553_v48 }
0x1c10   :  { %v4551_v16 = vpop.permute.xlu1 %4550 }
0x1c11   :  { %4562 = vrot.lane.b32.xlu0 %v4557_v30, %s9449_s18  ;;  %v4556_v7 = vmul.f32 %v9238_v1, %v4551_v16 }
0x1c13   :  { %4560 = vrot.lane.b32.xlu1 %v4556_v7, %s9449_s18 }
0x1c83   :  { %v4563_v25 = vpop.permute.xlu0 %4562 }
0x1c84   :  { %v4567_v2 = vadd.f32 %v4563_v25, %v4547_v13 }
0x1c85   :  { %v4561_v6 = vpop.permute.xlu1 %4560 }
0x1c86   :  { %9239 = vtanh.f32 %v4567_v2  ;;  %v4566_v10 = vadd.f32 %v4561_v6, %v4546_v37  ;;  %v4688_v30 = vrot.slane %v4567_v2, 7 }
0x1c88   :  { %9241 = vtanh.f32 %v4566_v10  ;;  %v4687_v48 = vrot.slane %v4566_v10, 7 }
0x1c90   :  { %v9240_v44 = vpop.eup %9239 }
0x1c91   :  { %4574 = vrot.lane.b32.xlu0 %v9240_v44, %s9449_s18 }
0x1c92   :  { %v9242_v5 = vpop.eup %9241 }
0x1c93   :  { %4572 = vrot.lane.b32.xlu1 %v9242_v5, %s9449_s18 }
0x1d03   :  { %v4575_v27 = vpop.permute.xlu0 %4574 }
0x1d04   :  { %v11238_v11 = vmul.f32 %v9236_v62, %v4575_v27 }
0x1d05   :  { %v4573_v24 = vpop.permute.xlu1 %4572 }
0x1d06   :  { %v11236_v53 = vmul.f32 %v9238_v1, %v4573_v24  ;;  %v5450_v27 = vsel %vm5431_vm7, %v11213_v42, %v11238_v11 }
0x1d08   :  { %v4588_v60 = vrot.slane %v11236_v53, 1  ;;  %v5449_v2 = vsel %vm5431_vm7, %v11215_v9, %v11236_v53 }
0x1d0a   :  { %v4589_v26 = vsel %vm59_vm1, %v11238_v11, %v4588_v60 }
0x1d0b   :  { %4590 = vrot.lane.b32.xlu1 %v4589_v26, %s9450_s19 }
0x1d7d   :  { %v4591_v58 = vpop.permute.xlu1 %4590 }
0x1d7e   :  { %8467 = vmatmul.mubr.msk.f32.vlgmr.msra.gmra.mrb[18].mxu0 %vm3167_vm6, %v4591_v58 }
0x1d7f   :  { %8819 = vmatpush3.bf16.msra.mxu0 %v10864_v35  ;;  %8488 = vmatprep.mubr.msk.f32.mxu0 %vm9444_vm0, %v9443_v3 }
0x1d80   :  { %8820 = vmatprep.subr.bf16.mxu0 %v9447_v4 }
0x1d83   :  { %8822 = vmatpush3.bf16.msra.mxu0 %v10876_v45 }
0x1d84   :  { %8829 = vmatprep.subr.bf16.mxu0 %v9447_v4 }
0x1e51   :  { %v4660_v38 = vpop.f32.mrb[18].mxu0 }
0x1e52   :  { %v4665_v41 = vrot.slane %v4660_v38, 6  ;;  %v4666_v33 = vrot.slane %v4660_v38, 7  ;;  %v8468_v52 = vpop.f32.mrb[19].mxu0 }
0x1e54   :  { %v4669_v18 = vadd.f32 %v4665_v41, %v10922_v34  ;;  %v4670_v29 = vadd.f32 %v4666_v33, %v10926_v54 }
0x1e56   :  { %9243 = vtanh.f32 %v4669_v18  ;;  %v7803_v20 = vmul.f32 -1.442695, %v4669_v18  ;;  %v7804_v15 = vmul.f32 -1.442695, %v4670_v29 }
0x1e57   :  { %9245 = vtanh.f32 %v4670_v29 }
0x1e58   :  { %9247 = vpow2.f32 %v7803_v20 }
0x1e59   :  { %9249 = vpow2.f32 %v7804_v15 }
0x1e60   :  { %v9244_v49 = vpop.eup %9243 }
0x1e61   :  { %v9246_v12 = vpop.eup %9245  ;;  %4695 = vrot.lane.b32.xlu0 %v9244_v49, %s9449_s18 }
0x1e62   :  { %4697 = vrot.lane.b32.xlu1 %v9246_v12, %s9449_s18  ;;  %v9248_v36 = vpop.eup %9247 }
0x1e63   :  { %v9250_v63 = vpop.eup %9249  ;;  %v4677_v50 = vadd.f32 1.0, %v9248_v36 }
0x1e64   :  { %v4678_v31 = vadd.f32 1.0, %v9250_v63 }
0x1e65   :  { %9251 = vrcp.f32 %v4677_v50 }
0x1e66   :  { %9253 = vrcp.f32 %v4678_v31 }
0x1e6f   :  { %v9252_v0 = vpop.eup %9251 }
0x1e70   :  { %v9254_v23 = vpop.eup %9253  ;;  %v4691_v1 = vmul.f32 %v9252_v0, %v4687_v48 }
0x1e71   :  { %v4692_v16 = vmul.f32 %v9254_v23, %v4688_v30 }
0x1ed3   :  { %v4696_v14 = vpop.permute.xlu0 %4695 }
0x1ed4   :  { %v4698_v19 = vpop.permute.xlu1 %4697  ;;  %v4701_v61 = vmul.f32 %v9252_v0, %v4696_v14 }
0x1ed5   :  { %v4702_v62 = vmul.f32 %v9254_v23, %v4698_v19 }
0x1ed6   :  { %4705 = vrot.lane.b32.xlu0 %v4701_v61, %s9449_s18 }
0x1ed7   :  { %4707 = vrot.lane.b32.xlu1 %v4702_v62, %s9449_s18 }
0x1f48   :  { %v4706_v7 = vpop.permute.xlu0 %4705 }
0x1f49   :  { %v4708_v51 = vpop.permute.xlu1 %4707  ;;  %v4711_v13 = vadd.f32 %v4706_v7, %v4691_v1 }
0x1f4a   :  { %v4712_v8 = vadd.f32 %v4708_v51, %v4692_v16 }
0x1f4b   :  { %9255 = vtanh.f32 %v4711_v13  ;;  %v4833_v1 = vrot.slane %v4711_v13, 7 }
0x1f4c   :  { %9257 = vtanh.f32 %v4712_v8  ;;  %v4834_v16 = vrot.slane %v4712_v8, 7 }
0x1f55   :  { %v9256_v25 = vpop.eup %9255 }
0x1f56   :  { %v9258_v37 = vpop.eup %9257  ;;  %4717 = vrot.lane.b32.xlu0 %v9256_v25, %s9449_s18 }
0x1f57   :  { %4719 = vrot.lane.b32.xlu1 %v9258_v37, %s9449_s18 }
0x1fc8   :  { %v4718_v6 = vpop.permute.xlu0 %4717 }
0x1fc9   :  { %v4720_v44 = vpop.permute.xlu1 %4719  ;;  %v11259_v5 = vmul.f32 %v9252_v0, %v4718_v6 }
0x1fca   :  { %v11264_v10 = vmul.f32 %v9254_v23, %v4720_v44 }
0x1fcb   :  { %v5451_v24 = vsel %vm5434_vm8, %v5449_v2, %v11259_v5  ;;  %v4733_v60 = vrot.slane %v11259_v5, 2 }
0x1fcc   :  { %v5452_v26 = vsel %vm5434_vm8, %v5450_v27, %v11264_v10  ;;  %v4734_v58 = vrot.slane %v11264_v10, 1 }
0x1fce   :  { %v4735_v38 = vsel %vm59_vm1, %v4734_v58, %v4733_v60 }
0x1fcf   :  { %4736 = vrot.lane.b32.xlu0 %v4735_v38, %s9450_s19 }
0x2041   :  { %v4737_v41 = vpop.permute.xlu0 %4736 }
0x2042   :  { %8478 = vmatmul.mubr.msk.f32.vlgmr.msra.gmra.mrb[30].mxu1 %vm3167_vm6, %v4737_v41 }
0x2043   :  { %8825 = vmatpush3.bf16.msra.mxu1 %v10864_v35  ;;  %8499 = vmatprep.mubr.msk.f32.mxu1 %vm9444_vm0, %v9443_v3 }
0x2044   :  { %8826 = vmatprep.subr.bf16.mxu1 %v9447_v4 }
0x2047   :  { %8828 = vmatpush3.bf16.msra.mxu1 %v10876_v45 }
0x2048   :  { %8835 = vmatprep.subr.bf16.mxu1 %v9447_v4 }
0x2115   :  { %v4806_v33 = vpop.f32.mrb[30].mxu1 }
0x2116   :  { %v4811_v52 = vrot.slane %v4806_v33, 5  ;;  %v4812_v18 = vrot.slane %v4806_v33, 6  ;;  %v8479_v29 = vpop.f32.mrb[31].mxu1 }
0x2118   :  { %v4815_v49 = vadd.f32 %v4811_v52, %v10928_v28  ;;  %v4816_v12 = vadd.f32 %v4812_v18, %v10930_v17 }
0x211a   :  { %9259 = vtanh.f32 %v4815_v49  ;;  %v7806_v36 = vmul.f32 -1.442695, %v4815_v49  ;;  %v7807_v63 = vmul.f32 -1.442695, %v4816_v12 }
0x211b   :  { %9261 = vtanh.f32 %v4816_v12 }
0x211c   :  { %9263 = vpow2.f32 %v7806_v36 }
0x211d   :  { %9265 = vpow2.f32 %v7807_v63 }
0x2124   :  { %v9260_v20 = vpop.eup %9259 }
0x2125   :  { %v9262_v15 = vpop.eup %9261  ;;  %4841 = vrot.lane.b32.xlu1 %v9260_v20, %s9449_s18 }
0x2126   :  { %4843 = vrot.lane.b32.xlu0 %v9262_v15, %s9449_s18  ;;  %v9264_v50 = vpop.eup %9263 }
0x2127   :  { %v9266_v31 = vpop.eup %9265  ;;  %v4823_v0 = vadd.f32 1.0, %v9264_v50 }
0x2128   :  { %v4824_v14 = vadd.f32 1.0, %v9266_v31 }
0x2129   :  { %9267 = vrcp.f32 %v4823_v0 }
0x212a   :  { %9269 = vrcp.f32 %v4824_v14 }
0x2133   :  { %v9268_v23 = vpop.eup %9267 }
0x2134   :  { %v9270_v61 = vpop.eup %9269  ;;  %v4837_v7 = vmul.f32 %v9268_v23, %v4833_v1 }
0x2135   :  { %v4838_v51 = vmul.f32 %v9270_v61, %v4834_v16 }
0x2197   :  { %v4842_v19 = vpop.permute.xlu1 %4841 }
0x2198   :  { %v4844_v62 = vpop.permute.xlu0 %4843  ;;  %v4847_v48 = vmul.f32 %v9268_v23, %v4842_v19 }
0x2199   :  { %v4848_v30 = vmul.f32 %v9270_v61, %v4844_v62 }
0x219a   :  { %4851 = vrot.lane.b32.xlu1 %v4847_v48, %s9449_s18 }
0x219b   :  { %4853 = vrot.lane.b32.xlu0 %v4848_v30, %s9449_s18 }
0x220c   :  { %v4852_v25 = vpop.permute.xlu1 %4851 }
0x220d   :  { %v4854_v37 = vpop.permute.xlu0 %4853  ;;  %v4857_v6 = vadd.f32 %v4852_v25, %v4837_v7 }
0x220e   :  { %v4858_v44 = vadd.f32 %v4854_v37, %v4838_v51 }
0x220f   :  { %9271 = vtanh.f32 %v4857_v6  ;;  %v4973_v1 = vrot.slane %v4857_v6, 7 }
0x2210   :  { %9273 = vtanh.f32 %v4858_v44  ;;  %v4974_v16 = vrot.slane %v4858_v44, 7 }
0x2219   :  { %v9272_v2 = vpop.eup %9271 }
0x221a   :  { %v9274_v27 = vpop.eup %9273  ;;  %4863 = vrot.lane.b32.xlu1 %v9272_v2, %s9449_s18 }
0x221b   :  { %4865 = vrot.lane.b32.xlu0 %v9274_v27, %s9449_s18 }
0x228c   :  { %v4864_v60 = vpop.permute.xlu1 %4863 }
0x228d   :  { %v4866_v58 = vpop.permute.xlu0 %4865  ;;  %v11292_v38 = vmul.f32 %v9268_v23, %v4864_v60 }
0x228e   :  { %v11294_v13 = vmul.f32 %v9270_v61, %v4866_v58 }
0x228f   :  { %v5453_v8 = vsel %vm5437_vm9, %v5451_v24, %v11292_v38  ;;  %v4873_v41 = vrot.slane %v11292_v38, 3 }
0x2290   :  { %v5454_v33 = vsel %vm5437_vm9, %v5452_v26, %v11294_v13  ;;  %v4874_v52 = vrot.slane %v11294_v13, 2 }
0x2292   :  { %v4875_v18 = vsel %vm59_vm1, %v4874_v52, %v4873_v41 }
0x2293   :  { %4876 = vrot.lane.b32.xlu1 %v4875_v18, %s9450_s19 }
0x2305   :  { %v4877_v29 = vpop.permute.xlu1 %4876 }
0x2306   :  { %8489 = vmatmul.mubr.msk.f32.vlgmr.msra.gmra.mrb[20].mxu0 %vm3167_vm6, %v4877_v29 }
0x2307   :  { %8831 = vmatpush3.bf16.msra.mxu0 %v10864_v35  ;;  %8510 = vmatprep.mubr.msk.f32.mxu0 %vm9444_vm0, %v9443_v3 }
0x2308   :  { %8832 = vmatprep.subr.bf16.mxu0 %v9447_v4 }
0x230b   :  { %8834 = vmatpush3.bf16.msra.mxu0 %v10876_v45 }
0x23d9   :  { %v4946_v24 = vpop.f32.mrb[20].mxu0 }
0x23da   :  { %v4951_v26 = vrot.slane %v4946_v24, 4  ;;  %v4952_v49 = vrot.slane %v4946_v24, 5  ;;  %v8490_v12 = vpop.f32.mrb[21].mxu0 }
0x23dc   :  { %v4955_v20 = vadd.f32 %v4951_v26, %v10924_v47  ;;  %v4956_v15 = vadd.f32 %v4952_v49, %v10916_v43 }
0x23de   :  { %9275 = vtanh.f32 %v4955_v20  ;;  %v7809_v50 = vmul.f32 -1.442695, %v4955_v20  ;;  %v7810_v31 = vmul.f32 -1.442695, %v4956_v15 }
0x23df   :  { %9277 = vtanh.f32 %v4956_v15 }
0x23e0   :  { %9279 = vpow2.f32 %v7809_v50 }
0x23e1   :  { %9281 = vpow2.f32 %v7810_v31 }
0x23e8   :  { %v9276_v36 = vpop.eup %9275 }
0x23e9   :  { %v9278_v63 = vpop.eup %9277  ;;  %4981 = vrot.lane.b32.xlu0 %v9276_v36, %s9449_s18 }
0x23ea   :  { %4983 = vrot.lane.b32.xlu1 %v9278_v63, %s9449_s18  ;;  %v9280_v0 = vpop.eup %9279 }
0x23eb   :  { %v9282_v14 = vpop.eup %9281  ;;  %v4963_v23 = vadd.f32 1.0, %v9280_v0 }
0x23ec   :  { %v4964_v19 = vadd.f32 1.0, %v9282_v14 }
0x23ed   :  { %9283 = vrcp.f32 %v4963_v23 }
0x23ee   :  { %9285 = vrcp.f32 %v4964_v19 }
0x23f7   :  { %v9284_v47 = vpop.eup %9283 }
0x23f8   :  { %v9286_v61 = vpop.eup %9285  ;;  %v4977_v7 = vmul.f32 %v9284_v47, %v4973_v1 }
0x23f9   :  { %v4978_v51 = vmul.f32 %v9286_v61, %v4974_v16 }
0x245b   :  { %v4982_v43 = vpop.permute.xlu0 %4981 }
0x245c   :  { %v4984_v62 = vpop.permute.xlu1 %4983  ;;  %v4987_v48 = vmul.f32 %v9284_v47, %v4982_v43 }
0x245d   :  { %v4988_v30 = vmul.f32 %v9286_v61, %v4984_v62 }
0x245e   :  { %4991 = vrot.lane.b32.xlu0 %v4987_v48, %s9449_s18 }
0x245f   :  { %4993 = vrot.lane.b32.xlu1 %v4988_v30, %s9449_s18 }
0x24d0   :  { %v4992_v25 = vpop.permute.xlu0 %4991 }
0x24d1   :  { %v4994_v37 = vpop.permute.xlu1 %4993  ;;  %v4997_v2 = vadd.f32 %v4992_v25, %v4977_v7 }
0x24d2   :  { %v4998_v27 = vadd.f32 %v4994_v37, %v4978_v51 }
0x24d3   :  { %9287 = vtanh.f32 %v4997_v2  ;;  %v5113_v48 = vrot.slane %v4997_v2, 7 }
0x24d4   :  { %9289 = vtanh.f32 %v4998_v27  ;;  %v5114_v30 = vrot.slane %v4998_v27, 7 }
0x24dd   :  { %v9288_v60 = vpop.eup %9287 }
0x24de   :  { %v9290_v58 = vpop.eup %9289  ;;  %5003 = vrot.lane.b32.xlu0 %v9288_v60, %s9449_s18 }
0x24df   :  { %5005 = vrot.lane.b32.xlu1 %v9290_v58, %s9449_s18 }
0x2550   :  { %v5004_v41 = vpop.permute.xlu0 %5003 }
0x2551   :  { %v5006_v52 = vpop.permute.xlu1 %5005  ;;  %v11318_v18 = vmul.f32 %v9284_v47, %v5004_v41 }
0x2552   :  { %v11320_v6 = vmul.f32 %v9286_v61, %v5006_v52 }
0x2553   :  { %v5455_v44 = vsel %vm5440_vm10, %v5453_v8, %v11318_v18  ;;  %v5013_v29 = vrot.slane %v11318_v18, 4 }
0x2554   :  { %v5456_v24 = vsel %vm5440_vm10, %v5454_v33, %v11320_v6  ;;  %v5014_v26 = vrot.slane %v11320_v6, 3 }
0x2556   :  { %v5015_v49 = vsel %vm59_vm1, %v5014_v26, %v5013_v29 }
0x2557   :  { %5016 = vrot.lane.b32.xlu0 %v5015_v49, %s9450_s19 }
0x25c9   :  { %v5017_v12 = vpop.permute.xlu0 %5016 }
0x25ca   :  { %8500 = vmatmul.mubr.msk.f32.vlgmr.msra.gmra.mrb[32].mxu1 %vm3167_vm6, %v5017_v12 }
0x25cb   :  { %8837 = vmatpush3.bf16.msra.mxu1 %v10864_v35  ;;  %8521 = vmatprep.mubr.msk.f32.mxu1 %vm9444_vm0, %v9443_v3 }
0x25cc   :  { %8838 = vmatprep.subr.bf16.mxu1 %v9447_v4 }
0x25cf   :  { %8840 = vmatpush3.bf16.msra.mxu1 %v10876_v45 }
0x269d   :  { %v5086_v8 = vpop.f32.mrb[32].mxu1 }
0x269e   :  { %v5091_v33 = vrot.slane %v5086_v8, 3  ;;  %v5092_v20 = vrot.slane %v5086_v8, 4  ;;  %v8501_v15 = vpop.f32.mrb[33].mxu1 }
0x26a0   :  { %v5095_v36 = vadd.f32 %v5091_v33, %v10918_v57  ;;  %v5096_v63 = vadd.f32 %v5092_v20, %v10920_v59 }
0x26a2   :  { %9291 = vtanh.f32 %v5095_v36  ;;  %v7812_v35 = vmul.f32 -1.442695, %v5095_v36  ;;  %v7813_v0 = vmul.f32 -1.442695, %v5096_v63 }
0x26a3   :  { %9293 = vtanh.f32 %v5096_v63 }
0x26a4   :  { %9295 = vpow2.f32 %v7812_v35 }
0x26a5   :  { %9297 = vpow2.f32 %v7813_v0 }
0x26ac   :  { %v9292_v50 = vpop.eup %9291 }
0x26ad   :  { %v9294_v31 = vpop.eup %9293  ;;  %5121 = vrot.lane.b32.xlu1 %v9292_v50, %s9449_s18 }
0x26ae   :  { %5123 = vrot.lane.b32.xlu0 %v9294_v31, %s9449_s18  ;;  %v9296_v45 = vpop.eup %9295 }
0x26af   :  { %v9298_v14 = vpop.eup %9297  ;;  %v5103_v23 = vadd.f32 1.0, %v9296_v45 }
0x26b0   :  { %v5104_v19 = vadd.f32 1.0, %v9298_v14 }
0x26b1   :  { %9299 = vrcp.f32 %v5103_v23 }
0x26b2   :  { %9301 = vrcp.f32 %v5104_v19 }
0x26bb   :  { %v9300_v57 = vpop.eup %9299 }
0x26bc   :  { %v9302_v47 = vpop.eup %9301  ;;  %v5117_v1 = vmul.f32 %v9300_v57, %v5113_v48 }
0x26bd   :  { %v5118_v16 = vmul.f32 %v9302_v47, %v5114_v30 }
0x271f   :  { %v5122_v59 = vpop.permute.xlu1 %5121 }
0x2720   :  { %v5124_v43 = vpop.permute.xlu0 %5123  ;;  %v5127_v61 = vmul.f32 %v9300_v57, %v5122_v59 }
0x2721   :  { %v5128_v62 = vmul.f32 %v9302_v47, %v5124_v43 }
0x2722   :  { %5131 = vrot.lane.b32.xlu1 %v5127_v61, %s9449_s18 }
0x2723   :  { %5133 = vrot.lane.b32.xlu0 %v5128_v62, %s9449_s18 }
0x2794   :  { %v5132_v7 = vpop.permute.xlu1 %5131 }
0x2795   :  { %v5134_v51 = vpop.permute.xlu0 %5133  ;;  %v5137_v25 = vadd.f32 %v5132_v7, %v5117_v1 }
0x2796   :  { %v5138_v37 = vadd.f32 %v5134_v51, %v5118_v16 }
0x2797   :  { %9303 = vtanh.f32 %v5137_v25  ;;  %v5253_v61 = vrot.slane %v5137_v25, 7 }
0x2798   :  { %9305 = vtanh.f32 %v5138_v37  ;;  %v5254_v62 = vrot.slane %v5138_v37, 7 }
0x27a1   :  { %v9304_v60 = vpop.eup %9303 }
0x27a2   :  { %v9306_v58 = vpop.eup %9305  ;;  %5143 = vrot.lane.b32.xlu1 %v9304_v60, %s9449_s18 }
0x27a3   :  { %5145 = vrot.lane.b32.xlu0 %v9306_v58, %s9449_s18 }
0x2814   :  { %v5144_v41 = vpop.permute.xlu1 %5143 }
0x2815   :  { %v5146_v52 = vpop.permute.xlu0 %5145  ;;  %v11344_v29 = vmul.f32 %v9300_v57, %v5144_v41 }
0x2816   :  { %v11346_v2 = vmul.f32 %v9302_v47, %v5146_v52 }
0x2817   :  { %v5153_v27 = vrot.slane %v11344_v29, 5  ;;  %v5457_v26 = vsel %vm2686_vm3, %v5455_v44, %v11344_v29 }
0x2818   :  { %v5154_v49 = vrot.slane %v11346_v2, 4  ;;  %v5458_v12 = vsel %vm2686_vm3, %v5456_v24, %v11346_v2 }
0x281a   :  { %v5155_v8 = vsel %vm59_vm1, %v5154_v49, %v5153_v27 }
0x281b   :  { %5156 = vrot.lane.b32.xlu1 %v5155_v8, %s9450_s19 }
0x288d   :  { %v5157_v33 = vpop.permute.xlu1 %5156 }
0x288e   :  { %8511 = vmatmul.mubr.msk.f32.vlgmr.msra.gmra.mrb[22].mxu0 %vm3167_vm6, %v5157_v33 }
0x2961   :  { %v5226_v20 = vpop.f32.mrb[22].mxu0 }
0x2962   :  { %v5231_v15 = vrot.slane %v5226_v20, 2  ;;  %v5232_v36 = vrot.slane %v5226_v20, 3  ;;  %v8512_v63 = vpop.f32.mrb[23].mxu0 }
0x2964   :  { %v5235_v50 = vadd.f32 %v5231_v15, %v10922_v34  ;;  %v5236_v44 = vadd.f32 %v5232_v36, %v10926_v54 }
0x2966   :  { %9307 = vtanh.f32 %v5235_v50  ;;  %v7815_v24 = vmul.f32 -1.442695, %v5235_v50  ;;  %v7816_v0 = vmul.f32 -1.442695, %v5236_v44 }
0x2967   :  { %9309 = vtanh.f32 %v5236_v44 }
0x2968   :  { %9311 = vpow2.f32 %v7815_v24 }
0x2969   :  { %9313 = vpow2.f32 %v7816_v0 }
0x2970   :  { %v9308_v31 = vpop.eup %9307 }
0x2971   :  { %v9310_v35 = vpop.eup %9309  ;;  %5261 = vrot.lane.b32.xlu0 %v9308_v31, %s9449_s18 }
0x2972   :  { %5263 = vrot.lane.b32.xlu1 %v9310_v35, %s9449_s18  ;;  %v9312_v45 = vpop.eup %9311 }
0x2973   :  { %v9314_v14 = vpop.eup %9313  ;;  %v5243_v23 = vadd.f32 1.0, %v9312_v45 }
0x2974   :  { %v5244_v19 = vadd.f32 1.0, %v9314_v14 }
0x2975   :  { %9315 = vrcp.f32 %v5243_v23 }
0x2976   :  { %9317 = vrcp.f32 %v5244_v19 }
0x297f   :  { %v9316_v34 = vpop.eup %9315 }
0x2980   :  { %v9318_v57 = vpop.eup %9317  ;;  %v5257_v48 = vmul.f32 %v9316_v34, %v5253_v61 }
0x2981   :  { %v5258_v30 = vmul.f32 %v9318_v57, %v5254_v62 }
0x29e3   :  { %v5262_v54 = vpop.permute.xlu0 %5261 }
0x29e4   :  { %v5264_v59 = vpop.permute.xlu1 %5263  ;;  %v5267_v47 = vmul.f32 %v9316_v34, %v5262_v54 }
0x29e5   :  { %v5268_v43 = vmul.f32 %v9318_v57, %v5264_v59 }
0x29e6   :  { %5271 = vrot.lane.b32.xlu0 %v5267_v47, %s9449_s18 }
0x29e7   :  { %5273 = vrot.lane.b32.xlu1 %v5268_v43, %s9449_s18 }
0x2a58   :  { %v5272_v1 = vpop.permute.xlu0 %5271 }
0x2a59   :  { %v5274_v16 = vpop.permute.xlu1 %5273  ;;  %v5277_v7 = vadd.f32 %v5272_v1, %v5257_v48 }
0x2a5a   :  { %v5278_v51 = vadd.f32 %v5274_v16, %v5258_v30 }
0x2a5b   :  { %9319 = vtanh.f32 %v5277_v7  ;;  %v5393_v47 = vrot.slane %v5277_v7, 7 }
0x2a5c   :  { %9321 = vtanh.f32 %v5278_v51  ;;  %v5394_v43 = vrot.slane %v5278_v51, 7  ;;  %v5591_v51 = vld [vmem:[%s11875_s2 + $0x8] sm:$0xff] }
0x2a65   :  { %v9320_v60 = vpop.eup %9319 }
0x2a66   :  { %v9322_v58 = vpop.eup %9321  ;;  %5283 = vrot.lane.b32.xlu0 %v9320_v60, %s9449_s18 }
0x2a67   :  { %5285 = vrot.lane.b32.xlu1 %v9322_v58, %s9449_s18 }
0x2ad8   :  { %v5284_v41 = vpop.permute.xlu0 %5283 }
0x2ad9   :  { %v5286_v52 = vpop.permute.xlu1 %5285  ;;  %v11365_v27 = vmul.f32 %v9316_v34, %v5284_v41  ;;  %v5522_v41 = vrot.slane %v10942_v21, 1 }
0x2ada   :  { %v11367_v25 = vmul.f32 %v9318_v57, %v5286_v52  ;;  %v5592_v52 = vld [vmem:[%s11875_s2 + $0x18] sm:$0xff] }
0x2adb   :  { %v5293_v37 = vrot.slane %v11365_v27, 6  ;;  %v11372_v49 = vsel %vm2633_vm2, %v5457_v26, %v11365_v27  ;;  %v5552_v7 = vsel %vm2544_vm4, %v11190_v22, %v5522_v41  ;;  %v8841_v21 = vpack.c.bf16 %v5592_v52, %v5591_v51  ;;  %v5593_v22 = vld [vmem:[%s11875_s2 + $0x28] sm:$0xff] }
0x2adc   :  { %v5294_v8 = vrot.slane %v11367_v25, 5  ;;  %v11377_v33 = vsel %vm2633_vm2, %v5458_v12, %v11367_v25 }
0x2add   :  { %8842 = vmatprep.subr.bf16.mxu0 %v8841_v21 }
0x2ade   :  { %v5295_v20 = vsel %vm59_vm1, %v5294_v8, %v5293_v37  ;;  %8844 = vmatpush3.bf16.msra.mxu0 %v8841_v21 }
0x2adf   :  { %5296 = vrot.lane.b32.xlu0 %v5295_v20, %s9450_s19 }
0x2b51   :  { %v5297_v15 = vpop.permute.xlu0 %5296 }
0x2b52   :  { %8522 = vmatmul.mubr.msk.f32.vlgmr.msra.gmra.mrb[34].mxu1 %vm3167_vm6, %v5297_v15 }
0x2c25   :  { %v5366_v36 = vpop.f32.mrb[34].mxu1 }
0x2c26   :  { %v5371_v63 = vrot.slane %v5366_v36, 1  ;;  %v5372_v50 = vrot.slane %v5366_v36, 2  ;;  %v8523_v26 = vpop.f32.mrb[35].mxu1 }
0x2c28   :  { %v5375_v44 = vadd.f32 %v5371_v63, %v10928_v28  ;;  %v5376_v31 = vadd.f32 %v5372_v50, %v10930_v17  ;;  %v5469_v63 = vrot.slane %v11365_v27, 5  ;;  %v5477_v27 = vrot.slane %v11320_v6, 1 }
0x2c2a   :  { %9323 = vtanh.f32 %v5375_v44  ;;  %v7818_v24 = vmul.f32 -1.442695, %v5375_v44  ;;  %v7819_v0 = vmul.f32 -1.442695, %v5376_v31  ;;  %v5472_v44 = vrot.slane %v11344_v29, 3 }
0x2c2b   :  { %9325 = vtanh.f32 %v5376_v31 }
0x2c2c   :  { %9327 = vpow2.f32 %v7818_v24  ;;  %v5473_v24 = vrot.slane %v11346_v2, 3 }
0x2c2d   :  { %9329 = vpow2.f32 %v7819_v0 }
0x2c34   :  { %v9324_v12 = vpop.eup %9323 }
0x2c35   :  { %v9326_v35 = vpop.eup %9325  ;;  %5401 = vrot.lane.b32.xlu1 %v9324_v12, %s9449_s18  ;;  %v5484_v12 = vrot.slane %v11259_v5, 5 }
0x2c36   :  { %5403 = vrot.lane.b32.xlu0 %v9326_v35, %s9449_s18  ;;  %v9328_v45 = vpop.eup %9327  ;;  %v5476_v35 = vrot.slane %v11318_v18, 1 }
0x2c37   :  { %v9330_v14 = vpop.eup %9329  ;;  %v5383_v23 = vadd.f32 1.0, %v9328_v45  ;;  %v5480_v45 = vrot.slane %v11292_v38, 7  ;;  %v5485_v38 = vrot.slane %v11264_v10, 5 }
0x2c38   :  { %v5384_v19 = vadd.f32 1.0, %v9330_v14  ;;  %v5481_v14 = vrot.slane %v11294_v13, 7  ;;  %v5489_v13 = vrot.slane %v11238_v11, 3  ;;  %v5523_v11 = vrot.slane %v10940_v56, 1 }
0x2c39   :  { %9331 = vrcp.f32 %v5383_v23  ;;  %v5488_v23 = vrot.slane %v11236_v53, 3 }
0x2c3a   :  { %9333 = vrcp.f32 %v5384_v19 }
0x2c43   :  { %v9332_v28 = vpop.eup %9331 }
0x2c44   :  { %v9334_v34 = vpop.eup %9333  ;;  %v5397_v61 = vmul.f32 %v9332_v28, %v5393_v47 }
0x2c45   :  { %v5398_v62 = vmul.f32 %v9334_v34, %v5394_v43 }
0x2ca7   :  { %v5402_v17 = vpop.permute.xlu1 %5401 }
0x2ca8   :  { %v5404_v54 = vpop.permute.xlu0 %5403  ;;  %v5407_v57 = vmul.f32 %v9332_v28, %v5402_v17 }
0x2ca9   :  { %v5408_v59 = vmul.f32 %v9334_v34, %v5404_v54  ;;  %v5553_v54 = vsel %vm2544_vm4, %v11194_v46, %v5523_v11 }
0x2caa   :  { %5411 = vrot.lane.b32.xlu1 %v5407_v57, %s9449_s18 }
0x2cab   :  { %5413 = vrot.lane.b32.xlu0 %v5408_v59, %s9449_s18 }
0x2d1c   :  { %v5412_v48 = vpop.permute.xlu1 %5411 }
0x2d1d   :  { %v5414_v30 = vpop.permute.xlu0 %5413  ;;  %v5417_v1 = vadd.f32 %v5412_v48, %v5397_v61 }
0x2d1e   :  { %v5418_v16 = vadd.f32 %v5414_v30, %v5398_v62 }
0x2d1f   :  { %9335 = vtanh.f32 %v5417_v1 }
0x2d20   :  { %9337 = vtanh.f32 %v5418_v16 }
0x2d29   :  { %v9336_v60 = vpop.eup %9335 }
0x2d2a   :  { %v9338_v58 = vpop.eup %9337  ;;  %5423 = vrot.lane.b32.xlu1 %v9336_v60, %s9449_s18 }
0x2d2b   :  { %5425 = vrot.lane.b32.xlu0 %v9338_v58, %s9449_s18 }
0x2d2e   :  { %5558 = vrot.lane.b32.xlu1 %v11160_v32, %s9450_s19  ;;  %v5594_v32 = vld [vmem:[%s11875_s2 + $0x38] sm:$0xff]  ;;  %s9451_s2 = smov 112  }
0x2d2f   :  { %5576 = vrot.lane.b32.xlu0 %v5552_v7, %s9450_s19 }
0x2d32   :  { %5562 = vrot.lane.b32.xlu1 %v11165_v40, %s9450_s19  ;;  %v8845_v40 = vpack.c.bf16 %v5594_v32, %v5593_v22 }
0x2d34   :  { %8846 = vmatprep.subr.bf16.mxu0 %v8845_v40 }
0x2d35   :  { %8848 = vmatpush3.bf16.msra.mxu0 %v8845_v40 }
0x2d9c   :  { %v5424_v37 = vpop.permute.xlu1 %5423 }
0x2d9d   :  { %v5426_v20 = vpop.permute.xlu0 %5425  ;;  %v5429_v15 = vmul.f32 %v9332_v28, %v5424_v37 }
0x2d9e   :  { %v5430_v36 = vmul.f32 %v9334_v34, %v5426_v20  ;;  %v5493_v34 = vrot.slane %v11213_v42, 1 }
0x2d9f   :  { %v5465_v50 = vrot.slane %v5429_v15, 7  ;;  %v5461_v26 = vsel %vm2544_vm4, %v11372_v49, %v5429_v15 }
0x2da0   :  { %v5466_v31 = vrot.slane %v5430_v36, 7  ;;  %5560 = vrot.lane.b32.xlu1 %v5461_v26, %s9450_s19  ;;  %v5462_v2 = vsel %vm2544_vm4, %v11377_v33, %v5430_v36  ;;  %v5559_v57 = vpop.permute.xlu1 %5558 }
0x2da1   :  { %v5526_v0 = vsel %vm5431_vm7, %v5465_v50, %v5469_v63  ;;  %v5577_v47 = vpop.permute.xlu0 %5576 }
0x2da2   :  { %v5527_v49 = vsel %vm5431_vm7, %v5466_v31, %v5294_v8  ;;  %v5528_v29 = vsel %vm5434_vm8, %v5526_v0, %v5472_v44  ;;  %v5492_v8 = vrot.slane %v11215_v9, 1 }
0x2da3   :  { %v5529_v5 = vsel %vm5434_vm8, %v5527_v49, %v5473_v24  ;;  %v5530_v18 = vsel %vm5437_vm9, %v5528_v29, %v5476_v35 }
0x2da4   :  { %v5531_v6 = vsel %vm5437_vm9, %v5529_v5, %v5477_v27  ;;  %5564 = vrot.lane.b32.xlu1 %v5462_v2, %s9450_s19  ;;  %v5532_v25 = vsel %vm5440_vm10, %v5530_v18, %v5480_v45  ;;  %v5563_v59 = vpop.permute.xlu1 %5562 }
0x2da5   :  { %v5534_v19 = vsel %vm2686_vm3, %v5532_v25, %v5484_v12  ;;  %v5533_v28 = vsel %vm5440_vm10, %v5531_v6, %v5481_v14 }
0x2da6   :  { %v5536_v33 = vsel %vm2633_vm2, %v5534_v19, %v5488_v23  ;;  %v5535_v53 = vsel %vm2686_vm3, %v5533_v28, %v5485_v38 }
0x2da7   :  { %v5538_v10 = vsel %vm2544_vm4, %v5536_v33, %v5492_v8  ;;  %v5537_v17 = vsel %vm2633_vm2, %v5535_v53, %v5489_v13  ;;  %vm7613_vm2 = vcmask 25600  }
0x2da8   :  { %5574 = vrot.lane.b32.xlu0 %v5538_v10, %s9450_s19  ;;  %v5539_v9 = vsel %vm2544_vm4, %v5537_v17, %v5493_v34 }
0x2dac   :  { %5578 = vrot.lane.b32.xlu0 %v5539_v9, %s9450_s19 }
0x2db0   :  { %5580 = vrot.lane.b32.xlu0 %v5553_v54, %s9450_s19 }
0x2e12   :  { %v5561_v43 = vpop.permute.xlu1 %5560 }
0x2e13   :  { %v5588_v42 = vsel %vm5586_vm11, %v5561_v43, %v5577_v47 }
0x2e16   :  { %v5565_v46 = vpop.permute.xlu1 %5564 }
0x2e1a   :  { %v5575_v61 = vpop.permute.xlu0 %5574 }
0x2e1b   :  { %v5587_v62 = vsel %vm5586_vm11, %v5559_v57, %v5575_v61 }
0x2e1c   :  { %8532 = vmatprep.mubr.msk.f32.mxu0 %vm3167_vm6, %v5587_v62 }
0x2e1d   :  { %8533 = vmatmul.mubr.msk.f32.vlgmr.msra.gmra.mrb[24].mxu0 %vm3167_vm6, %v5588_v42 }
0x2e1e   :  { %v5579_v56 = vpop.permute.xlu0 %5578 }
0x2e1f   :  { %v5589_v48 = vsel %vm5586_vm11, %v5563_v59, %v5579_v56 }
0x2e20   :  { %8535 = vmatprep.mubr.msk.f32.mxu0 %vm3167_vm6, %v5589_v48 }
0x2e22   :  { %v5581_v30 = vpop.permute.xlu0 %5580 }
0x2e23   :  { %v5590_v1 = vsel %vm5586_vm11, %v5565_v46, %v5581_v30 }
0x2e24   :  { %8536 = vmatmul.mubr.msk.f32.gmra.mrb[26].mxu0 %vm3167_vm6, %v5590_v1 }
0x2ef0   :  { %v8534_v16 = vpop.f32.mrb[24].mxu0 }
0x2ef1   :  { %v5673_v60 = vpop.f32.mrb[25].mxu0 }
0x2ef2   :  { %8542 = vmatprep.mubr.msk.f32.mxu1 %vm5698_vm12, %v5673_v60  ;;  %v11462_v58 = vpack.i.bf16 %v8534_v16, %v5673_v60 }
0x2ef4   :  { %9000 = vrot.lane.b32.xlu0 %v11462_v58, %s9451_s2 }
0x2ef7   :  { %v11465_v41 = vpop.f32.mrb[26].mxu0 }
0x2ef8   :  { %9005 = vrot.lane.b32.xlu0 %v11462_v58, %s9452_s28  ;;  %v5683_v7 = vpop.f32.mrb[27].mxu0 }
0x2ef9   :  { %8549 = vmatprep.mubr.msk.f32.mxu0 %vm5698_vm12, %v5683_v7  ;;  %v11470_v51 = vpack.i.bf16 %v11465_v41, %v5683_v7 }
0x2efb   :  { %9010 = vrot.lane.b32.xlu1 %v11470_v51, %s9451_s2 }
0x2efc   :  { %5964 = vrot.lane.b32.xlu0 %v11465_v41, %s9453_s29 }
0x2eff   :  { %9015 = vrot.lane.b32.xlu1 %v11462_v58, %s9454_s30 }
0x2f00   :  { %5873 = vrot.lane.b32.xlu0 %v8534_v16, %s9453_s29 }
0x2f03   :  { %9020 = vrot.lane.b32.xlu1 %v11470_v51, %s9452_s28 }
0x2f04   :  { %5962 = vrot.lane.b32.xlu0 %v5683_v7, %s9453_s29 }
0x2f07   :  { %5871 = vrot.lane.b32.xlu1 %v5673_v60, %s9453_s29 }
0x2f08   :  { %6146 = vrot.lane.b32.xlu0 %v11465_v41, %s9455_s7 }
0x2f0b   :  { %9025 = vrot.lane.b32.xlu1 %v11470_v51, %s9454_s30 }
0x2f0c   :  { %6144 = vrot.lane.b32.xlu0 %v5683_v7, %s9455_s7 }
0x2f0f   :  { %9030 = vrot.lane.b32.xlu1 %v11462_v58, %s9456_s8 }
0x2f10   :  { %6055 = vrot.lane.b32.xlu0 %v8534_v16, %s9455_s7 }
0x2f13   :  { %9035 = vrot.lane.b32.xlu1 %v11470_v51, %s9456_s8 }
0x2f14   :  { %6328 = vrot.lane.b32.xlu0 %v11465_v41, %s9457_s3 }
0x2f17   :  { %6053 = vrot.lane.b32.xlu1 %v5673_v60, %s9455_s7 }
0x2f18   :  { %6237 = vrot.lane.b32.xlu0 %v8534_v16, %s9457_s3 }
0x2f1b   :  { %6326 = vrot.lane.b32.xlu1 %v5683_v7, %s9457_s3 }
0x2f1c   :  { %9040 = vrot.lane.b32.xlu0 %v11462_v58, %s9448_s16 }
0x2f1f   :  { %6235 = vrot.lane.b32.xlu1 %v5673_v60, %s9457_s3 }
0x2f20   :  { %9045 = vrot.lane.b32.xlu0 %v11462_v58, %s9458_s9 }
0x2f23   :  { %9050 = vrot.lane.b32.xlu1 %v11470_v51, %s9448_s16 }
0x2f27   :  { %9055 = vrot.lane.b32.xlu1 %v11470_v51, %s9458_s9 }
0x2f66   :  { %v9001_v52 = vpop.permute.xlu0 %9000 }
0x2f67   :  { %v9003_v21 = vunpack.i.h.bf16 %v9001_v52  ;;  %v9002_v22 = vunpack.i.l.bf16 %v9001_v52 }
0x2f69   :  { %v8849_v40 = vpack.c.bf16 %v9003_v21, %v9002_v22 }
0x2f6a   :  { %v9006_v37 = vpop.permute.xlu0 %9005 }
0x2f6b   :  { %v9008_v20 = vunpack.i.h.bf16 %v9006_v37  ;;  %v9007_v15 = vunpack.i.l.bf16 %v9006_v37  ;;  %8851 = vmatprep.subr.msk.bf16.mxu1 %vm11489_vm13, %v8849_v40 }
0x2f6c   :  { %8854 = vmatpush3.bf16.xpose.msk.msra.mxu1 %vm11489_vm13, %v8849_v40 }
0x2f6d   :  { %v8861_v36 = vpack.c.bf16 %v9008_v20, %v9007_v15  ;;  %v9011_v63 = vpop.permute.xlu1 %9010 }
0x2f6e   :  { %v9013_v50 = vunpack.i.h.bf16 %v9011_v63  ;;  %v9012_v26 = vunpack.i.l.bf16 %v9011_v63  ;;  %v5965_v44 = vpop.permute.xlu0 %5964 }
0x2f6f   :  { %8863 = vmatprep.subr.msk.bf16.mxu1 %vm11489_vm13, %v8861_v36 }
0x2f70   :  { %v8855_v31 = vpack.c.bf16 %v9013_v50, %v9012_v26 }
0x2f71   :  { %v9016_v12 = vpop.permute.xlu1 %9015 }
0x2f72   :  { %v9018_v35 = vunpack.i.h.bf16 %v9016_v12  ;;  %v9017_v24 = vunpack.i.l.bf16 %v9016_v12  ;;  %v5874_v0 = vpop.permute.xlu0 %5873  ;;  %8857 = vmatprep.subr.msk.bf16.mxu0 %vm11489_vm13, %v8855_v31 }
0x2f73   :  { %8543 = vmatmul.mubr.msk.f32.vlgmr.msra.gmra.mrb[36].mxu1 %vm5698_vm12, %v8534_v16  ;;  %8860 = vmatpush3.bf16.xpose.msk.msra.mxu0 %vm11489_vm13, %v8855_v31 }
0x2f74   :  { %v8873_v45 = vpack.c.bf16 %v9018_v35, %v9017_v24  ;;  %8866 = vmatpush3.bf16.xpose.msk.msra.mxu1 %vm11489_vm13, %v8861_v36 }
0x2f75   :  { %v9021_v27 = vpop.permute.xlu1 %9020 }
0x2f76   :  { %v9023_v49 = vunpack.i.h.bf16 %v9021_v27  ;;  %v9022_v29 = vunpack.i.l.bf16 %v9021_v27  ;;  %v5963_v14 = vpop.permute.xlu0 %5962  ;;  %8875 = vmatprep.subr.msk.bf16.mxu1 %vm11489_vm13, %v8873_v45 }
0x2f78   :  { %v8867_v5 = vpack.c.bf16 %v9023_v49, %v9022_v29 }
0x2f79   :  { %v5872_v18 = vpop.permute.xlu1 %5871 }
0x2f7a   :  { %v6147_v2 = vpop.permute.xlu0 %6146  ;;  %8550 = vmatmul.mubr.msk.f32.vlgmr.msra.gmra.mrb[28].mxu0 %vm5698_vm12, %v11465_v41  ;;  %8556 = vmatprep.mubr.msk.f32.mxu1 %vm5698_vm12, %v5872_v18 }
0x2f7b   :  { %8869 = vmatprep.subr.msk.bf16.mxu0 %vm11489_vm13, %v8867_v5  ;;  %8557 = vmatmul.mubr.msk.f32.vlgmr.msra.gmra.mrb[38].mxu1 %vm5698_vm12, %v5874_v0 }
0x2f7c   :  { %8872 = vmatpush3.bf16.xpose.msk.msra.mxu0 %vm11489_vm13, %v8867_v5  ;;  %8563 = vmatprep.mubr.msk.f32.mxu0 %vm5698_vm12, %v5963_v14 }
0x2f7d   :  { %8878 = vmatpush3.bf16.xpose.msk.msra.mxu1 %vm11489_vm13, %v8873_v45  ;;  %v9026_v23 = vpop.permute.xlu1 %9025 }
0x2f7e   :  { %v9028_v38 = vunpack.i.h.bf16 %v9026_v23  ;;  %v9027_v6 = vunpack.i.l.bf16 %v9026_v23  ;;  %v6145_v25 = vpop.permute.xlu0 %6144 }
0x2f80   :  { %v8879_v8 = vpack.c.bf16 %v9028_v38, %v9027_v6 }
0x2f81   :  { %v9031_v13 = vpop.permute.xlu1 %9030 }
0x2f82   :  { %v9033_v19 = vunpack.i.h.bf16 %v9031_v13  ;;  %v9032_v28 = vunpack.i.l.bf16 %v9031_v13  ;;  %v6056_v33 = vpop.permute.xlu0 %6055  ;;  %8881 = vmatprep.subr.msk.bf16.mxu0 %vm11489_vm13, %v8879_v8 }
0x2f83   :  { %8564 = vmatmul.mubr.msk.f32.vlgmr.msra.gmra.mrb[30].mxu0 %vm5698_vm12, %v5965_v44 }
0x2f84   :  { %v8885_v53 = vpack.c.bf16 %v9033_v19, %v9032_v28  ;;  %8884 = vmatpush3.bf16.xpose.msk.msra.mxu0 %vm11489_vm13, %v8879_v8  ;;  %8577 = vmatprep.mubr.msk.f32.mxu0 %vm5698_vm12, %v6145_v25 }
0x2f85   :  { %v9036_v10 = vpop.permute.xlu1 %9035 }
0x2f86   :  { %v9038_v17 = vunpack.i.h.bf16 %v9036_v10  ;;  %v9037_v34 = vunpack.i.l.bf16 %v9036_v10  ;;  %v6329_v9 = vpop.permute.xlu0 %6328  ;;  %8887 = vmatprep.subr.msk.bf16.mxu1 %vm11489_vm13, %v8885_v53 }
0x2f88   :  { %v8891_v11 = vpack.c.bf16 %v9038_v17, %v9037_v34 }
0x2f89   :  { %v6054_v54 = vpop.permute.xlu1 %6053 }
0x2f8a   :  { %v6238_v57 = vpop.permute.xlu0 %6237  ;;  %8570 = vmatprep.mubr.msk.f32.mxu1 %vm5698_vm12, %v6054_v54  ;;  %8893 = vmatprep.subr.msk.bf16.mxu0 %vm11489_vm13, %v8891_v11 }
0x2f8b   :  { %8578 = vmatmul.mubr.msk.f32.vlgmr.msra.gmra.mrb[32].mxu0 %vm5698_vm12, %v6147_v2  ;;  %8571 = vmatmul.mubr.msk.f32.vlgmr.msra.gmra.mrb[40].mxu1 %vm5698_vm12, %v6056_v33 }
0x2f8c   :  { %8890 = vmatpush3.bf16.xpose.msk.msra.mxu1 %vm11489_vm13, %v8885_v53  ;;  %8896 = vmatpush3.bf16.xpose.msk.msra.mxu0 %vm11489_vm13, %v8891_v11 }
0x2f8d   :  { %v6327_v59 = vpop.permute.xlu1 %6326 }
0x2f8e   :  { %v9041_v47 = vpop.permute.xlu0 %9040  ;;  %8591 = vmatprep.mubr.msk.f32.mxu0 %vm5698_vm12, %v6327_v59 }
0x2f8f   :  { %v9043_v43 = vunpack.i.h.bf16 %v9041_v47  ;;  %v9042_v61 = vunpack.i.l.bf16 %v9041_v47 }
0x2f91   :  { %v8897_v62 = vpack.c.bf16 %v9043_v43, %v9042_v61  ;;  %v6236_v42 = vpop.permute.xlu1 %6235 }
0x2f92   :  { %v9046_v56 = vpop.permute.xlu0 %9045  ;;  %8584 = vmatprep.mubr.msk.f32.mxu1 %vm5698_vm12, %v6236_v42 }
0x2f93   :  { %v9048_v48 = vunpack.i.h.bf16 %v9046_v56  ;;  %v9047_v46 = vunpack.i.l.bf16 %v9046_v56  ;;  %8592 = vmatmul.mubr.msk.f32.vlgmr.msra.gmra.mrb[34].mxu0 %vm5698_vm12, %v6329_v9  ;;  %8585 = vmatmul.mubr.msk.f32.vlgmr.msra.gmra.mrb[42].mxu1 %vm5698_vm12, %v6238_v57 }
0x2f94   :  { %8898 = vmatprep.subr.bf16.mxu1 %v8897_v62 }
0x2f95   :  { %v8905_v30 = vpack.c.bf16 %v9048_v48, %v9047_v46  ;;  %8900 = vmatpush3.bf16.msra.mxu1 %v8897_v62  ;;  %v9051_v1 = vpop.permute.xlu1 %9050 }
0x2f96   :  { %v9053_v16 = vunpack.i.h.bf16 %v9051_v1  ;;  %v9052_v60 = vunpack.i.l.bf16 %v9051_v1 }
0x2f97   :  { %8906 = vmatprep.subr.bf16.mxu0 %v8905_v30 }
0x2f98   :  { %v11540_v41 = vpack.c.bf16 %v9053_v16, %v9052_v60  ;;  %8908 = vmatpush3.bf16.msra.mxu0 %v8905_v30 }
0x2f99   :  { %v11609_v62 = vpop.permute.xlu1 %9055 }
0x2f9a   :  { %8902 = vmatprep.subr.bf16.mxu1 %v11540_v41 }
0x3046   :  { %v8544_v7 = vpop.f32.mrb[36].mxu1 }
0x3047   :  { %v11543_v52 = vmul.f32 0.5, %v8544_v7  ;;  %v5773_v21 = vpop.f32.mrb[37].mxu1 }
0x3048   :  { %v11545_v22 = vmul.f32 0.5, %v5773_v21 }
0x3049   :  { %v6436_v32 = vsel %vm5586_vm11, %v11543_v52, -inf }
0x304a   :  { %6437 = vmax.xlane.f32.xlu0 %v6436_v32  ;;  %v6433_v40 = vsel %vm5586_vm11, %v11545_v22, -inf }
0x304b   :  { %6434 = vmax.xlane.f32.xlu1 %v6433_v40 }
0x304d   :  { %v8551_v37 = vpop.f32.mrb[28].mxu0 }
0x304e   :  { %v11551_v20 = vmul.f32 0.5, %v8551_v37  ;;  %v5862_v15 = vpop.f32.mrb[29].mxu0  ;;  %v8558_v36 = vpop.f32.mrb[38].mxu1 }
0x304f   :  { %v11553_v63 = vmul.f32 0.5, %v5862_v15  ;;  %v5953_v50 = vpop.f32.mrb[39].mxu1  ;;  %v11555_v26 = vmul.f32 0.5, %v8558_v36 }
0x3050   :  { %v6442_v44 = vsel %vm5586_vm11, %v11551_v20, -inf  ;;  %v11559_v31 = vmul.f32 0.5, %v5953_v50 }
0x3051   :  { %6443 = vmax.xlane.f32.xlu1 %v6442_v44  ;;  %v6439_v12 = vsel %vm5586_vm11, %v11553_v63, -inf  ;;  %v6448_v35 = vsel %vm5586_vm11, %v11555_v26, -inf }
0x3052   :  { %6440 = vmax.xlane.f32.xlu0 %v6439_v12  ;;  %v6445_v24 = vsel %vm5586_vm11, %v11559_v31, -inf }
0x3055   :  { %6449 = vmax.xlane.f32.xlu1 %v6448_v35 }
0x3056   :  { %v8565_v0 = vpop.f32.mrb[30].mxu0  ;;  %6446 = vmax.xlane.f32.xlu0 %v6445_v24 }
0x3057   :  { %v11567_v45 = vmul.f32 0.5, %v8565_v0  ;;  %v6044_v27 = vpop.f32.mrb[31].mxu0 }
0x3058   :  { %v11569_v49 = vmul.f32 0.5, %v6044_v27 }
0x3059   :  { %v6454_v29 = vsel %vm5586_vm11, %v11567_v45, -inf }
0x305a   :  { %6455 = vmax.xlane.f32.xlu1 %v6454_v29  ;;  %v6451_v14 = vsel %vm5586_vm11, %v11569_v49, -inf }
0x305b   :  { %6452 = vmax.xlane.f32.xlu0 %v6451_v14 }
0x305e   :  { %v8579_v5 = vpop.f32.mrb[32].mxu0  ;;  %v8572_v18 = vpop.f32.mrb[40].mxu1 }
0x305f   :  { %v11575_v2 = vmul.f32 0.5, %v8572_v18  ;;  %v6226_v23 = vpop.f32.mrb[33].mxu0  ;;  %v6135_v38 = vpop.f32.mrb[41].mxu1  ;;  %v11579_v25 = vmul.f32 0.5, %v8579_v5 }
0x3060   :  { %v11577_v6 = vmul.f32 0.5, %v6135_v38  ;;  %v11583_v13 = vmul.f32 0.5, %v6226_v23 }
0x3061   :  { %v6460_v8 = vsel %vm5586_vm11, %v11575_v2, -inf  ;;  %v6466_v28 = vsel %vm5586_vm11, %v11579_v25, -inf }
0x3062   :  { %6461 = vmax.xlane.f32.xlu1 %v6460_v8  ;;  %v6457_v19 = vsel %vm5586_vm11, %v11577_v6, -inf  ;;  %v6463_v10 = vsel %vm5586_vm11, %v11583_v13, -inf }
0x3063   :  { %6458 = vmax.xlane.f32.xlu0 %v6457_v19 }
0x3066   :  { %v8593_v33 = vpop.f32.mrb[34].mxu0  ;;  %6467 = vmax.xlane.f32.xlu1 %v6466_v28  ;;  %v8586_v53 = vpop.f32.mrb[42].mxu1 }
0x3067   :  { %v6408_v17 = vpop.f32.mrb[35].mxu0  ;;  %v11591_v34 = vmul.f32 0.5, %v8586_v53  ;;  %6464 = vmax.xlane.f32.xlu0 %v6463_v10  ;;  %v6317_v9 = vpop.f32.mrb[43].mxu1  ;;  %v11595_v54 = vmul.f32 0.5, %v8593_v33 }
0x3068   :  { %v11593_v11 = vmul.f32 0.5, %v6317_v9  ;;  %v11599_v59 = vmul.f32 0.5, %v6408_v17 }
0x3069   :  { %v6472_v57 = vsel %vm5586_vm11, %v11591_v34, -inf  ;;  %v6478_v43 = vsel %vm5586_vm11, %v11595_v54, -inf }
0x306a   :  { %6473 = vmax.xlane.f32.xlu1 %v6472_v57  ;;  %v6469_v47 = vsel %vm5586_vm11, %v11593_v11, -inf  ;;  %v6475_v61 = vsel %vm5586_vm11, %v11599_v59, -inf }
0x306b   :  { %6470 = vmax.xlane.f32.xlu0 %v6469_v47 }
0x306e   :  { %6479 = vmax.xlane.f32.xlu1 %v6478_v43 }
0x306f   :  { %6476 = vmax.xlane.f32.xlu0 %v6475_v61 }
0x307f   :  { %9060 = vrot.lane.b32.xlu1 %v11470_v51, %s9459_s10 }
0x3085   :  { %9065 = vrot.lane.b32.xlu0 %v11462_v58, %s9459_s10 }
0x30d7   :  { %v6438_v42 = vpop.xlane.xlu0 %6437 }
0x30d8   :  { %v6482_v56 = vsub.f32 %v11543_v52, %v6438_v42  ;;  %v6435_v48 = vpop.xlane.xlu1 %6434 }
0x30d9   :  { %v6481_v46 = vsub.f32 %v11545_v22, %v6435_v48 }
0x30da   :  { %v6499_v30 = vmul.f32 1.442695, %v6482_v56 }
0x30db   :  { %v6497_v1 = vmul.f32 1.442695, %v6481_v46 }
0x30dc   :  { %9339 = vpow2.f32 %v6499_v30 }
0x30dd   :  { %9341 = vpow2.f32 %v6497_v1 }
0x30de   :  { %v6444_v16 = vpop.xlane.xlu1 %6443 }
0x30df   :  { %v6484_v60 = vsub.f32 %v11551_v20, %v6444_v16  ;;  %v6441_v7 = vpop.xlane.xlu0 %6440 }
0x30e0   :  { %v6483_v21 = vsub.f32 %v11553_v63, %v6441_v7 }
0x30e1   :  { %v6503_v32 = vmul.f32 1.442695, %v6484_v60 }
0x30e2   :  { %v6501_v40 = vmul.f32 1.442695, %v6483_v21  ;;  %v6450_v37 = vpop.xlane.xlu1 %6449 }
0x30e3   :  { %9343 = vpow2.f32 %v6503_v32  ;;  %v6486_v15 = vsub.f32 %v11555_v26, %v6450_v37  ;;  %v6447_v52 = vpop.xlane.xlu0 %6446 }
0x30e4   :  { %9345 = vpow2.f32 %v6501_v40  ;;  %v6485_v22 = vsub.f32 %v11559_v31, %v6447_v52 }
0x30e5   :  { %v6507_v36 = vmul.f32 1.442695, %v6486_v15 }
0x30e6   :  { %v11617_v50 = vpop.eup %9339  ;;  %v6505_v44 = vmul.f32 1.442695, %v6485_v22 }
0x30e7   :  { %v11619_v12 = vpop.eup %9341  ;;  %9347 = vpow2.f32 %v6507_v36  ;;  %v6456_v20 = vpop.xlane.xlu1 %6455  ;;  %v6532_v63 = vsel %vm5586_vm11, %v11617_v50, 0.0 }
0x30e8   :  { %9349 = vpow2.f32 %v6505_v44  ;;  %v6488_v35 = vsub.f32 %v11567_v45, %v6456_v20  ;;  %v6453_v24 = vpop.xlane.xlu0 %6452  ;;  %6533 = vadd.xlane.f32.xlu1 %v6532_v63  ;;  %v6529_v26 = vsel %vm5586_vm11, %v11619_v12, 0.0 }
0x30e9   :  { %v6487_v31 = vsub.f32 %v11569_v49, %v6453_v24  ;;  %6530 = vadd.xlane.f32.xlu0 %v6529_v26 }
0x30ea   :  { %v6511_v0 = vmul.f32 1.442695, %v6488_v35 }
0x30eb   :  { %v6509_v27 = vmul.f32 1.442695, %v6487_v31 }
0x30ec   :  { %9351 = vpow2.f32 %v6511_v0 }
0x30ed   :  { %v11627_v29 = vpop.eup %9343  ;;  %9353 = vpow2.f32 %v6509_v27 }
0x30ee   :  { %v11629_v14 = vpop.eup %9345  ;;  %v6538_v5 = vsel %vm5586_vm11, %v11627_v29, 0.0 }
0x30ef   :  { %v6462_v45 = vpop.xlane.xlu1 %6461  ;;  %6539 = vadd.xlane.f32.xlu1 %v6538_v5  ;;  %v6535_v18 = vsel %vm5586_vm11, %v11629_v14, 0.0 }
0x30f0   :  { %v6490_v23 = vsub.f32 %v11575_v2, %v6462_v45  ;;  %v6459_v49 = vpop.xlane.xlu0 %6458  ;;  %6536 = vadd.xlane.f32.xlu0 %v6535_v18 }
0x30f1   :  { %v11636_v38 = vpop.eup %9347  ;;  %v6489_v8 = vsub.f32 %v11577_v6, %v6459_v49 }
0x30f2   :  { %v11639_v19 = vpop.eup %9349  ;;  %v6515_v28 = vmul.f32 1.442695, %v6490_v23  ;;  %v6544_v33 = vsel %vm5586_vm11, %v11636_v38, 0.0 }
0x30f3   :  { %v6513_v53 = vmul.f32 1.442695, %v6489_v8  ;;  %v6468_v10 = vpop.xlane.xlu1 %6467  ;;  %6545 = vadd.xlane.f32.xlu1 %v6544_v33  ;;  %v6541_v17 = vsel %vm5586_vm11, %v11639_v19, 0.0 }
0x30f4   :  { %9355 = vpow2.f32 %v6515_v28  ;;  %v6492_v2 = vsub.f32 %v11579_v25, %v6468_v10  ;;  %v6465_v9 = vpop.xlane.xlu0 %6464  ;;  %6542 = vadd.xlane.f32.xlu0 %v6541_v17  ;;  %v9058_v17 = vunpack.i.h.bf16 %v11609_v62 }
0x30f5   :  { %9357 = vpow2.f32 %v6513_v53  ;;  %v6491_v6 = vsub.f32 %v11583_v13, %v6465_v9 }
0x30f6   :  { %v11647_v57 = vpop.eup %9351  ;;  %v6519_v47 = vmul.f32 1.442695, %v6492_v2  ;;  %v9057_v2 = vunpack.i.l.bf16 %v11609_v62 }
0x30f7   :  { %v11649_v43 = vpop.eup %9353  ;;  %v6517_v61 = vmul.f32 1.442695, %v6491_v6  ;;  %v6550_v42 = vsel %vm5586_vm11, %v11647_v57, 0.0  ;;  %v6474_v56 = vpop.xlane.xlu1 %6473 }
0x30f8   :  { %9359 = vpow2.f32 %v6519_v47  ;;  %6551 = vadd.xlane.f32.xlu1 %v6550_v42  ;;  %v6494_v48 = vsub.f32 %v11591_v34, %v6474_v56  ;;  %v6547_v25 = vsel %vm5586_vm11, %v11649_v43, 0.0  ;;  %v6471_v46 = vpop.xlane.xlu0 %6470  ;;  %v8909_v6 = vpack.c.bf16 %v9058_v17, %v9057_v2  ;;  %v7390_v17 = vld [vmem:[%s11874_s1 + $0xbc] sm:$0xf] }
0x30f9   :  { %9361 = vpow2.f32 %v6517_v61  ;;  %6548 = vadd.xlane.f32.xlu0 %v6547_v25  ;;  %v6493_v13 = vsub.f32 %v11593_v11, %v6471_v46 }
0x30fa   :  { %v6523_v30 = vmul.f32 1.442695, %v6494_v48 }
0x30fb   :  { %v6521_v1 = vmul.f32 1.442695, %v6493_v13  ;;  %v6480_v16 = vpop.xlane.xlu1 %6479 }
0x30fc   :  { %9363 = vpow2.f32 %v6523_v30  ;;  %v6496_v60 = vsub.f32 %v11595_v54, %v6480_v16  ;;  %v6477_v7 = vpop.xlane.xlu0 %6476 }
0x30fd   :  { %9365 = vpow2.f32 %v6521_v1  ;;  %v6495_v21 = vsub.f32 %v11599_v59, %v6477_v7 }
0x30fe   :  { %v11659_v32 = vpop.eup %9355  ;;  %v6527_v34 = vmul.f32 1.442695, %v6496_v60 }
0x30ff   :  { %v11661_v40 = vpop.eup %9357  ;;  %v6525_v37 = vmul.f32 1.442695, %v6495_v21  ;;  %v6556_v15 = vsel %vm5586_vm11, %v11659_v32, 0.0  ;;  %v9061_v18 = vpop.permute.xlu1 %9060 }
0x3100   :  { %9367 = vpow2.f32 %v6527_v34  ;;  %6557 = vadd.xlane.f32.xlu1 %v6556_v15  ;;  %v9066_v11 = vpop.permute.xlu0 %9065  ;;  %v6553_v52 = vsel %vm5586_vm11, %v11661_v40, 0.0  ;;  %v9063_v56 = vunpack.i.h.bf16 %v9061_v18  ;;  %v9062_v48 = vunpack.i.l.bf16 %v9061_v18 }
0x3101   :  { %9369 = vpow2.f32 %v6525_v37  ;;  %v9068_v54 = vunpack.i.h.bf16 %v9066_v11  ;;  %v9067_v22 = vunpack.i.l.bf16 %v9066_v11  ;;  %6554 = vadd.xlane.f32.xlu0 %v6553_v52 }
0x3102   :  { %v11667_v59 = vpop.eup %9359  ;;  %v8917_v13 = vpack.c.bf16 %v9063_v56, %v9062_v48 }
0x3103   :  { %v11669_v36 = vpop.eup %9361  ;;  %v11671_v44 = vpack.c.bf16 %v9068_v54, %v9067_v22  ;;  %v6562_v20 = vsel %vm5586_vm11, %v11667_v59, 0.0 }
0x3104   :  { %6563 = vadd.xlane.f32.xlu1 %v6562_v20  ;;  %v6559_v63 = vsel %vm5586_vm11, %v11669_v36, 0.0 }
0x3105   :  { %6560 = vadd.xlane.f32.xlu0 %v6559_v63  ;;  %8914 = vmatprep.subr.bf16.mxu0 %v11671_v44 }
0x3106   :  { %v11678_v35 = vpop.eup %9363 }
0x3107   :  { %v11680_v24 = vpop.eup %9365  ;;  %v6568_v26 = vsel %vm5586_vm11, %v11678_v35, 0.0 }
0x3108   :  { %6569 = vadd.xlane.f32.xlu1 %v6568_v26  ;;  %v6565_v31 = vsel %vm5586_vm11, %v11680_v24, 0.0 }
0x3109   :  { %6566 = vadd.xlane.f32.xlu0 %v6565_v31 }
0x310a   :  { %v11686_v0 = vpop.eup %9367 }
0x310b   :  { %v11688_v27 = vpop.eup %9369  ;;  %v6574_v5 = vsel %vm5586_vm11, %v11686_v0, 0.0 }
0x310c   :  { %6575 = vadd.xlane.f32.xlu1 %v6574_v5  ;;  %v6571_v45 = vsel %vm5586_vm11, %v11688_v27, 0.0 }
0x310d   :  { %6572 = vadd.xlane.f32.xlu0 %v6571_v45 }
0x311d   :  { %9070 = vrot.lane.b32.xlu1 %v11470_v51, %s9460_s11 }
0x3123   :  { %9075 = vrot.lane.b32.xlu0 %v11462_v58, %s9460_s11 }
0x3175   :  { %v6534_v23 = vpop.xlane.xlu1 %6533 }
0x3176   :  { %9371 = vrcp.f32 %v6534_v23  ;;  %v6531_v49 = vpop.xlane.xlu0 %6530 }
0x3177   :  { %9373 = vrcp.f32 %v6531_v49  ;;  %v7388_v49 = vld [vmem:[%s11874_s1 + $0x3c] sm:$0xf] }
0x317c   :  { %v6540_v8 = vpop.xlane.xlu1 %6539 }
0x317d   :  { %9375 = vrcp.f32 %v6540_v8  ;;  %v6537_v28 = vpop.xlane.xlu0 %6536  ;;  %v7389_v8 = vld [vmem:[%s11874_s1 + $0x7c] sm:$0xf] }
0x317e   :  { %9377 = vrcp.f32 %v6537_v28 }
0x3180   :  { %v9372_v33 = vpop.eup %9371  ;;  %v6546_v53 = vpop.xlane.xlu1 %6545 }
0x3181   :  { %v9374_v10 = vpop.eup %9373  ;;  %9379 = vrcp.f32 %v6546_v53  ;;  %v6543_v51 = vpop.xlane.xlu0 %6542  ;;  %v6594_v9 = vmul.f32 %v9372_v33, %v11617_v50  ;;  %v7873_v33 = vcombine.low %v7388_v49, %v7389_v8  ;;  %v7532_v49 = vld [vmem:[%s11877_s4 + $0x20] sm:$0xff]  ;;  %v7533_v8 = vld [vmem:[%s11877_s4 + $0x28] sm:$0xff] }
0x3182   :  { %9381 = vrcp.f32 %v6543_v51  ;;  %v6593_v58 = vmul.f32 %v9374_v10, %v11619_v12 }
0x3184   :  { %8598 = vmatprep.mubr.msk.f32.mxu1 %vm5586_vm11, %v6593_v58  ;;  %v7392_v58 = vld [vmem:[%s11874_s1 + $0x13c] sm:$0xf] }
0x3185   :  { %v6552_v47 = vpop.xlane.xlu1 %6551  ;;  %8599 = vmatmul.mubr.msk.f32.vlgmr.msra.gmra.mrb[44].mxu1 %vm5586_vm11, %v6594_v9  ;;  %v7394_v9 = vld [vmem:[%s11874_s1 + $0x1bc] sm:$0xf] }
0x3186   :  { %9383 = vrcp.f32 %v6552_v47  ;;  %8904 = vmatpush3.bf16.msra.mxu1 %v11540_v41  ;;  %v6549_v61 = vpop.xlane.xlu0 %6548 }
0x3187   :  { %v9376_v42 = vpop.eup %9375  ;;  %9385 = vrcp.f32 %v6549_v61  ;;  %8910 = vmatprep.subr.bf16.mxu1 %v8909_v6  ;;  %v7640_v61 = vld [vmem:[%s11878_s5] ss:$0 sm:$0xff] }
0x3188   :  { %v9378_v62 = vpop.eup %9377  ;;  %v6596_v50 = vmul.f32 %v9376_v42, %v11627_v29  ;;  %v7396_v42 = vld [vmem:[%s11874_s1 + $0x23c] sm:$0xf]  ;;  %v146_v56 = vadd.f32 %v7640_v61, %v10451_v39 }
0x3189   :  { %v6595_v12 = vmul.f32 %v9378_v62, %v11629_v14  ;;  %v7397_v62 = vld [vmem:[%s11874_s1 + $0x27c] sm:$0xf] }
0x318a   :  { %v7877_v48 = vcombine.low %v7396_v42, %v7397_v62  ;;  %v7400_v39 = vld [vmem:[%s11874_s1 + $0x33c] sm:$0xf] }
0x318b   :  { %v9380_v25 = vpop.eup %9379  ;;  %8605 = vmatprep.mubr.msk.f32.mxu1 %vm5586_vm11, %v6595_v12  ;;  %v7398_v12 = vld [vmem:[%s11874_s1 + $0x2bc] sm:$0xf] }
0x318c   :  { %v9382_v46 = vpop.eup %9381  ;;  %8606 = vmatmul.mubr.msk.f32.vlgmr.msra.gmra.mrb[46].mxu1 %vm5586_vm11, %v6596_v50  ;;  %v6598_v1 = vmul.f32 %v9380_v25, %v11636_v38  ;;  %v7399_v50 = vld [vmem:[%s11874_s1 + $0x2fc] sm:$0xf] }
0x318d   :  { %8912 = vmatpush3.bf16.msra.mxu1 %v8909_v6  ;;  %v6558_v41 = vpop.xlane.xlu1 %6557  ;;  %v6597_v30 = vmul.f32 %v9382_v46, %v11639_v19  ;;  %v7395_v6 = vld [vmem:[%s11874_s1 + $0x1fc] sm:$0xf]  ;;  %v7878_v25 = vcombine.low %v7398_v12, %v7399_v50 }
0x318e   :  { %9387 = vrcp.f32 %v6558_v41  ;;  %8918 = vmatprep.subr.bf16.mxu1 %v8917_v13  ;;  %v6555_v16 = vpop.xlane.xlu0 %6554  ;;  %v7876_v47 = vcombine.low %v7394_v9, %v7395_v6  ;;  %v7401_v46 = vld [vmem:[%s11874_s1 + $0x37c] sm:$0xf] }
0x318f   :  { %9389 = vrcp.f32 %v6555_v16  ;;  %8612 = vmatprep.mubr.msk.f32.mxu0 %vm5586_vm11, %v6597_v30  ;;  %v7402_v41 = vld [vmem:[%s11874_s1 + $0x3bc] sm:$0xf] }
0x3190   :  { %v9384_v29 = vpop.eup %9383  ;;  %8613 = vmatmul.mubr.msk.f32.vlgmr.msra.gmra.mrb[36].mxu0 %vm5586_vm11, %v6598_v1  ;;  %v7403_v30 = vld [vmem:[%s11874_s1 + $0x3fc] sm:$0xf] }
0x3191   :  { %v9386_v14 = vpop.eup %9385  ;;  %8916 = vmatpush3.bf16.msra.mxu0 %v11671_v44  ;;  %v6564_v60 = vpop.xlane.xlu1 %6563  ;;  %v6600_v19 = vmul.f32 %v9384_v29, %v11647_v57  ;;  %v7880_v1 = vcombine.low %v7402_v41, %v7403_v30 }
0x3192   :  { %9391 = vrcp.f32 %v6564_v60  ;;  %v6561_v7 = vpop.xlane.xlu0 %6560  ;;  %v6599_v21 = vmul.f32 %v9386_v14, %v11649_v43 }
0x3193   :  { %9393 = vrcp.f32 %v6561_v7 }
0x3194   :  { %8619 = vmatprep.mubr.msk.f32.mxu1 %vm5586_vm11, %v6599_v21 }
0x3195   :  { %8620 = vmatmul.mubr.msk.f32.vlgmr.msra.gmra.mrb[48].mxu1 %vm5586_vm11, %v6600_v19  ;;  %v6570_v38 = vpop.xlane.xlu1 %6569 }
0x3196   :  { %8920 = vmatpush3.bf16.msra.mxu1 %v8917_v13  ;;  %v6567_v34 = vpop.xlane.xlu0 %6566  ;;  %v7879_v13 = vcombine.low %v7400_v39, %v7401_v46 }
0x3197   :  { %9395 = vrcp.f32 %v6567_v34 }
0x3198   :  { %v9388_v37 = vpop.eup %9387  ;;  %9397 = vrcp.f32 %v6570_v38 }
0x3199   :  { %v9390_v15 = vpop.eup %9389  ;;  %v6576_v11 = vpop.xlane.xlu1 %6575  ;;  %v6602_v43 = vmul.f32 %v9388_v37, %v11659_v32 }
0x319a   :  { %9399 = vrcp.f32 %v6576_v11  ;;  %v6573_v52 = vpop.xlane.xlu0 %6572  ;;  %v6601_v54 = vmul.f32 %v9390_v15, %v11661_v40 }
0x319b   :  { %9401 = vrcp.f32 %v6573_v52 }
0x319c   :  { %v9392_v57 = vpop.eup %9391  ;;  %8626 = vmatprep.mubr.msk.f32.mxu0 %vm5586_vm11, %v6601_v54  ;;  %9403 = vtanh.f32 %v146_v56 }
0x319d   :  { %v9394_v22 = vpop.eup %9393  ;;  %v9071_v44 = vpop.permute.xlu1 %9070  ;;  %8627 = vmatmul.mubr.msk.f32.vlgmr.msra.gmra.mrb[38].mxu0 %vm5586_vm11, %v6602_v43  ;;  %v6604_v5 = vmul.f32 %v9392_v57, %v11667_v59  ;;  %9405 = vtanh.f32 %v10898_v55 }
0x319e   :  { %v9073_v20 = vunpack.i.h.bf16 %v9071_v44  ;;  %v9072_v63 = vunpack.i.l.bf16 %v9071_v44  ;;  %v9076_v26 = vpop.permute.xlu0 %9075  ;;  %v6603_v31 = vmul.f32 %v9394_v22, %v11669_v36  ;;  %v7872_v44 = vld [vmem:[%s11878_s5 + $0x5] ss:$0 sm:$0xff] }
0x319f   :  { %v9078_v45 = vunpack.i.h.bf16 %v9076_v26  ;;  %v9077_v18 = vunpack.i.l.bf16 %v9076_v26  ;;  %v7530_v26 = vld [vmem:[%s11877_s4 + $0x10] sm:$0xff] }
0x31a0   :  { %v8925_v40 = vpack.c.bf16 %v9073_v20, %v9072_v63  ;;  %8633 = vmatprep.mubr.msk.f32.mxu1 %vm5586_vm11, %v6603_v31  ;;  %v7528_v20 = vld [vmem:[%s11877_s4] sm:$0xff]  ;;  %v7529_v63 = vld [vmem:[%s11877_s4 + $0x8] sm:$0xff] }
0x31a1   :  { %v9396_v32 = vpop.eup %9395  ;;  %v8921_v23 = vpack.c.bf16 %v9078_v45, %v9077_v18  ;;  %8634 = vmatmul.mubr.msk.f32.vlgmr.msra.gmra.mrb[50].mxu1 %vm5586_vm11, %v6604_v5  ;;  %v8930_v5 = vpack.c.bf16 %v7529_v63, %v7528_v20  ;;  %v7531_v45 = vld [vmem:[%s11877_s4 + $0x18] sm:$0xff] }
0x31a2   :  { %v9398_v36 = vpop.eup %9397  ;;  %8926 = vmatprep.subr.bf16.mxu1 %v8925_v40  ;;  %v6605_v59 = vmul.f32 %v9396_v32, %v11680_v24  ;;  %v7391_v24 = vld [vmem:[%s11874_s1 + $0xfc] sm:$0xf]  ;;  %v8933_v32 = vpack.c.bf16 %v7531_v45, %v7530_v26 }
0x31a3   :  { %8922 = vmatprep.subr.bf16.mxu0 %v8921_v23  ;;  %8928 = vmatpush3.bf16.msra.mxu1 %v8925_v40  ;;  %v6606_v10 = vmul.f32 %v9398_v36, %v11678_v35  ;;  %v7874_v35 = vcombine.low %v7390_v17, %v7391_v24  ;;  %v8936_v36 = vpack.c.bf16 %v7533_v8, %v7532_v49 }
0x31a4   :  { %v9400_v28 = vpop.eup %9399  ;;  %8924 = vmatpush3.bf16.msra.mxu0 %v8921_v23  ;;  %8640 = vmatprep.mubr.msk.f32.mxu0 %vm5586_vm11, %v6605_v59  ;;  %v7534_v59 = vld [vmem:[%s11877_s4 + $0x30] sm:$0xff] }
0x31a5   :  { %v9402_v53 = vpop.eup %9401  ;;  %8650 = vmatprep.subr.bf16.mxu0 %v9443_v3  ;;  %8929 = vmatprep.subr.bf16.mxu1 %v9447_v4  ;;  %v6608_v51 = vmul.f32 %v9400_v28, %v11686_v0  ;;  %v7535_v28 = vld [vmem:[%s11877_s4 + $0x38] sm:$0xff]  ;;  %s9464_s4 = smov [#allocation2]  }
0x31a6   :  { %v6607_v2 = vmul.f32 %v9402_v53, %v11688_v27  ;;  %v7393_v27 = vld [vmem:[%s11874_s1 + $0x17c] sm:$0xf]  ;;  %v9404_v16 = vpop.eup %9403  ;;  %s9462_s1 = smov 16  }
0x31a7   :  { %8641 = vmatmul.mubr.msk.f32.vlgmr.msra.gmra.mrb[40].mxu0 %vm5586_vm11, %v6606_v10  ;;  %v7875_v0 = vcombine.low %v7392_v58, %v7393_v27  ;;  %v7387_v29 = vpack.c.bf16 %v9404_v16, %v9404_v16  ;;  %v9406_v46 = vpop.eup %9405 }
0x31a8   :  { %8647 = vmatprep.mubr.msk.f32.mxu1 %vm5586_vm11, %v6607_v2  ;;  %8651 = vmatpush3.bf16.msra.mxu0 %v7873_v33  ;;  %v8939_v33 = vpack.c.bf16 %v7535_v28, %v7534_v59 }
0x31a9   :  { %8648 = vmatmul.mubr.msk.f32.vlgmr.msra.gmra.mrb[52].mxu1 %vm5586_vm11, %v6608_v51  ;;  %8652 = vmatprep.subr.bf16.mxu0 %v9443_v3 }
0x31aa   :  { %8666 = vmatprep.mubr.msk.bf16.mxu0 %vm9444_vm0, %v9443_v3  ;;  %8686 = vmatprep.mubr.msk.f32.mxu1 %vm9444_vm0, %v9443_v3  ;;  %vm7539_vm0 = vcmask 523264  }
0x31ab   :  { %8931 = vmatpush3.bf16.msra.mxu1 %v8930_v5 }
0x31ac   :  { %8653 = vmatpush3.bf16.msra.mxu0 %v7874_v35  ;;  %8932 = vmatprep.subr.bf16.mxu1 %v9447_v4 }
0x31ad   :  { %8654 = vmatprep.subr.bf16.mxu0 %v9443_v3 }
0x31af   :  { %8934 = vmatpush3.bf16.msra.mxu1 %v8933_v32 }
0x31b0   :  { %8655 = vmatpush3.bf16.msra.mxu0 %v7875_v0  ;;  %8935 = vmatprep.subr.bf16.mxu1 %v9447_v4 }
0x31b1   :  { %8656 = vmatprep.subr.bf16.mxu0 %v9443_v3 }
0x31b3   :  { %8937 = vmatpush3.bf16.msra.mxu1 %v8936_v36 }
0x31b4   :  { %8657 = vmatpush3.bf16.msra.mxu0 %v7876_v47  ;;  %8938 = vmatprep.subr.bf16.mxu1 %v9447_v4 }
0x31b5   :  { %8658 = vmatprep.subr.bf16.mxu0 %v9443_v3 }
0x31b7   :  { %8940 = vmatpush3.bf16.msra.mxu1 %v8939_v33 }
0x31b8   :  { %8659 = vmatpush3.bf16.msra.mxu0 %v7877_v48 }
0x31b9   :  { %8660 = vmatprep.subr.bf16.mxu0 %v9443_v3 }
0x31bc   :  { %8661 = vmatpush3.bf16.msra.mxu0 %v7878_v25 }
0x31bd   :  { %8662 = vmatprep.subr.bf16.mxu0 %v9443_v3 }
0x31c0   :  { %8663 = vmatpush3.bf16.msra.mxu0 %v7879_v13 }
0x31c1   :  { %8664 = vmatprep.subr.bf16.mxu0 %v9443_v3 }
0x31c4   :  { %8665 = vmatpush3.bf16.msra.mxu0 %v7880_v1 }
0x31c7   :  { %8667 = vmatmul.mubr.bf16.vlgmr.msra.gmra.mrb[44].mxu0 %v7387_v29 }
0x3258   :  { %v11797_v14 = vpop.f32.mrb[44].mxu1 }
0x3259   :  { %v11799_v60 = vpop.f32.mrb[45].mxu1 }
0x325f   :  { %v11801_v7 = vpop.f32.mrb[46].mxu1 }
0x3260   :  { %v11803_v21 = vpop.f32.mrb[47].mxu1 }
0x3263   :  { %v8614_v19 = vpop.f32.mrb[36].mxu0 }
0x3264   :  { %7311 = vrot.lane.b32.xlu0 %v8614_v19, %s9461_s24  ;;  %v6861_v38 = vpop.f32.mrb[37].mxu0 }
0x3265   :  { %7309 = vrot.lane.b32.xlu1 %v6861_v38, %s9461_s24 }
0x3268   :  { %v8621_v34 = vpop.f32.mrb[48].mxu1 }
0x3269   :  { %7315 = vrot.lane.b32.xlu0 %v8621_v34, %s9461_s24  ;;  %v6948_v3 = vpop.f32.mrb[49].mxu1 }
0x326a   :  { %7313 = vrot.lane.b32.xlu1 %v6948_v3, %s9461_s24 }
0x3270   :  { %v8628_v37 = vpop.f32.mrb[38].mxu0 }
0x3271   :  { %7327 = vrot.lane.b32.xlu0 %v8628_v37, %s9462_s1  ;;  %v7035_v15 = vpop.f32.mrb[39].mxu0 }
0x3272   :  { %7325 = vrot.lane.b32.xlu1 %v7035_v15, %s9462_s1 }
0x3274   :  { %v8635_v11 = vpop.f32.mrb[50].mxu1 }
0x3275   :  { %v7122_v52 = vpop.f32.mrb[51].mxu1  ;;  %7331 = vrot.lane.b32.xlu0 %v8635_v11, %s9462_s1 }
0x3276   :  { %7329 = vrot.lane.b32.xlu1 %v7122_v52, %s9462_s1 }
0x327a   :  { %v8642_v54 = vpop.f32.mrb[40].mxu0 }
0x327b   :  { %v7209_v43 = vpop.f32.mrb[41].mxu0 }
0x327c   :  { %v8649_v57 = vpop.f32.mrb[52].mxu1 }
0x327d   :  { %v7296_v22 = vpop.f32.mrb[53].mxu1  ;;  %7347 = vrot.lane.b32.xlu0 %v8649_v57, %s9463_s25 }
0x327e   :  { %7345 = vrot.lane.b32.xlu1 %v7296_v22, %s9463_s25 }
0x3281   :  { %7343 = vrot.lane.b32.xlu0 %v8642_v54, %s9463_s25 }
0x3282   :  { %7341 = vrot.lane.b32.xlu1 %v7209_v43, %s9463_s25 }
0x3286   :  { %7458 = vrot.lane.b32.xlu1 %v7872_v44, %s9448_s16 }
0x328a   :  { %7536 = vrot.lane.b32.xlu1 %v7872_v44, %s9450_s19 }
0x329a   :  { %v7495_v31 = vpop.f32.mrb[44].mxu0 }
0x329b   :  { %v8668_v18 = vpop.f32.mrb[45].mxu0 }
0x329c   :  { %v7498_v40 = vpop.f32.mrb[46].mxu0 }
0x329d   :  { %v8669_v23 = vpop.f32.mrb[47].mxu0 }
0x32d6   :  { %v7312_v53 = vpop.permute.xlu0 %7311 }
0x32d7   :  { %v7310_v10 = vpop.permute.xlu1 %7309  ;;  %v7355_v56 = vsel %vm7353_vm14, %v11797_v14, %v7312_v53 }
0x32d8   :  { %v7354_v12 = vsel %vm7353_vm14, %v11799_v60, %v7310_v10 }
0x32db   :  { %v7316_v17 = vpop.permute.xlu0 %7315 }
0x32dc   :  { %v7314_v24 = vpop.permute.xlu1 %7313  ;;  %v7357_v27 = vsel %vm7353_vm14, %v11801_v7, %v7316_v17  ;;  %v7504_v7 = vsub.f32 1.0, %v9406_v46 }
0x32dd   :  { %v7356_v0 = vsel %vm7353_vm14, %v11803_v21, %v7314_v24 }
0x32de   :  { %v7505_v37 = vmul.f32 %v7504_v7, %v10898_v55 }
0x32e3   :  { %v7328_v2 = vpop.permute.xlu0 %7327 }
0x32e4   :  { %v7326_v51 = vpop.permute.xlu1 %7325  ;;  %v7359_v50 = vsel %vm5586_vm11, %v7355_v56, %v7328_v2 }
0x32e5   :  { %v7358_v13 = vsel %vm5586_vm11, %v7354_v12, %v7326_v51 }
0x32e7   :  { %v7332_v35 = vpop.permute.xlu0 %7331 }
0x32e8   :  { %v7330_v58 = vpop.permute.xlu1 %7329  ;;  %v7361_v9 = vsel %vm5586_vm11, %v7357_v27, %v7332_v35 }
0x32e9   :  { %v7360_v6 = vsel %vm5586_vm11, %v7356_v0, %v7330_v58 }
0x32ef   :  { %v7348_v4 = vpop.permute.xlu0 %7347 }
0x32f0   :  { %v7366_v47 = vsel %vm7362_vm15, %v7361_v9, %v7348_v4  ;;  %v7346_v61 = vpop.permute.xlu1 %7345 }
0x32f1   :  { %v7377_v42 = vsel %vm3167_vm6, %v7366_v47, 0.0  ;;  %v7365_v62 = vsel %vm7362_vm15, %v7360_v6, %v7346_v61 }
0x32f2   :  { %v7376_v48 = vsel %vm3167_vm6, %v7365_v62, 0.0 }
0x32f3   :  { %v7378_v25 = vadd.f32 %v7377_v42, %v7376_v48  ;;  %v7344_v39 = vpop.permute.xlu0 %7343 }
0x32f4   :  { %v7364_v41 = vsel %vm7362_vm15, %v7359_v50, %v7344_v39  ;;  %v7342_v30 = vpop.permute.xlu1 %7341 }
0x32f5   :  { %v7379_v1 = vrot.slane %v7378_v25, 4  ;;  %v7368_v16 = vsel %vm3167_vm6, %v7364_v41, 0.0  ;;  %v7363_v29 = vsel %vm7362_vm15, %v7358_v13, %v7342_v30 }
0x32f6   :  { %v7367_v14 = vsel %vm3167_vm6, %v7363_v29, 0.0 }
0x32f7   :  { %v7380_v21 = vadd.f32 %v7379_v1, %v7378_v25  ;;  %v7369_v60 = vadd.f32 %v7368_v16, %v7367_v14 }
0x32f8   :  { %v7459_v19 = vpop.permute.xlu1 %7458 }
0x32f9   :  { %v7381_v38 = vrot.slane %v7380_v21, 2  ;;  %v7370_v34 = vrot.slane %v7369_v60, 4  ;;  %v7496_v3 = vadd.f32 %v7495_v31, %v7459_v19 }
0x32fb   :  { %v7382_v15 = vadd.f32 %v7381_v38, %v7380_v21  ;;  %v7371_v11 = vadd.f32 %v7370_v34, %v7369_v60  ;;  %v7506_v52 = vmul.f32 %v9406_v46, %v7496_v3  ;;  %v7513_v45 = vrot.slane %v7496_v3, 1 }
0x32fc   :  { %v7537_v17 = vpop.permute.xlu1 %7536 }
0x32fd   :  { %v7383_v54 = vrot.slane %v7382_v15, 1  ;;  %v7372_v43 = vrot.slane %v7371_v11, 2  ;;  %v7507_v57 = vadd.f32 %v7506_v52, %v7505_v37 }
0x32ff   :  { %v7384_v22 = vadd.f32 %v7383_v54, %v7382_v15  ;;  %v7373_v44 = vadd.f32 %v7372_v43, %v7371_v11 }
0x3301   :  { %v7386_v20 = vmul.f32 0.0625, %v7384_v22  ;;  %v7374_v63 = vrot.slane %v7373_v44, 1 }
0x3303   :  { %9407 = vtanh.f32 %v7386_v20  ;;  %v7375_v26 = vadd.f32 %v7374_v63, %v7373_v44 }
0x3305   :  { %v7385_v5 = vmul.f32 0.0625, %v7375_v26 }
0x3307   :  { %9409 = vtanh.f32 %v7385_v5 }
0x330d   :  { %v9408_v18 = vpop.eup %9407 }
0x330e   :  { %v7517_v40 = vmul.f32 %v9408_v18, %v7513_v45  ;;  %v7509_v31 = vsub.f32 1.0, %v9408_v18 }
0x3310   :  { %v7511_v32 = vmul.f32 %v7509_v31, %v7386_v20 }
0x3311   :  { %v9410_v55 = vpop.eup %9409 }
0x3312   :  { %v7508_v23 = vsub.f32 1.0, %v9410_v55  ;;  %v7516_v49 = vmul.f32 %v9410_v55, %v7496_v3  ;;  %v7519_v8 = vadd.f32 %v7517_v40, %v7511_v32 }
0x3314   :  { %v7510_v36 = vmul.f32 %v7508_v23, %v7385_v5  ;;  %v7522_v28 = vrot.slane %v7519_v8, 7 }
0x3316   :  { %v7518_v59 = vadd.f32 %v7516_v49, %v7510_v36 }
0x3318   :  { %v7523_v33 = vsel %vm59_vm1, %v7522_v28, %v7518_v59 }
0x3319   :  { %7524 = vrot.lane.b32.xlu0 %v7523_v33, %s9449_s18  ;;  %s7632_s18 = sshll.u32 %s9464_s4, 4  ;;  %s7633_s18 = int_to_ptr.vmem [resolvable:$true] %s7632_s18 }
0x331a   :  { %s9419_s15 = scalar_lea.vmem %s7633_s18, 32  ;;  %p9424_p1 = scmp.lt.s32.totalorder %s7633_s18, %s7633_s18 }
0x331b   :  { %p9420_p0 = scmp.ne.s32.totalorder %s7633_s18, %s9419_s15  ;;  %p9425_p2 = scmp.lt.s32.totalorder %s9419_s15, %s9419_s15 }
0x331d   :  { %p9426_p3 = por %p9425_p2, %p9424_p1 }
0x331f   :  { %p9427_p4 = pnand %p9426_p3, %p9420_p0 }
0x338b   :  { %v7525_v53 = vpop.permute.xlu0 %7524 }
0x338c   :  { %v7527_v10 = vsel %vm3167_vm6, %v7507_v57, %v7525_v53 }
0x338d   :  { %8687 = vmatmul.mubr.msk.f32.vlgmr.msra.gmra.mrb[54].mxu1 %vm7539_vm0, %v7527_v10 }
0x3460   :  { %v7609_v24 = vpop.f32.mrb[54].mxu1 }
0x3461   :  { %v7610_v2 = vadd.f32 %v7609_v24, %v7537_v17  ;;  %v8688_v51 = vpop.f32.mrb[55].mxu1 }
0x3463   :  { %v7614_v35 = vsel %vm7613_vm2, %v7610_v2, -inf }
0x3464   :  { %7615 = vmax.xlane.f32.xlu0 %v7614_v35 }
0x34f1   :  { %v7616_v58 = vpop.xlane.xlu0 %7615 }
0x34f2   :  { %v7617_v27 = vsub.f32 %v7610_v2, %v7616_v58 }
0x34f4   :  { %v7618_v0 = vmul.f32 1.442695, %v7617_v27 }
0x34f6   :  { %9411 = vpow2.f32 %v7618_v0 }
0x3500   :  { %v9412_v9 = vpop.eup %9411 }
0x3501   :  { %v7620_v4 = vsel %vm7613_vm2, %v9412_v9, 0.0 }
0x3502   :  { %7621 = vadd.xlane.f32.xlu1 %v7620_v4 }
0x358f   :  { %v7622_v6 = vpop.xlane.xlu1 %7621 }
0x3590   :  { %9413 = vrcp.f32 %v7622_v6 }
0x359a   :  { %v9414_v47 = vpop.eup %9413 }
0x359b   :  { %v7624_v61 = vmul.f32 %v9414_v47, %v9412_v9 }
0x359d   :  { %7625 = vst.msk [vmem:[#allocation2] sm:$0x3] %vm7613_vm2, %v7624_v61 }
0x359e   :  { %9430 = shalt.err (!%p9427_p4)
}
0x359f   :  { %s9431_s20 = scalar_lea.hbm %s11879_s6, 32 }
0x35a0   :  { %p9432_p5 = scmp.ne.s32.totalorder %s11879_s6, %s9431_s20  ;;  %p9435_p6 = scmp.lt.u32.totalorder %s9431_s20, %s11879_s6 }
0x35a2   :  { %p9437_p7 = pnand %p9435_p6, %p9432_p5 }
0x35a4   :  { %9440 = shalt.err (!%p9437_p7)
}
0x35a5   :  { %7635 = dma.vmem_to_hbm [thread:$0]  %s7633_s18, 32, %s11879_s6, [#allocation3]  }
0x35a6   :  { %9441 = dma.done.wait [#allocation3], 32  }
0x35a7   :  { %9442 = vsyncadd [#allocation3], 4294967264 }
0x35a8   :  { %7639 = vsyncpa [#allocation3], 1 }

</bundles_post_ra>
